<compile_context>
chip_gen: v7x
topology: tpu7x:2x2x1
jax: 0.10.0
libtpu: 0.0.40
codegen_flags: <defaults>
</compile_context>

<pallas_src>
import functools

import jax
import jax.numpy as jnp
from jax.experimental import pallas as pl
from jax.experimental.pallas import tpu as pltpu


def local_module_kernel(hv32_ref, hv16_ref, he_ref, oneh_ref, onehT_ref,
                        w1v_ref, w1e_ref, b1_ref, w2_ref, b2_ref, w3_ref, b3_ref,
                        av_ref, ae_ref,
                        g0_ref, beta0_ref, wd1_ref, bd1_ref, wd2_ref, bd2_ref,
                        g1_ref, beta1_ref,
                        out_ref,
                        num_acc, den_acc,
                        *, inv_scale, is_attention, eps, neg_slope):
    t = pl.program_id(0)

    @pl.when(t == 0)
    def _init():
        num_acc[...] = jnp.zeros_like(num_acc)
        den_acc[...] = jnp.zeros_like(den_acc)

    def leaky_relu(x):
        return jnp.where(x >= 0.0, x, neg_slope * x)

    hE = he_ref[...]          # [TE, Cin] bf16
    oneh = oneh_ref[...]      # [TE, N]   bf16
    onehT = onehT_ref[...]    # [N, TE]   bf16

    # ---- gather h_V[center_id[e]] as a one-hot matmul (exact: one-hot is 0/1) ----
    hVg = jnp.dot(oneh, hv16_ref[...], preferred_element_type=jnp.float32)      # [TE, H]

    # ---- message MLP W(.)  (concat split into two matmuls; bf16 in, f32 acc) ----
    h = (jnp.dot(hVg.astype(jnp.bfloat16), w1v_ref[...],
                 preferred_element_type=jnp.float32)
         + jnp.dot(hE, w1e_ref[...], preferred_element_type=jnp.float32)
         + b1_ref[...])
    h = leaky_relu(h)
    h = leaky_relu(jnp.dot(h.astype(jnp.bfloat16), w2_ref[...],
                           preferred_element_type=jnp.float32) + b2_ref[...])
    h_msg = jnp.dot(h.astype(jnp.bfloat16), w3_ref[...],
                    preferred_element_type=jnp.float32) + b3_ref[...]            # [TE, H]

    if is_attention:
        # per-edge scalar attention logit, lane-dense (VPU mul + XLU reduce)
        logit = (jnp.sum(hVg * av_ref[...], axis=-1, keepdims=True)
                 + jnp.sum(hE.astype(jnp.float32) * ae_ref[...], axis=-1,
                           keepdims=True))                                       # [TE, 1]
        z = leaky_relu(logit)
        att = jnp.exp(1.0 / (1.0 + jnp.exp(-z)))                                 # [TE, 1]
        weighted = h_msg * att
        den_acc[...] += jnp.dot(onehT, att.astype(jnp.bfloat16),
                                preferred_element_type=jnp.float32)              # [N, 1]
    else:
        weighted = h_msg

    # ---- scatter_sum over center_id: accumulate into the resident [N, H] buffer ----
    num_acc[...] += jnp.dot(onehT, weighted.astype(jnp.bfloat16),
                            preferred_element_type=jnp.float32)

    # ---- epilogue on the last edge tile: normalise, residual, LN, FFN, LN (f32) ----
    @pl.when(t == pl.num_programs(0) - 1)
    def _epilogue():
        num = num_acc[...]
        if is_attention:
            den = den_acc[...]
            inv_den = pl.reciprocal(jnp.where(den > 0.0, den, 1.0), approx=True)
            dh = jnp.where(den > 0.0, num * inv_den, 0.0) * inv_scale
        else:
            dh = num * inv_scale

        def layer_norm(v, gain, bias):
            mu = jnp.mean(v, axis=-1, keepdims=True)
            c = v - mu
            # torch.var default: unbiased (ddof = 1)
            var = jnp.sum(c * c, axis=-1, keepdims=True) * (1.0 / (v.shape[-1] - 1))
            return gain * c / (jnp.sqrt(var + eps) + eps) + bias

        x = layer_norm(hv32_ref[...] + dh, g0_ref[...], beta0_ref[...])
        ffn = jnp.maximum(
            jnp.dot(x, wd1_ref[...], preferred_element_type=jnp.float32) + bd1_ref[...],
            0.0)
        d2 = jnp.dot(ffn, wd2_ref[...], preferred_element_type=jnp.float32) + bd2_ref[...]
        out_ref[...] = layer_norm(x + d2, g1_ref[...], beta1_ref[...])


def local_module_forward(h_V, h_E, center_id, p, *, scale=30.0, is_attention=True,
                         edge_tile=128, eps=1e-6, neg_slope=0.01):
    """Pallas implementation of Local_Module.forward (dropout p=0 -> identity)."""
    N, H = h_V.shape
    E, Cin = h_E.shape
    assert E % edge_tile == 0, "demo requires E to be a multiple of the edge tile"
    n_tiles = E // edge_tile
    f32, bf16 = jnp.float32, jnp.bfloat16

    # One-hot of the center index and its transpose, built in the XLA wrapper
    # (no in-kernel transpose).
    oneh = jax.nn.one_hot(center_id, N, dtype=bf16)       # [E, N]
    onehT = jnp.transpose(oneh)                           # [N, E]

    # Pre-transpose weights to [in, out]; split the first Linear / the A vector at the
    # h_V | h_E boundary so the concat never happens inside the kernel.
    W1t = p["W1"].T                                       # [H + Cin, H]
    inputs = (
        h_V.astype(f32),                                  # residual / epilogue (f32)
        h_V.astype(bf16),                                 # gather source (bf16)
        h_E.astype(bf16),
        oneh,
        onehT,
        W1t[:H].astype(bf16), W1t[H:].astype(bf16), p["b1"][None, :].astype(f32),
        p["W2"].T.astype(bf16), p["b2"][None, :].astype(f32),
        p["W3"].T.astype(bf16), p["b3"][None, :].astype(f32),
        p["A"][:H, 0][None, :].astype(f32), p["A"][H:, 0][None, :].astype(f32),
        p["gain0"][None, :].astype(f32), p["bias0"][None, :].astype(f32),
        p["Wd1"].T.astype(f32), p["bd1"][None, :].astype(f32),
        p["Wd2"].T.astype(f32), p["bd2"][None, :].astype(f32),
        p["gain1"][None, :].astype(f32), p["bias1"][None, :].astype(f32),
    )

    def resident(shape):
        return pl.BlockSpec(shape, lambda t, _s=shape: (0,) * len(_s))

    in_specs = [
        resident((N, H)),                                      # h_V f32
        resident((N, H)),                                      # h_V bf16
        pl.BlockSpec((edge_tile, Cin), lambda t: (t, 0)),      # h_E edge tile
        pl.BlockSpec((edge_tile, N), lambda t: (t, 0)),        # one-hot edge tile
        pl.BlockSpec((N, edge_tile), lambda t: (0, t)),        # one-hot^T edge tile
        resident((H, H)), resident((Cin, H)), resident((1, H)),     # W1v, W1e, b1
        resident((H, H)), resident((1, H)),                          # W2, b2
        resident((H, H)), resident((1, H)),                          # W3, b3
        resident((1, H)), resident((1, Cin)),                        # A split
        resident((1, H)), resident((1, H)),                          # norm0
        resident((H, 4 * H)), resident((1, 4 * H)),                  # FFN in
        resident((4 * H, H)), resident((1, H)),                      # FFN out
        resident((1, H)), resident((1, H)),                          # norm1
    ]

    kernel = functools.partial(
        local_module_kernel,
        inv_scale=1.0 / scale, is_attention=is_attention, eps=eps, neg_slope=neg_slope)

    return pl.pallas_call(
        kernel,
        out_shape=jax.ShapeDtypeStruct((N, H), f32),
        grid_spec=pltpu.PrefetchScalarGridSpec(
            num_scalar_prefetch=0,
            grid=(n_tiles,),
            in_specs=in_specs,
            out_specs=pl.BlockSpec((N, H), lambda t: (0, 0)),
            scratch_shapes=[pltpu.VMEM((N, H), f32),      # scatter-sum numerator
                            pltpu.VMEM((N, 1), f32)],     # attention denominator
        ),
        compiler_params=pltpu.CompilerParams(
            dimension_semantics=("arbitrary",),           # edge axis is a reduction
            vmem_limit_bytes=32 * 1024 * 1024,
        ),
    )(*inputs)


def local_module_reference(h_V, h_E, center_id, p, *, scale=30.0, is_attention=True,
                           eps=1e-6, neg_slope=0.01):
    """Pure-JAX (f32) reference mirroring the PyTorch semantics."""
    N, _ = h_V.shape

    def lrelu(x):
        return jnp.where(x >= 0, x, neg_slope * x)

    msg = jnp.concatenate([h_V[center_id], h_E], axis=1)
    h = lrelu(msg @ p["W1"].T + p["b1"])
    h = lrelu(h @ p["W2"].T + p["b2"])
    h_message = h @ p["W3"].T + p["b3"]
    if is_attention:
        att = jnp.exp(jax.nn.sigmoid(lrelu(msg @ p["A"])))               # [E, 1]
        den = jax.ops.segment_sum(att, center_id, num_segments=N)
        h_message = h_message * (att / den[center_id])
    dh = jax.ops.segment_sum(h_message, center_id, num_segments=N) / scale

    def norm(x, gain, bias):
        mu = x.mean(-1, keepdims=True)
        var = jnp.sum((x - mu) ** 2, -1, keepdims=True) / (x.shape[-1] - 1)
        return gain * (x - mu) / (jnp.sqrt(var + eps) + eps) + bias

    x = norm(h_V + dh, p["gain0"], p["bias0"])
    d = jnp.maximum(x @ p["Wd1"].T + p["bd1"], 0.0) @ p["Wd2"].T + p["bd2"]
    return norm(x + d, p["gain1"], p["bias1"])


def make_params(key, num_hidden, num_in):
    H, Cin = num_hidden, num_in
    ks = jax.random.split(key, 14)
    n = jax.random.normal
    return dict(
        # PyTorch Linear layout: weight [out, in]
        W1=0.1 * n(ks[0], (H, H + Cin), jnp.float32),
        b1=0.02 * n(ks[1], (H,), jnp.float32),
        W2=0.1 * n(ks[2], (H, H), jnp.float32),
        b2=0.02 * n(ks[3], (H,), jnp.float32),
        W3=0.1 * n(ks[4], (H, H), jnp.float32),
        b3=0.02 * n(ks[5], (H,), jnp.float32),
        A=0.5 * n(ks[6], (H + Cin, 1), jnp.float32),
        gain0=1.0 + 0.1 * n(ks[7], (H,), jnp.float32),
        bias0=0.1 * n(ks[8], (H,), jnp.float32),
        Wd1=0.1 * n(ks[9], (4 * H, H), jnp.float32),
        bd1=0.02 * n(ks[10], (4 * H,), jnp.float32),
        Wd2=0.1 * n(ks[11], (H, 4 * H), jnp.float32),
        bd2=0.02 * n(ks[12], (H,), jnp.float32),
        gain1=1.0 + 0.1 * n(ks[13], (H,), jnp.float32),
        bias1=jnp.zeros((H,), jnp.float32),
    )


if __name__ == "__main__":
    # Small, module-consistent shapes (N nodes, E edges, hidden=128, edge-feat=64).
    N, E = 64, 512
    num_hidden, num_in, scale = 128, 64, 30.0

    key = jax.random.PRNGKey(0)
    k_v, k_e, k_idx, k_p = jax.random.split(key, 4)
    h_V = jax.random.normal(k_v, (N, num_hidden), jnp.float32)
    h_E = jax.random.normal(k_e, (E, num_in), jnp.float32)
    center_id = jax.random.randint(k_idx, (E,), 0, N, dtype=jnp.int32)  # edge_idx[0]

    params = make_params(k_p, num_hidden, num_in)

    out = local_module_forward(h_V, h_E, center_id, params,
                               scale=scale, is_attention=True, edge_tile=128)
    out = jax.block_until_ready(out)

    ref = local_module_reference(h_V, h_E, center_id, params,
                                 scale=scale, is_attention=True)
    ref = jax.block_until_ready(ref)

    assert out.shape == (N, num_hidden)
    max_err = float(jnp.max(jnp.abs(out - ref)))
    assert jnp.allclose(out, ref, rtol=1e-2, atol=1e-2), f"max abs err = {max_err}"

    print("KERNEL_OK")
</pallas_src>

<mosaic_0001>
module attributes {stable_mosaic.version = 11 : i64} {
  func.func @local_module_kernel(%arg0: i32, %arg1: memref<64x128xf32, #tpu.memory_space<vmem>>, %arg2: memref<64x128xbf16, #tpu.memory_space<vmem>>, %arg3: memref<128x64xbf16, #tpu.memory_space<vmem>>, %arg4: memref<128x64xbf16, #tpu.memory_space<vmem>>, %arg5: memref<64x128xbf16, #tpu.memory_space<vmem>>, %arg6: memref<128x128xbf16, #tpu.memory_space<vmem>>, %arg7: memref<64x128xbf16, #tpu.memory_space<vmem>>, %arg8: memref<1x128xf32, #tpu.memory_space<vmem>>, %arg9: memref<128x128xbf16, #tpu.memory_space<vmem>>, %arg10: memref<1x128xf32, #tpu.memory_space<vmem>>, %arg11: memref<128x128xbf16, #tpu.memory_space<vmem>>, %arg12: memref<1x128xf32, #tpu.memory_space<vmem>>, %arg13: memref<1x128xf32, #tpu.memory_space<vmem>>, %arg14: memref<1x64xf32, #tpu.memory_space<vmem>>, %arg15: memref<1x128xf32, #tpu.memory_space<vmem>>, %arg16: memref<1x128xf32, #tpu.memory_space<vmem>>, %arg17: memref<128x512xf32, #tpu.memory_space<vmem>>, %arg18: memref<1x512xf32, #tpu.memory_space<vmem>>, %arg19: memref<512x128xf32, #tpu.memory_space<vmem>>, %arg20: memref<1x128xf32, #tpu.memory_space<vmem>>, %arg21: memref<1x128xf32, #tpu.memory_space<vmem>>, %arg22: memref<1x128xf32, #tpu.memory_space<vmem>>, %arg23: memref<64x128xf32, #tpu.memory_space<vmem>>, %arg24: memref<64x128xf32, #tpu.memory_space<vmem>>, %arg25: memref<64x1xf32, #tpu.memory_space<vmem>>) attributes {dimension_semantics = [#tpu.dimension_semantics<arbitrary>], iteration_bounds = array<i64: 4>, scalar_prefetch = 0 : i64, scratch_operands = 2 : i64, tpu.core_type = #tpu.core_type<tc>, window_params = [{pipeline_mode = #tpu.pipeline_mode<synchronous>, transform_indices = @transform_0, window_bounds = array<i64: 64, 128>}, {pipeline_mode = #tpu.pipeline_mode<synchronous>, transform_indices = @transform_1, window_bounds = array<i64: 64, 128>}, {transform_indices = @transform_2, window_bounds = array<i64: 128, 64>}, {transform_indices = @transform_3, window_bounds = array<i64: 128, 64>}, {transform_indices = @transform_4, window_bounds = array<i64: 64, 128>}, {pipeline_mode = #tpu.pipeline_mode<synchronous>, transform_indices = @transform_5, window_bounds = array<i64: 128, 128>}, {pipeline_mode = #tpu.pipeline_mode<synchronous>, transform_indices = @transform_6, window_bounds = array<i64: 64, 128>}, {pipeline_mode = #tpu.pipeline_mode<synchronous>, transform_indices = @transform_7, window_bounds = array<i64: 1, 128>}, {pipeline_mode = #tpu.pipeline_mode<synchronous>, transform_indices = @transform_8, window_bounds = array<i64: 128, 128>}, {pipeline_mode = #tpu.pipeline_mode<synchronous>, transform_indices = @transform_9, window_bounds = array<i64: 1, 128>}, {pipeline_mode = #tpu.pipeline_mode<synchronous>, transform_indices = @transform_10, window_bounds = array<i64: 128, 128>}, {pipeline_mode = #tpu.pipeline_mode<synchronous>, transform_indices = @transform_11, window_bounds = array<i64: 1, 128>}, {pipeline_mode = #tpu.pipeline_mode<synchronous>, transform_indices = @transform_12, window_bounds = array<i64: 1, 128>}, {pipeline_mode = #tpu.pipeline_mode<synchronous>, transform_indices = @transform_13, window_bounds = array<i64: 1, 64>}, {pipeline_mode = #tpu.pipeline_mode<synchronous>, transform_indices = @transform_14, window_bounds = array<i64: 1, 128>}, {pipeline_mode = #tpu.pipeline_mode<synchronous>, transform_indices = @transform_15, window_bounds = array<i64: 1, 128>}, {pipeline_mode = #tpu.pipeline_mode<synchronous>, transform_indices = @transform_16, window_bounds = array<i64: 128, 512>}, {pipeline_mode = #tpu.pipeline_mode<synchronous>, transform_indices = @transform_17, window_bounds = array<i64: 1, 512>}, {pipeline_mode = #tpu.pipeline_mode<synchronous>, transform_indices = @transform_18, window_bounds = array<i64: 512, 128>}, {pipeline_mode = #tpu.pipeline_mode<synchronous>, transform_indices = @transform_19, window_bounds = array<i64: 1, 128>}, {pipeline_mode = #tpu.pipeline_mode<synchronous>, transform_indices = @transform_20, window_bounds = array<i64: 1, 128>}, {pipeline_mode = #tpu.pipeline_mode<synchronous>, transform_indices = @transform_21, window_bounds = array<i64: 1, 128>}, {pipeline_mode = #tpu.pipeline_mode<synchronous>, transform_indices = @transform_22, window_bounds = array<i64: 64, 128>}]} {
    %c0_i32 = arith.constant 0 : i32
    %0 = arith.cmpi eq, %arg0, %c0_i32 : i32
    %1 = arith.extui %0 : i1 to i32
    %c0_i32_0 = arith.constant 0 : i32
    %2 = arith.cmpi ne, %1, %c0_i32_0 : i32
    scf.if %2 {
      %cst_52 = arith.constant 0.000000e+00 : f32
      %79 = vector.broadcast %cst_52 : f32 to vector<64x128xf32>
      %c0_53 = arith.constant 0 : index
      %c0_54 = arith.constant 0 : index
      %80 = vector.load %arg24[%c0_53, %c0_54] : memref<64x128xf32, #tpu.memory_space<vmem>>, vector<64x128xf32>
      tpu.vector_store %arg24[%c0_53, %c0_54], %79 {strides = array<i32>} : memref<64x128xf32, #tpu.memory_space<vmem>>, vector<64x128xf32>,
      %cst_55 = arith.constant 0.000000e+00 : f32
      %81 = vector.broadcast %cst_55 : f32 to vector<64x1xf32>
      %c0_56 = arith.constant 0 : index
      %c0_57 = arith.constant 0 : index
      %82 = vector.load %arg25[%c0_56, %c0_57] : memref<64x1xf32, #tpu.memory_space<vmem>>, vector<64x1xf32>
      tpu.vector_store %arg25[%c0_56, %c0_57], %81 {strides = array<i32>} : memref<64x1xf32, #tpu.memory_space<vmem>>, vector<64x1xf32>,
    } else {
    }
    %c0 = arith.constant 0 : index
    %c0_1 = arith.constant 0 : index
    %3 = vector.load %arg3[%c0, %c0_1] : memref<128x64xbf16, #tpu.memory_space<vmem>>, vector<128x64xbf16>
    %c0_2 = arith.constant 0 : index
    %c0_3 = arith.constant 0 : index
    %4 = vector.load %arg4[%c0_2, %c0_3] : memref<128x64xbf16, #tpu.memory_space<vmem>>, vector<128x64xbf16>
    %c0_4 = arith.constant 0 : index
    %c0_5 = arith.constant 0 : index
    %5 = vector.load %arg5[%c0_4, %c0_5] : memref<64x128xbf16, #tpu.memory_space<vmem>>, vector<64x128xbf16>
    %c0_6 = arith.constant 0 : index
    %c0_7 = arith.constant 0 : index
    %6 = vector.load %arg2[%c0_6, %c0_7] : memref<64x128xbf16, #tpu.memory_space<vmem>>, vector<64x128xbf16>
    %cst = arith.constant dense<0.000000e+00> : vector<128x128xf32>
    %7 = tpu.matmul %4, %6, %cst {dimension_numbers = #tpu.dot_dimension_numbers<[1], [0], [0], [1], [0, 0, 1, 1], [], []>} : vector<128x64xbf16>, vector<64x128xbf16>, vector<128x128xf32> -> vector<128x128xf32>
    %8 = arith.truncf %7 : vector<128x128xf32> to vector<128x128xbf16>
    %c0_8 = arith.constant 0 : index
    %c0_9 = arith.constant 0 : index
    %9 = vector.load %arg6[%c0_8, %c0_9] : memref<128x128xbf16, #tpu.memory_space<vmem>>, vector<128x128xbf16>
    %cst_10 = arith.constant dense<0.000000e+00> : vector<128x128xf32>
    %10 = tpu.matmul %8, %9, %cst_10 {dimension_numbers = #tpu.dot_dimension_numbers<[1], [0], [0], [1], [0, 0, 1, 1], [], []>} : vector<128x128xbf16>, vector<128x128xbf16>, vector<128x128xf32> -> vector<128x128xf32>
    %c0_11 = arith.constant 0 : index
    %c0_12 = arith.constant 0 : index
    %11 = vector.load %arg7[%c0_11, %c0_12] : memref<64x128xbf16, #tpu.memory_space<vmem>>, vector<64x128xbf16>
    %cst_13 = arith.constant dense<0.000000e+00> : vector<128x128xf32>
    %12 = tpu.matmul %3, %11, %cst_13 {dimension_numbers = #tpu.dot_dimension_numbers<[1], [0], [0], [1], [0, 0, 1, 1], [], []>} : vector<128x64xbf16>, vector<64x128xbf16>, vector<128x128xf32> -> vector<128x128xf32>
    %13 = arith.addf %10, %12 : vector<128x128xf32>
    %c0_14 = arith.constant 0 : index
    %c0_15 = arith.constant 0 : index
    %14 = vector.load %arg8[%c0_14, %c0_15] : memref<1x128xf32, #tpu.memory_space<vmem>>, vector<1x128xf32>
    %15 = vector.broadcast %14 : vector<1x128xf32> to vector<128x128xf32>
    %16 = arith.addf %13, %15 : vector<128x128xf32>
    %cst_16 = arith.constant 0.000000e+00 : f32
    %17 = vector.broadcast %cst_16 : f32 to vector<128x128xf32>
    %18 = arith.cmpf oge, %16, %17 : vector<128x128xf32>
    %cst_17 = arith.constant 0.00999999977 : f32
    %19 = vector.broadcast %cst_17 : f32 to vector<128x128xf32>
    %20 = arith.mulf %19, %16 : vector<128x128xf32>
    %21 = arith.select %18, %16, %20 : vector<128x128xi1>, vector<128x128xf32>
    %22 = arith.truncf %21 : vector<128x128xf32> to vector<128x128xbf16>
    %c0_18 = arith.constant 0 : index
    %c0_19 = arith.constant 0 : index
    %23 = vector.load %arg9[%c0_18, %c0_19] : memref<128x128xbf16, #tpu.memory_space<vmem>>, vector<128x128xbf16>
    %cst_20 = arith.constant dense<0.000000e+00> : vector<128x128xf32>
    %24 = tpu.matmul %22, %23, %cst_20 {dimension_numbers = #tpu.dot_dimension_numbers<[1], [0], [0], [1], [0, 0, 1, 1], [], []>} : vector<128x128xbf16>, vector<128x128xbf16>, vector<128x128xf32> -> vector<128x128xf32>
    %c0_21 = arith.constant 0 : index
    %c0_22 = arith.constant 0 : index
    %25 = vector.load %arg10[%c0_21, %c0_22] : memref<1x128xf32, #tpu.memory_space<vmem>>, vector<1x128xf32>
    %26 = vector.broadcast %25 : vector<1x128xf32> to vector<128x128xf32>
    %27 = arith.addf %24, %26 : vector<128x128xf32>
    %cst_23 = arith.constant 0.000000e+00 : f32
    %28 = vector.broadcast %cst_23 : f32 to vector<128x128xf32>
    %29 = arith.cmpf oge, %27, %28 : vector<128x128xf32>
    %cst_24 = arith.constant 0.00999999977 : f32
    %30 = vector.broadcast %cst_24 : f32 to vector<128x128xf32>
    %31 = arith.mulf %30, %27 : vector<128x128xf32>
    %32 = arith.select %29, %27, %31 : vector<128x128xi1>, vector<128x128xf32>
    %33 = arith.truncf %32 : vector<128x128xf32> to vector<128x128xbf16>
    %c0_25 = arith.constant 0 : index
    %c0_26 = arith.constant 0 : index
    %34 = vector.load %arg11[%c0_25, %c0_26] : memref<128x128xbf16, #tpu.memory_space<vmem>>, vector<128x128xbf16>
    %cst_27 = arith.constant dense<0.000000e+00> : vector<128x128xf32>
    %35 = tpu.matmul %33, %34, %cst_27 {dimension_numbers = #tpu.dot_dimension_numbers<[1], [0], [0], [1], [0, 0, 1, 1], [], []>} : vector<128x128xbf16>, vector<128x128xbf16>, vector<128x128xf32> -> vector<128x128xf32>
    %c0_28 = arith.constant 0 : index
    %c0_29 = arith.constant 0 : index
    %36 = vector.load %arg12[%c0_28, %c0_29] : memref<1x128xf32, #tpu.memory_space<vmem>>, vector<1x128xf32>
    %37 = vector.broadcast %36 : vector<1x128xf32> to vector<128x128xf32>
    %38 = arith.addf %35, %37 : vector<128x128xf32>
    %c0_30 = arith.constant 0 : index
    %c0_31 = arith.constant 0 : index
    %39 = vector.load %arg13[%c0_30, %c0_31] : memref<1x128xf32, #tpu.memory_space<vmem>>, vector<1x128xf32>
    %40 = vector.broadcast %39 : vector<1x128xf32> to vector<128x128xf32>
    %41 = arith.mulf %7, %40 : vector<128x128xf32>
    %cst_32 = arith.constant dense<0.000000e+00> : vector<128xf32>
    %42 = vector.multi_reduction <add>, %41, %cst_32 [1] : vector<128x128xf32> to vector<128xf32>
    %43 = vector.shape_cast %42 : vector<128xf32> to vector<128x1xf32>
    %44 = arith.extf %3 : vector<128x64xbf16> to vector<128x64xf32>
    %c0_33 = arith.constant 0 : index
    %c0_34 = arith.constant 0 : index
    %45 = vector.load %arg14[%c0_33, %c0_34] : memref<1x64xf32, #tpu.memory_space<vmem>>, vector<1x64xf32>
    %46 = vector.broadcast %45 : vector<1x64xf32> to vector<128x64xf32>
    %47 = arith.mulf %44, %46 : vector<128x64xf32>
    %cst_35 = arith.constant dense<0.000000e+00> : vector<128xf32>
    %48 = vector.multi_reduction <add>, %47, %cst_35 [1] : vector<128x64xf32> to vector<128xf32>
    %49 = vector.shape_cast %48 : vector<128xf32> to vector<128x1xf32>
    %50 = arith.addf %43, %49 : vector<128x1xf32>
    %cst_36 = arith.constant 0.000000e+00 : f32
    %51 = vector.broadcast %cst_36 : f32 to vector<128x1xf32>
    %52 = arith.cmpf oge, %50, %51 : vector<128x1xf32>
    %cst_37 = arith.constant 0.00999999977 : f32
    %53 = vector.broadcast %cst_37 : f32 to vector<128x1xf32>
    %54 = arith.mulf %53, %50 : vector<128x1xf32>
    %55 = arith.select %52, %50, %54 : vector<128x1xi1>, vector<128x1xf32>
    %cst_38 = arith.constant 0.000000e+00 : f32
    %56 = vector.broadcast %cst_38 : f32 to vector<128x1xf32>
    %57 = arith.subf %56, %55 : vector<128x1xf32>
    %58 = math.exp %57 : vector<128x1xf32>
    %cst_39 = arith.constant 1.000000e+00 : f32
    %59 = vector.broadcast %cst_39 : f32 to vector<128x1xf32>
    %60 = arith.addf %59, %58 : vector<128x1xf32>
    %cst_40 = arith.constant 1.000000e+00 : f32
    %61 = vector.broadcast %cst_40 : f32 to vector<128x1xf32>
    %62 = arith.divf %61, %60 : vector<128x1xf32>
    %63 = math.exp %62 : vector<128x1xf32>
    %64 = vector.broadcast %63 : vector<128x1xf32> to vector<128x128xf32>
    %65 = arith.mulf %38, %64 : vector<128x128xf32>
    %c0_41 = arith.constant 0 : index
    %c0_42 = arith.constant 0 : index
    %66 = vector.load %arg25[%c0_41, %c0_42] : memref<64x1xf32, #tpu.memory_space<vmem>>, vector<64x1xf32>
    %67 = arith.truncf %63 : vector<128x1xf32> to vector<128x1xbf16>
    %cst_43 = arith.constant dense<0.000000e+00> : vector<64x1xf32>
    %68 = tpu.matmul %5, %67, %cst_43 {dimension_numbers = #tpu.dot_dimension_numbers<[1], [0], [0], [1], [0, 0, 1, 1], [], []>} : vector<64x128xbf16>, vector<128x1xbf16>, vector<64x1xf32> -> vector<64x1xf32>
    %69 = arith.addf %66, %68 : vector<64x1xf32>
    %c0_44 = arith.constant 0 : index
    %c0_45 = arith.constant 0 : index
    %70 = vector.load %arg25[%c0_44, %c0_45] : memref<64x1xf32, #tpu.memory_space<vmem>>, vector<64x1xf32>
    tpu.vector_store %arg25[%c0_44, %c0_45], %69 {strides = array<i32>} : memref<64x1xf32, #tpu.memory_space<vmem>>, vector<64x1xf32>,
    %c0_46 = arith.constant 0 : index
    %c0_47 = arith.constant 0 : index
    %71 = vector.load %arg24[%c0_46, %c0_47] : memref<64x128xf32, #tpu.memory_space<vmem>>, vector<64x128xf32>
    %72 = arith.truncf %65 : vector<128x128xf32> to vector<128x128xbf16>
    %cst_48 = arith.constant dense<0.000000e+00> : vector<64x128xf32>
    %73 = tpu.matmul %5, %72, %cst_48 {dimension_numbers = #tpu.dot_dimension_numbers<[1], [0], [0], [1], [0, 0, 1, 1], [], []>} : vector<64x128xbf16>, vector<128x128xbf16>, vector<64x128xf32> -> vector<64x128xf32>
    %74 = arith.addf %71, %73 : vector<64x128xf32>
    %c0_49 = arith.constant 0 : index
    %c0_50 = arith.constant 0 : index
    %75 = vector.load %arg24[%c0_49, %c0_50] : memref<64x128xf32, #tpu.memory_space<vmem>>, vector<64x128xf32>
    tpu.vector_store %arg24[%c0_49, %c0_50], %74 {strides = array<i32>} : memref<64x128xf32, #tpu.memory_space<vmem>>, vector<64x128xf32>,
    %c3_i32 = arith.constant 3 : i32
    %76 = arith.cmpi eq, %arg0, %c3_i32 : i32
    %77 = arith.extui %76 : i1 to i32
    %c0_i32_51 = arith.constant 0 : i32
    %78 = arith.cmpi ne, %77, %c0_i32_51 : i32
    scf.if %78 {
      %c0_52 = arith.constant 0 : index
      %c0_53 = arith.constant 0 : index
      %79 = vector.load %arg24[%c0_52, %c0_53] : memref<64x128xf32, #tpu.memory_space<vmem>>, vector<64x128xf32>
      %c0_54 = arith.constant 0 : index
      %c0_55 = arith.constant 0 : index
      %80 = vector.load %arg25[%c0_54, %c0_55] : memref<64x1xf32, #tpu.memory_space<vmem>>, vector<64x1xf32>
      %cst_56 = arith.constant 0.000000e+00 : f32
      %81 = vector.broadcast %cst_56 : f32 to vector<64x1xf32>
      %82 = arith.cmpf ogt, %80, %81 : vector<64x1xf32>
      %cst_57 = arith.constant 1.000000e+00 : f32
      %83 = vector.broadcast %cst_57 : f32 to vector<64x1xf32>
      %84 = arith.select %82, %80, %83 : vector<64x1xi1>, vector<64x1xf32>
      %85 = tpu.reciprocal %84 {approx = true} : vector<64x1xf32> -> vector<64x1xf32>
      %cst_58 = arith.constant 0.000000e+00 : f32
      %86 = vector.broadcast %cst_58 : f32 to vector<64x1xf32>
      %87 = arith.cmpf ogt, %80, %86 : vector<64x1xf32>
      %88 = vector.broadcast %85 : vector<64x1xf32> to vector<64x128xf32>
      %89 = arith.mulf %79, %88 : vector<64x128xf32>
      %cst_59 = arith.constant 0.000000e+00 : f32
      %90 = vector.shape_cast %87 : vector<64x1xi1> to vector<64x1xi1>
      %91 = vector.broadcast %90 : vector<64x1xi1> to vector<64x128xi1>
      %92 = vector.broadcast %cst_59 : f32 to vector<64x128xf32>
      %93 = arith.select %91, %89, %92 : vector<64x128xi1>, vector<64x128xf32>
      %cst_60 = arith.constant 0.0333333351 : f32
      %94 = vector.broadcast %cst_60 : f32 to vector<64x128xf32>
      %95 = arith.mulf %93, %94 : vector<64x128xf32>
      %c0_61 = arith.constant 0 : index
      %c0_62 = arith.constant 0 : index
      %96 = vector.load %arg1[%c0_61, %c0_62] : memref<64x128xf32, #tpu.memory_space<vmem>>, vector<64x128xf32>
      %97 = arith.addf %96, %95 : vector<64x128xf32>
      %c0_63 = arith.constant 0 : index
      %c0_64 = arith.constant 0 : index
      %98 = vector.load %arg15[%c0_63, %c0_64] : memref<1x128xf32, #tpu.memory_space<vmem>>, vector<1x128xf32>
      %c0_65 = arith.constant 0 : index
      %c0_66 = arith.constant 0 : index
      %99 = vector.load %arg16[%c0_65, %c0_66] : memref<1x128xf32, #tpu.memory_space<vmem>>, vector<1x128xf32>
      %cst_67 = arith.constant dense<0.000000e+00> : vector<64xf32>
      %100 = vector.multi_reduction <add>, %97, %cst_67 [1] : vector<64x128xf32> to vector<64xf32>
      %101 = vector.shape_cast %100 : vector<64xf32> to vector<64x1xf32>
      %cst_68 = arith.constant 1.280000e+02 : f32
      %102 = vector.broadcast %cst_68 : f32 to vector<64x1xf32>
      %103 = arith.divf %101, %102 : vector<64x1xf32>
      %104 = vector.broadcast %103 : vector<64x1xf32> to vector<64x128xf32>
      %105 = arith.subf %97, %104 : vector<64x128xf32>
      %106 = arith.mulf %105, %105 : vector<64x128xf32>
      %cst_69 = arith.constant dense<0.000000e+00> : vector<64xf32>
      %107 = vector.multi_reduction <add>, %106, %cst_69 [1] : vector<64x128xf32> to vector<64xf32>
      %108 = vector.shape_cast %107 : vector<64xf32> to vector<64x1xf32>
      %cst_70 = arith.constant 0.00787401571 : f32
      %109 = vector.broadcast %cst_70 : f32 to vector<64x1xf32>
      %110 = arith.mulf %108, %109 : vector<64x1xf32>
      %111 = vector.broadcast %98 : vector<1x128xf32> to vector<64x128xf32>
      %112 = arith.mulf %111, %105 : vector<64x128xf32>
      %cst_71 = arith.constant 9.99999997E-7 : f32
      %113 = vector.broadcast %cst_71 : f32 to vector<64x1xf32>
      %114 = arith.addf %110, %113 : vector<64x1xf32>
      %115 = math.sqrt %114 : vector<64x1xf32>
      %cst_72 = arith.constant 9.99999997E-7 : f32
      %116 = vector.broadcast %cst_72 : f32 to vector<64x1xf32>
      %117 = arith.addf %115, %116 : vector<64x1xf32>
      %118 = vector.broadcast %117 : vector<64x1xf32> to vector<64x128xf32>
      %119 = arith.divf %112, %118 : vector<64x128xf32>
      %120 = vector.broadcast %99 : vector<1x128xf32> to vector<64x128xf32>
      %121 = arith.addf %119, %120 : vector<64x128xf32>
      %c0_73 = arith.constant 0 : index
      %c0_74 = arith.constant 0 : index
      %122 = vector.load %arg17[%c0_73, %c0_74] : memref<128x512xf32, #tpu.memory_space<vmem>>, vector<128x512xf32>
      %cst_75 = arith.constant dense<0.000000e+00> : vector<64x512xf32>
      %123 = tpu.matmul %121, %122, %cst_75 {dimension_numbers = #tpu.dot_dimension_numbers<[1], [0], [0], [1], [0, 0, 1, 1], [], []>} : vector<64x128xf32>, vector<128x512xf32>, vector<64x512xf32> -> vector<64x512xf32>
      %c0_76 = arith.constant 0 : index
      %c0_77 = arith.constant 0 : index
      %124 = vector.load %arg18[%c0_76, %c0_77] : memref<1x512xf32, #tpu.memory_space<vmem>>, vector<1x512xf32>
      %125 = vector.broadcast %124 : vector<1x512xf32> to vector<64x512xf32>
      %126 = arith.addf %123, %125 : vector<64x512xf32>
      %cst_78 = arith.constant 0.000000e+00 : f32
      %127 = vector.broadcast %cst_78 : f32 to vector<64x512xf32>
      %128 = arith.maximumf %126, %127 : vector<64x512xf32>
      %c0_79 = arith.constant 0 : index
      %c0_80 = arith.constant 0 : index
      %129 = vector.load %arg19[%c0_79, %c0_80] : memref<512x128xf32, #tpu.memory_space<vmem>>, vector<512x128xf32>
      %cst_81 = arith.constant dense<0.000000e+00> : vector<64x128xf32>
      %130 = tpu.matmul %128, %129, %cst_81 {dimension_numbers = #tpu.dot_dimension_numbers<[1], [0], [0], [1], [0, 0, 1, 1], [], []>} : vector<64x512xf32>, vector<512x128xf32>, vector<64x128xf32> -> vector<64x128xf32>
      %c0_82 = arith.constant 0 : index
      %c0_83 = arith.constant 0 : index
      %131 = vector.load %arg20[%c0_82, %c0_83] : memref<1x128xf32, #tpu.memory_space<vmem>>, vector<1x128xf32>
      %132 = vector.broadcast %131 : vector<1x128xf32> to vector<64x128xf32>
      %133 = arith.addf %130, %132 : vector<64x128xf32>
      %134 = arith.addf %121, %133 : vector<64x128xf32>
      %c0_84 = arith.constant 0 : index
      %c0_85 = arith.constant 0 : index
      %135 = vector.load %arg21[%c0_84, %c0_85] : memref<1x128xf32, #tpu.memory_space<vmem>>, vector<1x128xf32>
      %c0_86 = arith.constant 0 : index
      %c0_87 = arith.constant 0 : index
      %136 = vector.load %arg22[%c0_86, %c0_87] : memref<1x128xf32, #tpu.memory_space<vmem>>, vector<1x128xf32>
      %cst_88 = arith.constant dense<0.000000e+00> : vector<64xf32>
      %137 = vector.multi_reduction <add>, %134, %cst_88 [1] : vector<64x128xf32> to vector<64xf32>
      %138 = vector.shape_cast %137 : vector<64xf32> to vector<64x1xf32>
      %cst_89 = arith.constant 1.280000e+02 : f32
      %139 = vector.broadcast %cst_89 : f32 to vector<64x1xf32>
      %140 = arith.divf %138, %139 : vector<64x1xf32>
      %141 = vector.broadcast %140 : vector<64x1xf32> to vector<64x128xf32>
      %142 = arith.subf %134, %141 : vector<64x128xf32>
      %143 = arith.mulf %142, %142 : vector<64x128xf32>
      %cst_90 = arith.constant dense<0.000000e+00> : vector<64xf32>
      %144 = vector.multi_reduction <add>, %143, %cst_90 [1] : vector<64x128xf32> to vector<64xf32>
      %145 = vector.shape_cast %144 : vector<64xf32> to vector<64x1xf32>
      %cst_91 = arith.constant 0.00787401571 : f32
      %146 = vector.broadcast %cst_91 : f32 to vector<64x1xf32>
      %147 = arith.mulf %145, %146 : vector<64x1xf32>
      %148 = vector.broadcast %135 : vector<1x128xf32> to vector<64x128xf32>
      %149 = arith.mulf %148, %142 : vector<64x128xf32>
      %cst_92 = arith.constant 9.99999997E-7 : f32
      %150 = vector.broadcast %cst_92 : f32 to vector<64x1xf32>
      %151 = arith.addf %147, %150 : vector<64x1xf32>
      %152 = math.sqrt %151 : vector<64x1xf32>
      %cst_93 = arith.constant 9.99999997E-7 : f32
      %153 = vector.broadcast %cst_93 : f32 to vector<64x1xf32>
      %154 = arith.addf %152, %153 : vector<64x1xf32>
      %155 = vector.broadcast %154 : vector<64x1xf32> to vector<64x128xf32>
      %156 = arith.divf %149, %155 : vector<64x128xf32>
      %157 = vector.broadcast %136 : vector<1x128xf32> to vector<64x128xf32>
      %158 = arith.addf %156, %157 : vector<64x128xf32>
      %c0_94 = arith.constant 0 : index
      %c0_95 = arith.constant 0 : index
      %159 = vector.load %arg23[%c0_94, %c0_95] : memref<64x128xf32, #tpu.memory_space<vmem>>, vector<64x128xf32>
      tpu.vector_store %arg23[%c0_94, %c0_95], %158 {strides = array<i32>} : memref<64x128xf32, #tpu.memory_space<vmem>>, vector<64x128xf32>,
    } else {
    }
    return
  }
  func.func @transform_0(%arg0: i32) -> (i32, i32) {
    %c0_i32 = arith.constant 0 : i32
    %c0_i32_0 = arith.constant 0 : i32
    %c0_i32_1 = arith.constant 0 : i32
    return %c0_i32, %c0_i32_0 : i32, i32
  }
  func.func @transform_1(%arg0: i32) -> (i32, i32) {
    %c0_i32 = arith.constant 0 : i32
    %c0_i32_0 = arith.constant 0 : i32
    %c0_i32_1 = arith.constant 0 : i32
    return %c0_i32, %c0_i32_0 : i32, i32
  }
  func.func @transform_2(%arg0: i32) -> (i32, i32) {
    %c0_i32 = arith.constant 0 : i32
    %c0_i32_0 = arith.constant 0 : i32
    return %arg0, %c0_i32 : i32, i32
  }
  func.func @transform_3(%arg0: i32) -> (i32, i32) {
    %c0_i32 = arith.constant 0 : i32
    %c0_i32_0 = arith.constant 0 : i32
    return %arg0, %c0_i32 : i32, i32
  }
  func.func @transform_4(%arg0: i32) -> (i32, i32) {
    %c0_i32 = arith.constant 0 : i32
    %c0_i32_0 = arith.constant 0 : i32
    return %c0_i32, %arg0 : i32, i32
  }
  func.func @transform_5(%arg0: i32) -> (i32, i32) {
    %c0_i32 = arith.constant 0 : i32
    %c0_i32_0 = arith.constant 0 : i32
    %c0_i32_1 = arith.constant 0 : i32
    return %c0_i32, %c0_i32_0 : i32, i32
  }
  func.func @transform_6(%arg0: i32) -> (i32, i32) {
    %c0_i32 = arith.constant 0 : i32
    %c0_i32_0 = arith.constant 0 : i32
    %c0_i32_1 = arith.constant 0 : i32
    return %c0_i32, %c0_i32_0 : i32, i32
  }
  func.func @transform_7(%arg0: i32) -> (i32, i32) {
    %c0_i32 = arith.constant 0 : i32
    %c0_i32_0 = arith.constant 0 : i32
    %c0_i32_1 = arith.constant 0 : i32
    return %c0_i32, %c0_i32_0 : i32, i32
  }
  func.func @transform_8(%arg0: i32) -> (i32, i32) {
    %c0_i32 = arith.constant 0 : i32
    %c0_i32_0 = arith.constant 0 : i32
    %c0_i32_1 = arith.constant 0 : i32
    return %c0_i32, %c0_i32_0 : i32, i32
  }
  func.func @transform_9(%arg0: i32) -> (i32, i32) {
    %c0_i32 = arith.constant 0 : i32
    %c0_i32_0 = arith.constant 0 : i32
    %c0_i32_1 = arith.constant 0 : i32
    return %c0_i32, %c0_i32_0 : i32, i32
  }
  func.func @transform_10(%arg0: i32) -> (i32, i32) {
    %c0_i32 = arith.constant 0 : i32
    %c0_i32_0 = arith.constant 0 : i32
    %c0_i32_1 = arith.constant 0 : i32
    return %c0_i32, %c0_i32_0 : i32, i32
  }
  func.func @transform_11(%arg0: i32) -> (i32, i32) {
    %c0_i32 = arith.constant 0 : i32
    %c0_i32_0 = arith.constant 0 : i32
    %c0_i32_1 = arith.constant 0 : i32
    return %c0_i32, %c0_i32_0 : i32, i32
  }
  func.func @transform_12(%arg0: i32) -> (i32, i32) {
    %c0_i32 = arith.constant 0 : i32
    %c0_i32_0 = arith.constant 0 : i32
    %c0_i32_1 = arith.constant 0 : i32
    return %c0_i32, %c0_i32_0 : i32, i32
  }
  func.func @transform_13(%arg0: i32) -> (i32, i32) {
    %c0_i32 = arith.constant 0 : i32
    %c0_i32_0 = arith.constant 0 : i32
    %c0_i32_1 = arith.constant 0 : i32
    return %c0_i32, %c0_i32_0 : i32, i32
  }
  func.func @transform_14(%arg0: i32) -> (i32, i32) {
    %c0_i32 = arith.constant 0 : i32
    %c0_i32_0 = arith.constant 0 : i32
    %c0_i32_1 = arith.constant 0 : i32
    return %c0_i32, %c0_i32_0 : i32, i32
  }
  func.func @transform_15(%arg0: i32) -> (i32, i32) {
    %c0_i32 = arith.constant 0 : i32
    %c0_i32_0 = arith.constant 0 : i32
    %c0_i32_1 = arith.constant 0 : i32
    return %c0_i32, %c0_i32_0 : i32, i32
  }
  func.func @transform_16(%arg0: i32) -> (i32, i32) {
    %c0_i32 = arith.constant 0 : i32
    %c0_i32_0 = arith.constant 0 : i32
    %c0_i32_1 = arith.constant 0 : i32
    return %c0_i32, %c0_i32_0 : i32, i32
  }
  func.func @transform_17(%arg0: i32) -> (i32, i32) {
    %c0_i32 = arith.constant 0 : i32
    %c0_i32_0 = arith.constant 0 : i32
    %c0_i32_1 = arith.constant 0 : i32
    return %c0_i32, %c0_i32_0 : i32, i32
  }
  func.func @transform_18(%arg0: i32) -> (i32, i32) {
    %c0_i32 = arith.constant 0 : i32
    %c0_i32_0 = arith.constant 0 : i32
    %c0_i32_1 = arith.constant 0 : i32
    return %c0_i32, %c0_i32_0 : i32, i32
  }
  func.func @transform_19(%arg0: i32) -> (i32, i32) {
    %c0_i32 = arith.constant 0 : i32
    %c0_i32_0 = arith.constant 0 : i32
    %c0_i32_1 = arith.constant 0 : i32
    return %c0_i32, %c0_i32_0 : i32, i32
  }
  func.func @transform_20(%arg0: i32) -> (i32, i32) {
    %c0_i32 = arith.constant 0 : i32
    %c0_i32_0 = arith.constant 0 : i32
    %c0_i32_1 = arith.constant 0 : i32
    return %c0_i32, %c0_i32_0 : i32, i32
  }
  func.func @transform_21(%arg0: i32) -> (i32, i32) {
    %c0_i32 = arith.constant 0 : i32
    %c0_i32_0 = arith.constant 0 : i32
    %c0_i32_1 = arith.constant 0 : i32
    return %c0_i32, %c0_i32_0 : i32, i32
  }
  func.func @transform_22(%arg0: i32) -> (i32, i32) {
    %c0_i32 = arith.constant 0 : i32
    %c0_i32_0 = arith.constant 0 : i32
    %c0_i32_1 = arith.constant 0 : i32
    return %c0_i32, %c0_i32_0 : i32, i32
  }
}

</mosaic_0001>

<bundles_post_ra>
// kernel: tpu_custom_call.1
= control target key start
LH: loop header
LB: loop body
LE: loop exit
PB: predicated region body
PF: predicated region fallthrough
CT: control target
= control target key end

     0   :  { %s6152_s0 = inlined_call_operand.vmem [shape: f32[64,128], index: 0, kind: input, shape index: {}]   ;;  %s6153_s1 = inlined_call_operand.vmem [shape: bf16[64,128], index: 1, kind: input, shape index: {}]   ;;  %s6154_s2 = inlined_call_operand.vmem [shape: bf16[512,64], index: 2, kind: input, shape index: {}]   ;;  %s6155_s3 = inlined_call_operand.vmem [shape: bf16[512,64], index: 3, kind: input, shape index: {}]   ;;  %s6156_s4 = inlined_call_operand.vmem [shape: bf16[64,512], index: 4, kind: input, shape index: {}]   ;;  %s6157_s5 = inlined_call_operand.vmem [shape: bf16[128,128], index: 5, kind: input, shape index: {}]   ;;  %s6158_s6 = inlined_call_operand.hbm [shape: bf16[64,128], index: 6, kind: input, shape index: {}]   ;;  %s6159_s7 = inlined_call_operand.vmem [shape: f32[1,128], index: 7, kind: input, shape index: {}]   ;;  %s6160_s8 = inlined_call_operand.hbm [shape: bf16[128,128], index: 8, kind: input, shape index: {}]   ;;  %s6161_s9 = inlined_call_operand.vmem [shape: f32[1,128], index: 9, kind: input, shape index: {}]   ;;  %s6162_s10 = inlined_call_operand.hbm [shape: bf16[128,128], index: 10, kind: input, shape index: {}]   ;;  %s6163_s11 = inlined_call_operand.vmem [shape: f32[1,128], index: 11, kind: input, shape index: {}]   ;;  %s6164_s12 = inlined_call_operand.vmem [shape: f32[1,128], index: 12, kind: input, shape index: {}]   ;;  %s6165_s13 = inlined_call_operand.vmem [shape: f32[1,64], index: 13, kind: input, shape index: {}]   ;;  %s6166_s14 = inlined_call_operand.vmem [shape: f32[1,128], index: 14, kind: input, shape index: {}]   ;;  %s6167_s15 = inlined_call_operand.vmem [shape: f32[1,128], index: 15, kind: input, shape index: {}]   ;;  %s6168_s16 = inlined_call_operand.vmem [shape: f32[128,512], index: 16, kind: input, shape index: {}]   ;;  %s6169_s17 = inlined_call_operand.vmem [shape: f32[1,512], index: 17, kind: input, shape index: {}]   ;;  %s6170_s18 = inlined_call_operand.hbm [shape: f32[512,128], index: 18, kind: input, shape index: {}]   ;;  %s6171_s19 = inlined_call_operand.vmem [shape: f32[1,128], index: 19, kind: input, shape index: {}]   ;;  %s6172_s20 = inlined_call_operand.vmem [shape: f32[1,128], index: 20, kind: input, shape index: {}]   ;;  %s6173_s21 = inlined_call_operand.vmem [shape: f32[1,128], index: 21, kind: input, shape index: {}]   ;;  %s6174_s22 = inlined_call_operand.hbm [shape: f32[64,128], index: 22, kind: output, shape index: {}]  }
   0x1   :  { %6185 = sst [smem:[#allocation20_spill]] %s6152_s0 }
   0x2   :  { %6186 = sst [smem:[#allocation21_spill]] %s6153_s1 }
   0x3   :  { %6187 = sst [smem:[#allocation22_spill]] %s6154_s2 }
   0x4   :  { %6188 = sst [smem:[#allocation23_spill]] %s6155_s3 }
   0x5   :  { %6189 = sst [smem:[#allocation24_spill]] %s6156_s4 }
   0x6   :  { %6190 = sst [smem:[#allocation25_spill]] %s6157_s5 }
   0x7   :  { %6191 = sst [smem:[#allocation26_spill]] %s6158_s6 }
   0x8   :  { %6192 = sst [smem:[#allocation27_spill]] %s6166_s14 }
   0x9   :  { %6193 = sst [smem:[#allocation28_spill]] %s6167_s15 }
   0xa   :  { %6194 = sst [smem:[#allocation29_spill]] %s6168_s16 }
   0xb   :  { %6195 = sst [smem:[#allocation30_spill]] %s6169_s17 }
   0xc   :  { %6196 = sst [smem:[#allocation31_spill]] %s6171_s19 }
   0xd   :  { %6197 = sst [smem:[#allocation32_spill]] %s6172_s20 }
   0xe   :  { %6198 = sst [smem:[#allocation33_spill]] %s6173_s21 }
   0xf   :  { %6199 = sst [smem:[#allocation34_spill]] %s6174_s22 }
  0x10   :  { %27 = vsyncpa [#allocation6], 0 }
  0x11   :  { %28 = vsyncpa [#allocation9], 0 }
  0x12   :  { %29 = vsyncpa [#allocation12], 0 }
  0x13   :  { %30 = vsyncpa [#allocation7], 0  ;;  %s5078_s3 = smov 0   ;;  %s5080_s28 = smov 0  }
  0x14   :  { %s5082_s29 = smov 0  }
  0x15 LB: > { %s5094_s30 = sadd.s32 4294967295, %s4947_s29   ;;  %s5097_s4 = sadd.s32 1, %s4947_s29   ;;  %s4947_s29 = sphi %s5082_s29, %s6230_s29   ;;  %s4943_s28 = sphi %s5080_s28, %s6233_s28   ;;  %s4939_s3 = sphi %s5078_s3, %s6232_s3  }
  0x16   : > { %6200 = sst [smem:[#allocation18_spill]] %s5097_s4  ;;  %s134_s0 = ssub.s32 %s4947_s29, %s5097_s4 }
  0x17   : > { %s137_s23 = sadd.s32 1, %s4943_s28  ;;  %p135_p0 = scmp.eq.s32.totalorder %s134_s0, 0 }
  0x18   : > { %p144_p1 = scmp.ne.s32.totalorder %s4943_s28, %s4939_s3  ;;  %p145_p2 = scmp.eq.s32.totalorder %s4947_s29, 0 }
  0x19   : > { %p3790_p3 = scmp.ge.s32.totalorder %s4947_s29, 1  ;;  %p539_p5 = scmp.lt.s32.totalorder %s4947_s29, 5 }
  0x1a   : > { %s5107_s1 = scalar_select %p135_p0, %s4943_s28, %s137_s23  }
  0x1b   : > { %p5109_p4 = por %p145_p2, %p144_p1  ;;  %p6182_p7 = scmp.eq.s32.totalorder %s5094_s30, 0 }
  0x1c   : > { %6201 = sst [smem:[#allocation19_spill]] %s5107_s1  ;;  %p5116_p8 = pnand %p3790_p3, %p539_p5 }
  0x1d   : > { %s6202_s5 = scalar_select %p5109_p4, 1, 0 }
  0x1e   : > { %s6203_s24 = scalar_select %p5116_p8, 1, 0 }
  0x1f   : > { %p4472_p9 = pneg %p5116_p8  ;;  %s4949_s6 = smov [#allocation8]  }
  0x20   : > { %s576_s25 = sshll.u32 %s4949_s6, 4  ;;  %s4950_s2 = smov [#allocation5]   ;;  %s5122_s25 = int_to_ptr.vmem [resolvable:$true] %s576_s25 }
  0x21   : > { %p5126_p10 = pnand %p6182_p7, %p4472_p9  ;;  %s560_s27 = sshll.u32 %s4950_s2, 4  ;;  %s5130_s27 = int_to_ptr.vmem [resolvable:$true] %s560_s27 }
  0x22   : > { %s4951_s0 = smov [#allocation10]   ;;  %s4771_s22 = scalar_lea.hbm %s6160_s8, 1024 }
  0x23   : > { %s5132_s23 = sshll.u32 %s4951_s0, 4  ;;  %p4772_p11 = scmp.ne.s32.totalorder %s6160_s8, %s4771_s22  ;;  %s593_s23 = int_to_ptr.vmem [resolvable:$true] %s5132_s23 }
  0x24   : > { %p5142_p12 = pneg %p5126_p10  ;;  %p4778_p1 = scmp.lt.u32.totalorder %s4771_s22, %s6160_s8 }
  0x26   : > { %p4774_p13 = pnand %p5142_p12, %p4772_p11 }
  0x28   : > { %p4775_p0 = pneg %p4774_p13 }
  0x2a   : > { %p4780_p2 = pnand %p4778_p1, %p4775_p0 }
  0x2c   : > { %4783 = shalt.err (!%p4780_p2)
}
  0x2d   : > { %s4784_s21 = scalar_lea.vmem %s5122_s25, 1024  ;;  %p4792_p6 = scmp.lt.s32.totalorder %s5122_s25, %s5122_s25 }
  0x2e   : > { %p4785_p3 = scmp.ne.s32.totalorder %s5122_s25, %s4784_s21  ;;  %p4793_p7 = scmp.lt.s32.totalorder %s4784_s21, %s4784_s21 }
  0x30   : > { %p4787_p5 = pnand %p4785_p3, %p5142_p12  ;;  %p4794_p11 = por %p4793_p7, %p4792_p6 }
  0x32   : > { %p4788_p9 = pneg %p4787_p5 }
  0x34   : > { %p4795_p13 = pnand %p4794_p11, %p4788_p9 }
  0x36   : > { %4798 = shalt.err (!%p4795_p13)
}
  0x37   : > { %s4952_s4 = smov 64   ;;  %s4953_s22 = smov 4  }
  0x38   : > { %4478 = dma.hbm_to_vmem [thread:$0]  (!%p5126_p10), %s6160_s8, 1024, %s5122_s25, [#allocation9], %s4952_s4, %s4952_s4, %s4953_s22  }
  0x39   : > { %s6206_s19 = sld [smem:[#allocation26_spill]] }
  0x3f   : > { %s4799_s21 = scalar_lea.hbm %s6206_s19, 512 }
  0x40   : > { %p4800_p6 = scmp.ne.s32.totalorder %s6206_s19, %s4799_s21  ;;  %p4806_p1 = scmp.lt.u32.totalorder %s4799_s21, %s6206_s19 }
  0x42   : > { %p4802_p7 = pnand %p4800_p6, %p5142_p12 }
  0x44   : > { %p4803_p0 = pneg %p4802_p7 }
  0x46   : > { %p4808_p2 = pnand %p4806_p1, %p4803_p0 }
  0x48   : > { %4811 = shalt.err (!%p4808_p2)
}
  0x49   : > { %s4812_s25 = scalar_lea.vmem %s5130_s27, 512  ;;  %p4820_p11 = scmp.lt.s32.totalorder %s5130_s27, %s5130_s27 }
  0x4a   : > { %p4813_p3 = scmp.ne.s32.totalorder %s5130_s27, %s4812_s25  ;;  %p4821_p13 = scmp.lt.s32.totalorder %s4812_s25, %s4812_s25 }
  0x4c   : > { %p4815_p5 = pnand %p4813_p3, %p5142_p12  ;;  %p4822_p6 = por %p4821_p13, %p4820_p11 }
  0x4e   : > { %p4816_p9 = pneg %p4815_p5 }
  0x50   : > { %p4823_p7 = pnand %p4822_p6, %p4816_p9 }
  0x52   : > { %4826 = shalt.err (!%p4823_p7)
}
  0x53   : > { %4475 = dma.hbm_to_vmem [thread:$0]  (!%p5126_p10), %s6206_s19, 512, %s5130_s27, [#allocation6], %s4952_s4, %s4952_s4, %s4953_s22  }
  0x54   : > { %s4827_s1 = scalar_lea.hbm %s6162_s10, 1024 }
  0x55   : > { %p4828_p0 = scmp.ne.s32.totalorder %s6162_s10, %s4827_s1  ;;  %p4834_p3 = scmp.lt.u32.totalorder %s4827_s1, %s6162_s10 }
  0x57   : > { %p4830_p1 = pnand %p4828_p0, %p5142_p12 }
  0x59   : > { %p4831_p2 = pneg %p4830_p1 }
  0x5b   : > { %p4836_p5 = pnand %p4834_p3, %p4831_p2 }
  0x5d   : > { %4839 = shalt.err (!%p4836_p5)
}
  0x5e   : > { %s4840_s25 = scalar_lea.vmem %s593_s23, 1024  ;;  %p4848_p6 = scmp.lt.s32.totalorder %s593_s23, %s593_s23 }
  0x5f   : > { %p4841_p9 = scmp.ne.s32.totalorder %s593_s23, %s4840_s25  ;;  %p4849_p7 = scmp.lt.s32.totalorder %s4840_s25, %s4840_s25 }
  0x61   : > { %p4843_p11 = pnand %p4841_p9, %p5142_p12  ;;  %p4850_p8 = por %p4849_p7, %p4848_p6 }
  0x63   : > { %p4844_p13 = pneg %p4843_p11 }
  0x65   : > { %p4851_p4 = pnand %p4850_p8, %p4844_p13 }
  0x67   : > { %4854 = shalt.err (!%p4851_p4)
}
  0x68   : > { %4481 = dma.hbm_to_vmem [thread:$0]  (!%p5126_p10), %s6162_s10, 1024, %s593_s23, [#allocation9], %s4952_s4, %s4952_s4, %s4953_s22  }
  0x69   : > { %s4954_s15 = smov [#allocation11]   ;;  %s4855_s6 = scalar_lea.hbm %s6170_s18, 8192 }
  0x6a   : > { %s626_s16 = sshll.u32 %s4954_s15, 4  ;;  %p4856_p4 = scmp.ne.s32.totalorder %s6170_s18, %s4855_s6  ;;  %s627_s16 = int_to_ptr.vmem [resolvable:$true] %s626_s16 }
  0x6b   : > { %p4862_p1 = scmp.lt.u32.totalorder %s4855_s6, %s6170_s18 }
  0x6c   : > { %p4858_p8 = pnand %p4856_p4, %p5142_p12 }
  0x6e   : > { %p4859_p0 = pneg %p4858_p8 }
  0x70   : > { %p4864_p2 = pnand %p4862_p1, %p4859_p0 }
  0x72   : > { %4867 = shalt.err (!%p4864_p2)
}
  0x73   : > { %s4868_s23 = scalar_lea.vmem %s627_s16, 8192  ;;  %p4876_p11 = scmp.lt.s32.totalorder %s627_s16, %s627_s16 }
  0x74   : > { %p4869_p3 = scmp.ne.s32.totalorder %s627_s16, %s4868_s23  ;;  %p4877_p13 = scmp.lt.s32.totalorder %s4868_s23, %s4868_s23 }
  0x76   : > { %p4871_p5 = pnand %p4869_p3, %p5142_p12  ;;  %p4878_p6 = por %p4877_p13, %p4876_p11 }
  0x78   : > { %p4872_p9 = pneg %p4871_p5 }
  0x7a   : > { %p4879_p7 = pnand %p4878_p6, %p4872_p9 }
  0x7c   : > { %4882 = shalt.err (!%p4879_p7)
}
  0x7d   : > { %s4955_s4 = smov 128   ;;  %s4956_s22 = smov 8  }
  0x7e   : > { %4484 = dma.hbm_to_vmem [thread:$0]  (!%p5126_p10), %s6170_s18, 8192, %s627_s16, [#allocation12], %s4955_s4, %s4955_s4, %s4956_s22  }
  0x7f   : > { %p3795_p4 = scmp.ge.s32.totalorder %s4947_s29, 4 }
  0x80   : > { %p6207_p8 = scmp.ne.s32.totalorder (!%p3795_p4), %s6202_s5, 0 }
  0x81   : > { %645 = sbr.rel (%p3795_p4) target bundleno = 151 (0x97), region = 92 }
  0x88   : > { %666 = sbr.rel (!%p6207_p8) target bundleno = 151 (0x97), region = 104  ;;  %s668_s20 = sand.u32 (%p6207_p8), 1, %s4943_s28  }
  0x89   : > { %s3797_s15 = sshll.u32 (%p6207_p8), %s4947_s29, 2  ;;  %s3796_s17 = sshll.u32 (%p6207_p8), %s668_s20, 5 }
  0x8a   : > { %s6208_s2 = sld [smem:[#allocation24_spill]] (%p6207_p8)  ;;  %s670_s26 = scalar_lea.vmem (%p6207_p8), [#allocation4], %s3796_s17 }
  0x90   : > { %s672_s0 = scalar_lea.vmem %s6208_s2, %s3797_s15 }
  0x91   : > { %v688_v0 = vld [vmem:[%s672_s0] sm:$0xf]  ;;  %v690_v1 = vld [vmem:[%s672_s0 + $0x10] sm:$0xf] }
  0x92   : > { %689 = vst [vmem:[%s670_s26] sm:$0xf] %v688_v0  ;;  %691 = vst [vmem:[%s670_s26 + $0x4] sm:$0xf] %v690_v1  ;;  %v692_v2 = vld [vmem:[%s672_s0 + $0x20] sm:$0xf] }
  0x93   : > { %v694_v3 = vld [vmem:[%s672_s0 + $0x30] sm:$0xf]  ;;  %v696_v4 = vld [vmem:[%s672_s0 + $0x40] sm:$0xf]  ;;  %693 = vst [vmem:[%s670_s26 + $0x8] sm:$0xf] %v692_v2 }
  0x94   : > { %695 = vst [vmem:[%s670_s26 + $0xc] sm:$0xf] %v694_v3  ;;  %697 = vst [vmem:[%s670_s26 + $0x10] sm:$0xf] %v696_v4  ;;  %v698_v5 = vld [vmem:[%s672_s0 + $0x50] sm:$0xf] }
  0x95   : > { %v700_v6 = vld [vmem:[%s672_s0 + $0x60] sm:$0xf]  ;;  %v702_v7 = vld [vmem:[%s672_s0 + $0x70] sm:$0xf]  ;;  %699 = vst [vmem:[%s670_s26 + $0x14] sm:$0xf] %v698_v5 }
  0x96   : > { %701 = vst [vmem:[%s670_s26 + $0x18] sm:$0xf] %v700_v6  ;;  %703 = vst [vmem:[%s670_s26 + $0x1c] sm:$0xf] %v702_v7 }
  0x97 PF: > { %p6209_p10 = scmp.ne.s32.totalorder %s6203_s24, 0 }
  0x98   : > { %s748_s29 = sand.u32 (!%p6209_p10), 1, %s4939_s3   ;;  %p6210_p12 = scmp.eq.s32.totalorder (!%p6209_p10), %s5094_s30, 0 }
  0x99   : > { %745 = sbr.rel (%p6209_p10) target bundleno = 2505 (0x9c9), region = 145  ;;  %s3799_s5 = sshll.u32 (!%p6209_p10), %s748_s29, 5 }
  0x9a   : > { %s5243_s16 = scalar_lea.vmem (!%p6209_p10), [#allocation4], %s3799_s5 }
  0xa0   : > { %4922 = dma.done.wait (%p6210_p12), [#allocation6], 512   ;;  %p6211_p0 = pmov %p6210_p12 }
  0xa2   : > { %4924 = vsyncadd (%p6211_p0), [#allocation6], 4294966784  ;;  %p6212_p1 = pmov %p6211_p0 }
  0xa3   : > { %p6213_p2 = pmov %p6211_p0 }
  0xa4   : > { %4926 = dma.done.wait (%p6212_p1), [#allocation9], 2048  }
  0xa5   : > { %4928 = vsyncadd (%p6213_p2), [#allocation9], 4294965248  ;;  %p6214_p3 = pmov %p6211_p0 }
  0xa6   : > { %p6215_p5 = pmov %p6211_p0 }
  0xa7   : > { %4930 = dma.done.wait (%p6214_p3), [#allocation12], 8192  }
  0xa8   : > { %4932 = vsyncadd (%p6215_p5), [#allocation12], 4294959104  ;;  %s3804_s3 = sshll.u32 %s5094_s30, 4  ;;  %s6216_s23 = sld [smem:[#allocation22_spill]] }
  0xa9   : > { %p831_p9 = scmp.lt.s32.totalorder %s3804_s3, 63  ;;  %s6217_s14 = sld [smem:[#allocation23_spill]] }
  0xaa   : > { %p6218_p11 = scmp.ne.s32.totalorder %s5094_s30, 0 }
  0xab   : > { %s6235_s3 = smov (!%p831_p9, %s3804_s3), 63  ;;  %vm855_vm0 = vcmask (!%p6218_p11), 7168   ;;  %v4957_v8 = vmov (!%p6218_p11), 0.0  }
  0xac   : > { %s3805_s24 = sshll.u32 %s6235_s3, 2  ;;  %846 = sbr.rel (%p6218_p11) target bundleno = 180 (0xb4), region = 169  ;;  %847 = vst [vmem:[#allocation2] sm:$0xff] (!%p6218_p11), %v4957_v8  ;;  %848 = vst [vmem:[#allocation2 + $0x8] sm:$0xff] (!%p6218_p11), %v4957_v8 }
  0xad   : > { %849 = vst [vmem:[#allocation2 + $0x10] sm:$0xff] (!%p6218_p11), %v4957_v8  ;;  %850 = vst [vmem:[#allocation2 + $0x18] sm:$0xff] (!%p6218_p11), %v4957_v8 }
  0xae   : > { %s5261_s4 = scalar_lea.vmem %s6216_s23, %s3805_s24  ;;  %851 = vst [vmem:[#allocation2 + $0x20] sm:$0xff] (!%p6218_p11), %v4957_v8  ;;  %852 = vst [vmem:[#allocation2 + $0x28] sm:$0xff] (!%p6218_p11), %v4957_v8 }
  0xaf   : > { %s5266_s20 = scalar_lea.vmem %s6217_s14, %s3805_s24  ;;  %853 = vst [vmem:[#allocation2 + $0x30] sm:$0xff] (!%p6218_p11), %v4957_v8  ;;  %854 = vst [vmem:[#allocation2 + $0x38] sm:$0xff] (!%p6218_p11), %v4957_v8 }
  0xb0   : > { %856 = vst.msk [vmem:[#allocation3] sm:$0xff] (!%p6218_p11), %vm855_vm0, %v4957_v8  ;;  %857 = vst.msk [vmem:[#allocation3 + $0x8] sm:$0xff] (!%p6218_p11), %vm855_vm0, %v4957_v8 }
  0xb1   : > { %858 = vst.msk [vmem:[#allocation3 + $0x10] sm:$0xff] (!%p6218_p11), %vm855_vm0, %v4957_v8  ;;  %859 = vst.msk [vmem:[#allocation3 + $0x18] sm:$0xff] (!%p6218_p11), %vm855_vm0, %v4957_v8 }
  0xb2   : > { %860 = vst.msk [vmem:[#allocation3 + $0x20] sm:$0xff] (!%p6218_p11), %vm855_vm0, %v4957_v8  ;;  %861 = vst.msk [vmem:[#allocation3 + $0x28] sm:$0xff] (!%p6218_p11), %vm855_vm0, %v4957_v8 }
  0xb3   : > { %862 = vst.msk [vmem:[#allocation3 + $0x30] sm:$0xff] %vm855_vm0, %v4957_v8  ;;  %863 = vst.msk [vmem:[#allocation3 + $0x38] sm:$0xff] %vm855_vm0, %v4957_v8 }
  0xb4 PF: > { %s6219_s1 = sld [smem:[#allocation21_spill]]  ;;  %vm976_vm1 = vcmask 523264   ;;  %v4537_v12 = vld [vmem:[%s5266_s20] sm:$0xff]   ;;  %v4538_v14 = vld [vmem:[%s5266_s20 + $0x8] sm:$0xff]   ;;  %v4539_v17 = vld [vmem:[%s5266_s20 + $0x10] sm:$0xff]   ;;  %s6220_s23 = sld [smem:[#allocation25_spill]] }
  0xb5   : > { %4108 = vmatprep.mubr.msk.bf16.mxu0 %vm976_vm1, %v4537_v12  ;;  %v4545_v15 = vld [vmem:[#allocation5] sm:$0xff]   ;;  %v4546_v16 = vld [vmem:[#allocation5 + $0x8] sm:$0xff]   ;;  %v4547_v18 = vld [vmem:[#allocation5 + $0x10] sm:$0xff]   ;;  %p3882_p13 = scmp.ne.s32.totalorder %s5094_s30, 3 }
  0xb6   : > { %4124 = vmatprep.subr.bf16.mxu1 %v4545_v15  ;;  %v864_v19 = vld [vmem:[%s5261_s4] sm:$0xff]   ;;  %v866_v21 = vld [vmem:[%s5261_s4 + $0x8] sm:$0xff]   ;;  %v868_v28 = vld [vmem:[%s5261_s4 + $0x10] sm:$0xff]   ;;  %s6221_s2 = sld [smem:[#allocation20_spill]] (!%p3882_p13)  ;;  %s6222_s6 = sld [smem:[#allocation29_spill]] (!%p3882_p13) }
  0xb7   : > { %4125 = vmatpush3.bf16.msra.mxu1 %v4545_v15  ;;  %v5298_v20 = vld [vmem:[%s6165_s13] ss:$0 sm:$0xff]  ;;  %v1986_v22 = vunpack.c.l.bf16 %v864_v19  ;;  %v1987_v23 = vunpack.c.h.bf16 %v864_v19  ;;  %v1988_v24 = vunpack.c.l.bf16 %v866_v21  ;;  %v1989_v27 = vunpack.c.h.bf16 %v866_v21  ;;  %v5307_v29 = vld [vmem:[%s5261_s4 + $0x18] sm:$0xff]   ;;  %4132 = vmatprep.mubr.msk.bf16.mxu1 %vm976_vm1, %v864_v19  ;;  %v5322_v42 = vld [vmem:[%s5261_s4 + $0x28] sm:$0xff]   ;;  %s6223_s0 = sld [smem:[#allocation27_spill]] (!%p3882_p13)  ;;  %s6224_s29 = sld [smem:[#allocation28_spill]] (!%p3882_p13) }
  0xb8   : > { %4126 = vmatprep.subr.bf16.mxu1 %v4546_v16  ;;  %v4548_v30 = vld [vmem:[#allocation5 + $0x18] sm:$0xff]   ;;  %v1990_v32 = vunpack.c.l.bf16 %v868_v28  ;;  %v1991_v35 = vunpack.c.h.bf16 %v868_v28  ;;  %v5314_v36 = vld [vmem:[%s5261_s4 + $0x20] sm:$0xff]   ;;  %v1992_v41 = vunpack.c.l.bf16 %v5307_v29  ;;  %v1993_v44 = vunpack.c.h.bf16 %v5307_v29  ;;  %v5333_v49 = vld [vmem:[%s5261_s4 + $0x30] sm:$0xff]   ;;  %s6225_s3 = sld [smem:[#allocation30_spill]] (!%p3882_p13)  ;;  %s6226_s25 = sld [smem:[#allocation31_spill]] (!%p3882_p13) }
  0xb9   : > { %v2009_v25 = vmul.f32 %v5298_v20, %v1986_v22  ;;  %v2010_v26 = vmul.f32 %v5298_v20, %v1987_v23  ;;  %v2011_v31 = vmul.f32 %v5298_v20, %v1988_v24  ;;  %v4540_v33 = vld [vmem:[%s5266_s20 + $0x18] sm:$0xff]   ;;  %v4541_v37 = vld [vmem:[%s5266_s20 + $0x20] sm:$0xff]   ;;  %v2012_v43 = vmul.f32 %v5298_v20, %v1989_v27  ;;  %v4542_v59 = vld [vmem:[%s5266_s20 + $0x28] sm:$0xff]   ;;  %s6227_s14 = sld [smem:[#allocation32_spill]] (!%p3882_p13) }
  0xba   : > { %v4533_v9 = vld [vmem:[%s6219_s1] sm:$0xff]   ;;  %v4534_v10 = vld [vmem:[%s6219_s1 + $0x8] sm:$0xff]   ;;  %v4535_v11 = vld [vmem:[%s6219_s1 + $0x10] sm:$0xff]   ;;  %v2013_v40 = vmul.f32 %v5298_v20, %v1990_v32  ;;  %v1994_v45 = vunpack.c.l.bf16 %v5314_v36  ;;  %v2014_v47 = vmul.f32 %v5298_v20, %v1991_v35  ;;  %v1995_v48 = vunpack.c.h.bf16 %v5314_v36 }
  0xbb   : > { %4100 = vmatprep.subr.bf16.mxu0 %v4533_v9  ;;  %v4536_v13 = vld [vmem:[%s6219_s1 + $0x18] sm:$0xff]   ;;  %4127 = vmatpush3.bf16.msra.mxu1 %v4546_v16  ;;  %v2025_v34 = vsel %vm976_vm1, %v2009_v25, 0.0  ;;  %v2028_v38 = vsel %vm976_vm1, %v2010_v26, 0.0  ;;  %v2031_v39 = vsel %vm976_vm1, %v2011_v31, 0.0  ;;  %v4551_v46 = vld [vmem:[%s6220_s23] sm:$0xff]   ;;  %v2015_v51 = vmul.f32 %v5298_v20, %v1992_v41  ;;  %v4552_v60 = vld [vmem:[%s6220_s23 + $0x8] sm:$0xff]  }
  0xbc   : > { %4101 = vmatpush3.bf16.msra.mxu0 %v4533_v9  ;;  %4128 = vmatprep.subr.bf16.mxu1 %v4547_v18  ;;  %v2037_v50 = vsel %vm976_vm1, %v2013_v40, 0.0  ;;  %v2016_v52 = vmul.f32 %v5298_v20, %v1993_v44  ;;  %v1996_v53 = vunpack.c.l.bf16 %v5322_v42  ;;  %v2017_v54 = vmul.f32 %v5298_v20, %v1994_v45  ;;  %v4543_v62 = vld [vmem:[%s5266_s20 + $0x30] sm:$0xff]   ;;  %v4556_v7 = vld [vmem:[%s6220_s23 + $0x18] sm:$0xff]  }
  0xbd   : > { %4102 = vmatprep.subr.bf16.mxu0 %v4534_v10  ;;  %2026 = vadd.xlane.f32.xlu1 %v2025_v34  ;;  %v2018_v55 = vmul.f32 %v5298_v20, %v1995_v48  ;;  %v2034_v56 = vsel %vm976_vm1, %v2012_v43, 0.0  ;;  %v1998_v58 = vunpack.c.l.bf16 %v5333_v49  ;;  %v2040_v61 = vsel %vm976_vm1, %v2014_v47, 0.0  ;;  %v4555_v2 = vld [vmem:[%s6220_s23 + $0x10] sm:$0xff]   ;;  %v4544_v9 = vld [vmem:[%s5266_s20 + $0x38] sm:$0xff]  }
  0xbe   : > { %2032 = vadd.xlane.f32.xlu0 %v2031_v39  ;;  %v2019_v57 = vmul.f32 %v5298_v20, %v1996_v53  ;;  %v2043_v63 = vsel %vm976_vm1, %v2015_v51, 0.0  ;;  %v2046_v0 = vsel %vm976_vm1, %v2016_v52, 0.0  ;;  %v2049_v3 = vsel %vm976_vm1, %v2017_v54, 0.0  ;;  %v4563_v15 = vld [vmem:[%s6220_s23 + $0x30] sm:$0xff]   ;;  %v4564_v19 = vld [vmem:[%s6220_s23 + $0x38] sm:$0xff]  }
  0xbf   : > { %4129 = vmatpush3.bf16.msra.mxu1 %v4547_v18  ;;  %v2021_v1 = vmul.f32 %v5298_v20, %v1998_v58  ;;  %v2052_v4 = vsel %vm976_vm1, %v2018_v55, 0.0  ;;  %v1997_v8 = vunpack.c.h.bf16 %v5322_v42  ;;  %v1999_v16 = vunpack.c.h.bf16 %v5333_v49 }
  0xc0   : > { %4103 = vmatpush3.bf16.msra.mxu0 %v4534_v10  ;;  %4130 = vmatprep.subr.bf16.mxu1 %v4548_v30  ;;  %v2055_v5 = vsel %vm976_vm1, %v2019_v57, 0.0  ;;  %v4559_v10 = vld [vmem:[%s6220_s23 + $0x20] sm:$0xff]  }
  0xc1   : > { %4104 = vmatprep.subr.bf16.mxu0 %v4535_v11  ;;  %2029 = vadd.xlane.f32.xlu1 %v2028_v38  ;;  %v2061_v6 = vsel %vm976_vm1, %v2021_v1, 0.0 }
  0xc2   : > { %2038 = vadd.xlane.f32.xlu0 %v2037_v50 }
  0xc3   : > { %4131 = vmatpush3.bf16.msra.mxu1 %v4548_v30 }
  0xc4   : > { %4105 = vmatpush3.bf16.msra.mxu0 %v4535_v11  ;;  %4148 = vmatprep.subr.bf16.mxu1 %v4551_v46  ;;  %v2020_v11 = vmul.f32 %v5298_v20, %v1997_v8  ;;  %v4570_v8 = vld [vmem:[#allocation8 + $0x28] sm:$0xff]  }
  0xc5   : > { %4106 = vmatprep.subr.bf16.mxu0 %v4536_v13  ;;  %2035 = vadd.xlane.f32.xlu1 %v2034_v56 }
  0xc6   : > { %4133 = vmatmul.mubr.msk.bf16.vlgmr.msra.gmra.mrb[0].mxu1 %vm976_vm1, %v866_v21  ;;  %2044 = vadd.xlane.f32.xlu0 %v2043_v63  ;;  %v2058_v12 = vsel %vm976_vm1, %v2020_v11, 0.0  ;;  %v5405_v21 = vld [vmem:[%s6164_s12] ss:$0 sm:$0xff] }
  0xc7   : > { %4149 = vmatpush3.bf16.msra.mxu1 %v4551_v46  ;;  %4136 = vmatprep.mubr.msk.bf16.mxu1 %vm976_vm1, %v868_v28 }
  0xc8   : > { %4107 = vmatpush3.bf16.msra.mxu0 %v4536_v13  ;;  %4150 = vmatprep.subr.bf16.mxu1 %v4552_v60  ;;  %v4560_v13 = vld [vmem:[%s6220_s23 + $0x28] sm:$0xff]  }
  0xc9   : > { %2041 = vadd.xlane.f32.xlu1 %v2040_v61 }
  0xca   : > { %2050 = vadd.xlane.f32.xlu0 %v2049_v3 }
  0xcb   : > { %4109 = vmatmul.mubr.msk.bf16.vlgmr.msra.gmra.mrb[0].mxu0 %vm976_vm1, %v4538_v14  ;;  %4151 = vmatpush3.bf16.msra.mxu1 %v4552_v60  ;;  %v5389_v14 = vld [vmem:[%s5261_s4 + $0x38] sm:$0xff]  }
  0xcc   : > { %4112 = vmatprep.mubr.msk.bf16.mxu0 %vm976_vm1, %v4539_v17  ;;  %4152 = vmatprep.subr.bf16.mxu1 %v4555_v2  ;;  %v2022_v17 = vmul.f32 %v5298_v20, %v1999_v16  ;;  %v2001_v55 = vunpack.c.h.bf16 %v5389_v14  ;;  %v2000_v60 = vunpack.c.l.bf16 %v5389_v14 }
  0xcd   : > { %2047 = vadd.xlane.f32.xlu1 %v2046_v0 }
  0xce   : > { %4137 = vmatmul.mubr.msk.bf16.gmra.mrb[4].mxu1 %vm976_vm1, %v5307_v29  ;;  %2056 = vadd.xlane.f32.xlu0 %v2055_v5  ;;  %v2064_v18 = vsel %vm976_vm1, %v2022_v17, 0.0  ;;  %v2023_v0 = vmul.f32 %v5298_v20, %v2000_v60  ;;  %v4566_v5 = vld [vmem:[#allocation8 + $0x8] sm:$0xff]  }
  0xcf   : > { %4153 = vmatpush3.bf16.msra.mxu1 %v4555_v2  ;;  %4140 = vmatprep.mubr.msk.bf16.mxu1 %vm976_vm1, %v5314_v36 }
  0xd0   : > { %4154 = vmatprep.subr.bf16.mxu1 %v4556_v7  ;;  %v2067_v3 = vsel %vm976_vm1, %v2023_v0, 0.0 }
  0xd1   : > { %2053 = vadd.xlane.f32.xlu1 %v2052_v4  ;;  %v4565_v4 = vld [vmem:[#allocation8] sm:$0xff]  }
  0xd2   : > { %2062 = vadd.xlane.f32.xlu0 %v2061_v6  ;;  %4180 = vmatprep.subr.bf16.mxu0 %v4565_v4  ;;  %v4567_v6 = vld [vmem:[#allocation8 + $0x10] sm:$0xff]  }
  0xd3   : > { %4113 = vmatmul.mubr.msk.bf16.gmra.mrb[4].mxu0 %vm976_vm1, %v4540_v33  ;;  %4155 = vmatpush3.bf16.msra.mxu1 %v4556_v7  ;;  %v4569_v7 = vld [vmem:[#allocation8 + $0x20] sm:$0xff]  }
  0xd4   : > { %4116 = vmatprep.mubr.msk.bf16.mxu0 %vm976_vm1, %v4541_v37  ;;  %4156 = vmatprep.subr.bf16.mxu1 %v4559_v10 }
  0xd5   : > { %2059 = vadd.xlane.f32.xlu1 %v2058_v12  ;;  %4181 = vmatpush3.bf16.msra.mxu0 %v4565_v4  ;;  %v4572_v12 = vld [vmem:[#allocation8 + $0x38] sm:$0xff]  }
  0xd6   : > { %4141 = vmatmul.mubr.msk.bf16.gmra.mrb[8].mxu1 %vm976_vm1, %v5322_v42  ;;  %4182 = vmatprep.subr.bf16.mxu0 %v4566_v5 }
  0xd7   : > { %4157 = vmatpush3.bf16.msra.mxu1 %v4559_v10  ;;  %4144 = vmatprep.mubr.msk.bf16.mxu1 %vm976_vm1, %v5333_v49  ;;  %v4571_v10 = vld [vmem:[#allocation8 + $0x30] sm:$0xff]  }
  0xd8   : > { %4158 = vmatprep.subr.bf16.mxu1 %v4560_v13 }
  0xd9   : > { %2065 = vadd.xlane.f32.xlu1 %v2064_v18  ;;  %4183 = vmatpush3.bf16.msra.mxu0 %v4566_v5 }
  0xda   : > { %4184 = vmatprep.subr.bf16.mxu0 %v4567_v6 }
  0xdb   : > { %4117 = vmatmul.mubr.msk.bf16.gmra.mrb[8].mxu0 %vm976_vm1, %v4542_v59  ;;  %4159 = vmatpush3.bf16.msra.mxu1 %v4560_v13 }
  0xdc   : > { %4120 = vmatprep.mubr.msk.bf16.mxu0 %vm976_vm1, %v4543_v62  ;;  %4160 = vmatprep.subr.bf16.mxu1 %v4563_v15  ;;  %v2024_v62 = vmul.f32 %v5298_v20, %v2001_v55  ;;  %v4568_v20 = vld [vmem:[#allocation8 + $0x18] sm:$0xff]  }
  0xdd   : > { %4185 = vmatpush3.bf16.msra.mxu0 %v4567_v6 }
  0xde   : > { %4145 = vmatmul.mubr.msk.bf16.gmra.mrb[12].mxu1 %vm976_vm1, %v5389_v14  ;;  %v2070_v2 = vsel %vm976_vm1, %v2024_v62, 0.0  ;;  %4186 = vmatprep.subr.bf16.mxu0 %v4568_v20 }
  0xdf   : > { %4161 = vmatpush3.bf16.msra.mxu1 %v4563_v15 }
  0xe0   : > { %4162 = vmatprep.subr.bf16.mxu1 %v4564_v19 }
  0xe1   : > { %4187 = vmatpush3.bf16.msra.mxu0 %v4568_v20 }
  0xe2   : > { %4188 = vmatprep.subr.bf16.mxu0 %v4569_v7 }
  0xe3   : > { %4121 = vmatmul.mubr.msk.bf16.gmra.mrb[12].mxu0 %vm976_vm1, %v4544_v9  ;;  %4163 = vmatpush3.bf16.msra.mxu1 %v4564_v19 }
  0xe5   : > { %4189 = vmatpush3.bf16.msra.mxu0 %v4569_v7 }
  0xe6   : > { %4190 = vmatprep.subr.bf16.mxu0 %v4570_v8 }
  0xe9   : > { %4191 = vmatpush3.bf16.msra.mxu0 %v4570_v8 }
  0xea   : > { %4192 = vmatprep.subr.bf16.mxu0 %v4571_v10 }
  0xed   : > { %4193 = vmatpush3.bf16.msra.mxu0 %v4571_v10 }
  0xee   : > { %4194 = vmatprep.subr.bf16.mxu0 %v4572_v12 }
  0xf1   : > { %4195 = vmatpush3.bf16.msra.mxu0 %v4572_v12 }
 0x14a   : > { %v2027_v9 = vpop.xlane.xlu1 %2026 }
 0x14b   : > { %v2033_v13 = vpop.xlane.xlu0 %2032 }
 0x14e   : > { %v2030_v11 = vpop.xlane.xlu1 %2029 }
 0x14f   : > { %v2039_v15 = vpop.xlane.xlu0 %2038 }
 0x152   : > { %v2036_v14 = vpop.xlane.xlu1 %2035 }
 0x153   : > { %v2045_v17 = vpop.xlane.xlu0 %2044 }
 0x156   : > { %v2042_v16 = vpop.xlane.xlu1 %2041 }
 0x157   : > { %v5429_v19 = vpop.xlane.xlu0 %2050 }
 0x15a   : > { %v2048_v18 = vpop.xlane.xlu1 %2047 }
 0x19e   : > { %v4110_v22 = vpop.f32.mrb[0].mxu0 }
 0x19f   : > { %v1035_v23 = vpop.f32.mrb[1].mxu0  ;;  %v1940_v24 = vmul.f32 %v4110_v22, %v5405_v21 }
 0x1a0   : > { %v4111_v25 = vpop.f32.mrb[2].mxu0  ;;  %v1938_v30 = vmul.f32 %v5405_v21, %v1035_v23 }
 0x1a1   : > { %v1099_v26 = vpack.c.bf16 %v4111_v25, %v4110_v22  ;;  %v1038_v27 = vpop.f32.mrb[3].mxu0  ;;  %1958 = vadd.xlane.f32.xlu0 %v1940_v24  ;;  %v1941_v28 = vmul.f32 %v4111_v25, %v5405_v21  ;;  %v5433_v22 = vpop.xlane.xlu1 %2053 }
 0x1a2   : > { %v1098_v29 = vpack.c.bf16 %v1038_v27, %v1035_v23  ;;  %v1939_v33 = vmul.f32 %v5405_v21, %v1038_v27  ;;  %v5436_v23 = vpop.xlane.xlu0 %2056 }
 0x1a3   : > { %1960 = vadd.xlane.f32.xlu1 %v1941_v28 }
 0x1a4   : > { %4164 = vmatprep.mubr.bf16.mxu1 %v1098_v29 }
 0x1a5   : > { %1954 = vadd.xlane.f32.xlu0 %v1938_v30  ;;  %4165 = vmatmul.mubr.bf16.vlgmr.msra.gmra.mrb[0].mxu1 %v1099_v26  ;;  %v2060_v24 = vpop.xlane.xlu1 %2059 }
 0x1a6   : > { %v4114_v31 = vpop.f32.mrb[4].mxu0  ;;  %v5438_v25 = vpop.xlane.xlu0 %2062 }
 0x1a7   : > { %v1051_v32 = vpop.f32.mrb[5].mxu0  ;;  %v1944_v39 = vmul.f32 %v4114_v31, %v5405_v21 }
 0x1a8   : > { %v4115_v34 = vpop.f32.mrb[6].mxu0  ;;  %v1942_v43 = vmul.f32 %v5405_v21, %v1051_v32 }
 0x1a9   : > { %v1101_v35 = vpack.c.bf16 %v4115_v34, %v4114_v31  ;;  %v1054_v36 = vpop.f32.mrb[7].mxu0  ;;  %1956 = vadd.xlane.f32.xlu0 %v1939_v33  ;;  %v1945_v37 = vmul.f32 %v4115_v34, %v5405_v21  ;;  %v5440_v26 = vpop.xlane.xlu1 %2065 }
 0x1aa   : > { %v1100_v38 = vpack.c.bf16 %v1054_v36, %v1051_v32  ;;  %v1943_v40 = vmul.f32 %v5405_v21, %v1054_v36 }
 0x1ab   : > { %1968 = vadd.xlane.f32.xlu1 %v1945_v37 }
 0x1ac   : > { %4168 = vmatprep.mubr.bf16.mxu1 %v1100_v38 }
 0x1ad   : > { %1966 = vadd.xlane.f32.xlu0 %v1944_v39  ;;  %4169 = vmatmul.mubr.bf16.gmra.mrb[4].mxu1 %v1101_v35 }
 0x1ae   : > { %v4118_v41 = vpop.f32.mrb[8].mxu0 }
 0x1af   : > { %v1067_v42 = vpop.f32.mrb[9].mxu0  ;;  %1964 = vadd.xlane.f32.xlu1 %v1943_v40  ;;  %v1948_v49 = vmul.f32 %v4118_v41, %v5405_v21 }
 0x1b0   : > { %v4119_v44 = vpop.f32.mrb[10].mxu0  ;;  %v1946_v53 = vmul.f32 %v5405_v21, %v1067_v42 }
 0x1b1   : > { %v1103_v45 = vpack.c.bf16 %v4119_v44, %v4118_v41  ;;  %v1070_v46 = vpop.f32.mrb[11].mxu0  ;;  %1962 = vadd.xlane.f32.xlu0 %v1942_v43  ;;  %v1949_v47 = vmul.f32 %v4119_v44, %v5405_v21 }
 0x1b2   : > { %v1102_v48 = vpack.c.bf16 %v1070_v46, %v1067_v42  ;;  %v1947_v50 = vmul.f32 %v5405_v21, %v1070_v46 }
 0x1b3   : > { %1976 = vadd.xlane.f32.xlu1 %v1949_v47 }
 0x1b4   : > { %4172 = vmatprep.mubr.bf16.mxu1 %v1102_v48 }
 0x1b5   : > { %1974 = vadd.xlane.f32.xlu0 %v1948_v49  ;;  %4173 = vmatmul.mubr.bf16.gmra.mrb[8].mxu1 %v1103_v45 }
 0x1b6   : > { %v4122_v51 = vpop.f32.mrb[12].mxu0 }
 0x1b7   : > { %v1083_v52 = vpop.f32.mrb[13].mxu0  ;;  %1972 = vadd.xlane.f32.xlu1 %v1947_v50  ;;  %v1952_v61 = vmul.f32 %v4122_v51, %v5405_v21 }
 0x1b8   : > { %v4123_v54 = vpop.f32.mrb[14].mxu0  ;;  %v1950_v1 = vmul.f32 %v5405_v21, %v1083_v52 }
 0x1b9   : > { %v1105_v56 = vpack.c.bf16 %v4123_v54, %v4122_v51  ;;  %v1086_v57 = vpop.f32.mrb[15].mxu0  ;;  %1970 = vadd.xlane.f32.xlu0 %v1946_v53  ;;  %v1953_v58 = vmul.f32 %v4123_v54, %v5405_v21 }
 0x1ba   : > { %v1104_v59 = vpack.c.bf16 %v1086_v57, %v1083_v52  ;;  %v1951_v63 = vmul.f32 %v5405_v21, %v1086_v57  ;;  %v5431_v21 = vld [vmem:[#allocation10] sm:$0xff]  }
 0x1bb   : > { %1984 = vadd.xlane.f32.xlu1 %v1953_v58  ;;  %4212 = vmatprep.subr.bf16.mxu0 %v5431_v21 }
 0x1bc   : > { %4176 = vmatprep.mubr.bf16.mxu1 %v1104_v59 }
 0x1bd   : > { %1982 = vadd.xlane.f32.xlu0 %v1952_v61  ;;  %4177 = vmatmul.mubr.bf16.gmra.mrb[12].mxu1 %v1105_v56 }
 0x1bf   : > { %1980 = vadd.xlane.f32.xlu1 %v1951_v63 }
 0x1c1   : > { %1978 = vadd.xlane.f32.xlu0 %v1950_v1 }
 0x1c3   : > { %2071 = vadd.xlane.f32.xlu1 %v2070_v2 }
 0x1c5   : > { %2068 = vadd.xlane.f32.xlu0 %v2067_v3 }
 0x22e   : > { %v1959_v27 = vpop.xlane.xlu0 %1958 }
 0x22f   : > { %v2075_v28 = vadd.f32 %v2033_v13, %v1959_v27 }
 0x230   : > { %v1961_v29 = vpop.xlane.xlu1 %1960 }
 0x231   : > { %vm2091_vm2 = vcmp.ge.f32.partialorder %v2075_v28, 0.0  ;;  %v2107_v30 = vmul.f32 0.01, %v2075_v28  ;;  %v2076_v31 = vadd.f32 %v2036_v14, %v1961_v29 }
 0x232   : > { %v1955_v32 = vpop.xlane.xlu0 %1954 }
 0x233   : > { %v2123_v33 = vsel %vm2091_vm2, %v2075_v28, %v2107_v30  ;;  %vm2092_vm3 = vcmp.ge.f32.partialorder %v2076_v31, 0.0  ;;  %v2108_v34 = vmul.f32 0.01, %v2076_v31  ;;  %v2073_v35 = vadd.f32 %v2027_v9, %v1955_v32 }
 0x234   : > { %v2139_v36 = vsub.f32 0.0, %v2123_v33 }
 0x235   : > { %v2124_v37 = vsel %vm2092_vm3, %v2076_v31, %v2108_v34  ;;  %vm2089_vm4 = vcmp.ge.f32.partialorder %v2073_v35, 0.0  ;;  %v2105_v38 = vmul.f32 0.01, %v2073_v35 }
 0x236   : > { %v2157_v39 = vmul.f32 1.442695, %v2139_v36  ;;  %v2140_v40 = vsub.f32 0.0, %v2124_v37  ;;  %v1957_v41 = vpop.xlane.xlu0 %1956 }
 0x237   : > { %v2121_v42 = vsel %vm2089_vm4, %v2073_v35, %v2105_v38  ;;  %v2074_v43 = vadd.f32 %v2030_v11, %v1957_v41 }
 0x238   : > { %4593 = vpow2.f32 %v2157_v39  ;;  %v2159_v44 = vmul.f32 1.442695, %v2140_v40  ;;  %v2137_v45 = vsub.f32 0.0, %v2121_v42  ;;  %v1969_v46 = vpop.xlane.xlu1 %1968 }
 0x239   : > { %vm2090_vm5 = vcmp.ge.f32.partialorder %v2074_v43, 0.0  ;;  %v2106_v47 = vmul.f32 0.01, %v2074_v43  ;;  %v2080_v48 = vadd.f32 %v2048_v18, %v1969_v46 }
 0x23a   : > { %4595 = vpow2.f32 %v2159_v44  ;;  %v2153_v49 = vmul.f32 1.442695, %v2137_v45  ;;  %v1967_v50 = vpop.xlane.xlu0 %1966 }
 0x23b   : > { %v2122_v51 = vsel %vm2090_vm5, %v2074_v43, %v2106_v47  ;;  %vm2096_vm6 = vcmp.ge.f32.partialorder %v2080_v48, 0.0  ;;  %v2112_v52 = vmul.f32 0.01, %v2080_v48  ;;  %v2079_v53 = vadd.f32 %v2045_v17, %v1967_v50 }
 0x23c   : > { %4597 = vpow2.f32 %v2153_v49  ;;  %v2138_v54 = vsub.f32 0.0, %v2122_v51  ;;  %v1965_v55 = vpop.xlane.xlu1 %1964 }
 0x23d   : > { %v2128_v56 = vsel %vm2096_vm6, %v2080_v48, %v2112_v52  ;;  %vm2095_vm7 = vcmp.ge.f32.partialorder %v2079_v53, 0.0  ;;  %v2111_v57 = vmul.f32 0.01, %v2079_v53  ;;  %v2078_v58 = vadd.f32 %v2042_v16, %v1965_v55 }
 0x23e   : > { %v2155_v59 = vmul.f32 1.442695, %v2138_v54  ;;  %v2144_v60 = vsub.f32 0.0, %v2128_v56  ;;  %v1963_v61 = vpop.xlane.xlu0 %1962 }
 0x23f   : > { %v2127_v62 = vsel %vm2095_vm7, %v2079_v53, %v2111_v57  ;;  %vm2094_vm8 = vcmp.ge.f32.partialorder %v2078_v58, 0.0  ;;  %v2110_v63 = vmul.f32 0.01, %v2078_v58  ;;  %v2077_v0 = vadd.f32 %v2039_v15, %v1963_v61 }
 0x240   : > { %4599 = vpow2.f32 %v2155_v59  ;;  %v2167_v1 = vmul.f32 1.442695, %v2144_v60  ;;  %v2143_v2 = vsub.f32 0.0, %v2127_v62  ;;  %v1977_v3 = vpop.xlane.xlu1 %1976 }
 0x241   : > { %v2126_v4 = vsel %vm2094_vm8, %v2078_v58, %v2110_v63  ;;  %vm2093_vm9 = vcmp.ge.f32.partialorder %v2077_v0, 0.0  ;;  %v2109_v5 = vmul.f32 0.01, %v2077_v0  ;;  %v2084_v6 = vadd.f32 %v2060_v24, %v1977_v3 }
 0x242   : > { %v4594_v20 = vpop.eup %4593  ;;  %4601 = vpow2.f32 %v2167_v1  ;;  %v2165_v7 = vmul.f32 1.442695, %v2143_v2  ;;  %v2142_v8 = vsub.f32 0.0, %v2126_v4  ;;  %v1975_v9 = vpop.xlane.xlu0 %1974 }
 0x243   : > { %v2187_v10 = vadd.f32 1.0, %v4594_v20  ;;  %v2125_v11 = vsel %vm2093_vm9, %v2077_v0, %v2109_v5  ;;  %vm2100_vm10 = vcmp.ge.f32.partialorder %v2084_v6, 0.0  ;;  %v2116_v12 = vmul.f32 0.01, %v2084_v6 }
 0x244   : > { %v4596_v13 = vpop.eup %4595  ;;  %4603 = vpow2.f32 %v2165_v7  ;;  %v2163_v14 = vmul.f32 1.442695, %v2142_v8  ;;  %v2141_v15 = vsub.f32 0.0, %v2125_v11  ;;  %v2083_v16 = vadd.f32 %v5436_v23, %v1975_v9  ;;  %v1973_v17 = vpop.xlane.xlu1 %1972 }
 0x245   : > { %4605 = vrcp.f32 %v2187_v10  ;;  %v2188_v18 = vadd.f32 1.0, %v4596_v13  ;;  %v2132_v27 = vsel %vm2100_vm10, %v2084_v6, %v2116_v12  ;;  %v2082_v24 = vadd.f32 %v5433_v22, %v1973_v17 }
 0x246   : > { %v4598_v28 = vpop.eup %4597  ;;  %4607 = vpow2.f32 %v2163_v14  ;;  %v2161_v29 = vmul.f32 1.442695, %v2141_v15  ;;  %v2148_v30 = vsub.f32 0.0, %v2132_v27  ;;  %vm2099_vm11 = vcmp.ge.f32.partialorder %v2083_v16, 0.0  ;;  %v1971_v31 = vpop.xlane.xlu0 %1970 }
 0x247   : > { %4609 = vrcp.f32 %v2188_v18  ;;  %v2185_v32 = vadd.f32 1.0, %v4598_v28  ;;  %v2115_v33 = vmul.f32 0.01, %v2083_v16  ;;  %vm2098_vm12 = vcmp.ge.f32.partialorder %v2082_v24, 0.0 }
 0x248   : > { %4611 = vpow2.f32 %v2161_v29  ;;  %v2175_v34 = vmul.f32 1.442695, %v2148_v30  ;;  %v2114_v35 = vmul.f32 0.01, %v2082_v24  ;;  %v2081_v23 = vadd.f32 %v5429_v19, %v1971_v31  ;;  %v1985_v36 = vpop.xlane.xlu1 %1984 }
 0x249   : > { %4613 = vrcp.f32 %v2185_v32  ;;  %v2131_v37 = vsel %vm2099_vm11, %v2083_v16, %v2115_v33 }
 0x24a   : > { %v4600_v38 = vpop.eup %4599  ;;  %4615 = vpow2.f32 %v2175_v34  ;;  %v2147_v22 = vsub.f32 0.0, %v2131_v37  ;;  %v2130_v39 = vsel %vm2098_vm12, %v2082_v24, %v2114_v35  ;;  %vm2097_vm13 = vcmp.ge.f32.partialorder %v2081_v23, 0.0  ;;  %v1983_v40 = vpop.xlane.xlu0 %1982 }
 0x24b   : > { %v2186_v41 = vadd.f32 1.0, %v4600_v38  ;;  %v2146_v42 = vsub.f32 0.0, %v2130_v39  ;;  %v2113_v43 = vmul.f32 0.01, %v2081_v23 }
 0x24c   : > { %v4602_v44 = vpop.eup %4601  ;;  %v2173_v45 = vmul.f32 1.442695, %v2147_v22  ;;  %v1981_v46 = vpop.xlane.xlu1 %1980 }
 0x24d   : > { %4617 = vrcp.f32 %v2186_v41  ;;  %v2192_v47 = vadd.f32 1.0, %v4602_v44  ;;  %v2171_v48 = vmul.f32 1.442695, %v2146_v42  ;;  %v2129_v49 = vsel %vm2097_vm13, %v2081_v23, %v2113_v43 }
 0x24e   : > { %v4604_v19 = vpop.eup %4603  ;;  %4619 = vpow2.f32 %v2173_v45  ;;  %v2145_v50 = vsub.f32 0.0, %v2129_v49  ;;  %v2086_v51 = vadd.f32 %v5440_v26, %v1981_v46  ;;  %v1979_v52 = vpop.xlane.xlu0 %1978 }
 0x24f   : > { %v4606_v53 = vpop.eup %4605  ;;  %4621 = vrcp.f32 %v2192_v47  ;;  %v2191_v54 = vadd.f32 1.0, %v4604_v19  ;;  %v2085_v55 = vadd.f32 %v5438_v25, %v1979_v52 }
 0x250   : > { %v4608_v56 = vpop.eup %4607  ;;  %v2237_v57 = vmul.f32 1.442695, %v4606_v53  ;;  %4623 = vpow2.f32 %v2171_v48  ;;  %vm2102_vm14 = vcmp.ge.f32.partialorder %v2086_v51, 0.0  ;;  %v2072_v58 = vpop.xlane.xlu1 %2071  ;;  %v2118_v61 = vmul.f32 0.01, %v2086_v51 }
 0x251   : > { %v4610_v59 = vpop.eup %4609  ;;  %4625 = vrcp.f32 %v2191_v54  ;;  %v2190_v60 = vadd.f32 1.0, %v4608_v56  ;;  %vm2101_vm15 = vcmp.ge.f32.partialorder %v2085_v55, 0.0  ;;  %v2169_v0 = vmul.f32 1.442695, %v2145_v50 }
 0x252   : > { %v4612_v62 = vpop.eup %4611  ;;  %v2239_v63 = vmul.f32 1.442695, %v4610_v59  ;;  %v2117_v26 = vmul.f32 0.01, %v2085_v55  ;;  %v2088_v1 = vadd.f32 %v2072_v58, %v1985_v36  ;;  %v2069_v2 = vpop.xlane.xlu0 %2068  ;;  %v2134_v25 = vsel %vm2102_vm14, %v2086_v51, %v2118_v61 }
 0x253   : > { %v4614_v3 = vpop.eup %4613  ;;  %4627 = vrcp.f32 %v2190_v60  ;;  %v2189_v4 = vadd.f32 1.0, %v4612_v62  ;;  %v2087_v5 = vadd.f32 %v2069_v2, %v1983_v40  ;;  %v2150_v7 = vsub.f32 0.0, %v2134_v25 }
 0x254   : > { %v4616_v6 = vpop.eup %4615  ;;  %4629 = vpow2.f32 %v2237_v57  ;;  %v2233_v20 = vmul.f32 1.442695, %v4614_v3  ;;  %v2133_v8 = vsel %vm2101_vm15, %v2085_v55, %v2117_v26  ;;  %vm2104_vm0 = vcmp.ge.f32.partialorder %v2088_v1, 0.0 }
 0x255   : > { %4631 = vrcp.f32 %v2189_v4  ;;  %v2179_v9 = vmul.f32 1.442695, %v2150_v7  ;;  %v2120_v10 = vmul.f32 0.01, %v2088_v1  ;;  %vm2103_vm1 = vcmp.ge.f32.partialorder %v2087_v5, 0.0 }
 0x256   : > { %4633 = vpow2.f32 %v2239_v63  ;;  %v2196_v12 = vadd.f32 1.0, %v4616_v6  ;;  %v2149_v13 = vsub.f32 0.0, %v2133_v8  ;;  %v2119_v14 = vmul.f32 0.01, %v2087_v5  ;;  %v5476_v6 = vld [vmem:[%s6159_s7] ss:$0 sm:$0xff] }
 0x257   : > { %v4618_v11 = vpop.eup %4617  ;;  %4635 = vpow2.f32 %v2233_v20  ;;  %v2136_v17 = vsel %vm2104_vm0, %v2088_v1, %v2120_v10 }
 0x258   : > { %v4620_v15 = vpop.eup %4619  ;;  %v2235_v16 = vmul.f32 1.442695, %v4618_v11  ;;  %4637 = vpow2.f32 %v2169_v0  ;;  %v2152_v24 = vsub.f32 0.0, %v2136_v17  ;;  %v2135_v28 = vsel %vm2103_vm1, %v2087_v5, %v2119_v14 }
 0x259   : > { %v4622_v18 = vpop.eup %4621  ;;  %v2195_v27 = vadd.f32 1.0, %v4620_v15  ;;  %4639 = vpow2.f32 %v2179_v9  ;;  %v2177_v32 = vmul.f32 1.442695, %v2149_v13  ;;  %v2151_v33 = vsub.f32 0.0, %v2135_v28 }
 0x25a   : > { %v4624_v29 = vpop.eup %4623  ;;  %4641 = vpow2.f32 %v2235_v16  ;;  %v2183_v23 = vmul.f32 1.442695, %v2152_v24  ;;  %v2247_v40 = vmul.f32 1.442695, %v4622_v18 }
 0x25b   : > { %v4626_v30 = vpop.eup %4625  ;;  %4643 = vrcp.f32 %v2196_v12  ;;  %v2194_v31 = vadd.f32 1.0, %v4624_v29  ;;  %v2181_v22 = vmul.f32 1.442695, %v2151_v33 }
 0x25c   : > { %v2245_v34 = vmul.f32 1.442695, %v4626_v30  ;;  %4645 = vrcp.f32 %v2195_v27 }
 0x25d   : > { %v4628_v35 = vpop.eup %4627  ;;  %4647 = vrcp.f32 %v2194_v31 }
 0x25e   : > { %v5449_v36 = vpop.eup %4629  ;;  %4649 = vpow2.f32 %v2245_v34  ;;  %v2243_v37 = vmul.f32 1.442695, %v4628_v35 }
 0x25f   : > { %v4632_v38 = vpop.eup %4631  ;;  %4651 = vpow2.f32 %v2177_v32 }
 0x260   : > { %v5451_v39 = vpop.eup %4633  ;;  %4653 = vpow2.f32 %v2243_v37  ;;  %v2241_v41 = vmul.f32 1.442695, %v4632_v38 }
 0x261   : > { %v5453_v42 = vpop.eup %4635  ;;  %4655 = vpow2.f32 %v2183_v23  ;;  %v2290_v51 = vpack.c.bf16 %v5451_v39, %v5449_v36 }
 0x262   : > { %v4638_v43 = vpop.eup %4637  ;;  %4657 = vpow2.f32 %v2241_v41 }
 0x263   : > { %v4640_v44 = vpop.eup %4639  ;;  %v2193_v45 = vadd.f32 1.0, %v4638_v43  ;;  %4659 = vpow2.f32 %v2181_v22 }
 0x264   : > { %v5455_v46 = vpop.eup %4641  ;;  %4661 = vpow2.f32 %v2247_v40  ;;  %v2198_v47 = vadd.f32 1.0, %v4640_v44 }
 0x265   : > { %v4644_v48 = vpop.eup %4643  ;;  %4663 = vrcp.f32 %v2193_v45  ;;  %v2289_v49 = vpack.c.bf16 %v5455_v46, %v5453_v42 }
 0x266   : > { %v4646_v19 = vpop.eup %4645  ;;  %4665 = vrcp.f32 %v2198_v47  ;;  %v2255_v2 = vmul.f32 1.442695, %v4644_v48 }
 0x267   : > { %v4648_v50 = vpop.eup %4647  ;;  %4244 = vmatprep.subr.bf16.mxu1 %v2289_v49  ;;  %v2253_v57 = vmul.f32 1.442695, %v4646_v19  ;;  %v4574_v19 = vld [vmem:[#allocation10 + $0x8] sm:$0xff]  }
 0x268   : > { %v5461_v52 = vpop.eup %4649  ;;  %4245 = vmatpush3.bf16.msra.mxu1 %v2289_v49  ;;  %v2251_v61 = vmul.f32 1.442695, %v4648_v50 }
 0x269   : > { %v4652_v53 = vpop.eup %4651  ;;  %4246 = vmatprep.subr.bf16.mxu1 %v2290_v51 }
 0x26a   : > { %v5463_v54 = vpop.eup %4653  ;;  %v2197_v55 = vadd.f32 1.0, %v4652_v53 }
 0x26b   : > { %v4656_v56 = vpop.eup %4655 }
 0x26c   : > { %v5465_v58 = vpop.eup %4657  ;;  %4667 = vrcp.f32 %v2197_v55  ;;  %v2200_v59 = vadd.f32 1.0, %v4656_v56  ;;  %4247 = vmatpush3.bf16.msra.mxu1 %v2290_v51 }
 0x26d   : > { %v4660_v60 = vpop.eup %4659  ;;  %v2291_v62 = vpack.c.bf16 %v5463_v54, %v5465_v58 }
 0x26e   : > { %v5469_v63 = vpop.eup %4661  ;;  %4669 = vrcp.f32 %v2200_v59  ;;  %v2199_v0 = vadd.f32 1.0, %v4660_v60 }
 0x26f   : > { %v4664_v26 = vpop.eup %4663  ;;  %4671 = vpow2.f32 %v2253_v57  ;;  %4248 = vmatprep.subr.bf16.mxu1 %v2291_v62  ;;  %v2292_v1 = vpack.c.bf16 %v5469_v63, %v5461_v52 }
 0x270   : > { %v2249_v3 = vmul.f32 1.442695, %v4664_v26  ;;  %4673 = vrcp.f32 %v2199_v0  ;;  %4249 = vmatpush3.bf16.msra.mxu1 %v2291_v62  ;;  %v4666_v4 = vpop.eup %4665  ;;  %v4575_v0 = vld [vmem:[#allocation10 + $0x10] sm:$0xff]  }
 0x271   : > { %4675 = vpow2.f32 %v2251_v61  ;;  %4250 = vmatprep.subr.bf16.mxu1 %v2292_v1  ;;  %v2259_v25 = vmul.f32 1.442695, %v4666_v4 }
 0x272   : > { %4677 = vpow2.f32 %v2249_v3 }
 0x273   : > { %4679 = vpow2.f32 %v2255_v2 }
 0x274   : > { %4251 = vmatpush3.bf16.msra.mxu1 %v2292_v1  ;;  %4681 = vpow2.f32 %v2259_v25 }
 0x276   : > { %v4668_v5 = vpop.eup %4667 }
 0x277   : > { %v2257_v20 = vmul.f32 1.442695, %v4668_v5 }
 0x278   : > { %v4670_v7 = vpop.eup %4669  ;;  %v4166_v8 = vpop.f32.mrb[0].mxu1 }
 0x279   : > { %v5478_v9 = vpop.eup %4671  ;;  %4683 = vpow2.f32 %v2257_v20  ;;  %v2263_v10 = vmul.f32 1.442695, %v4670_v7  ;;  %v1469_v11 = vadd.f32 %v4166_v8, %v5476_v6  ;;  %v1397_v12 = vpop.f32.mrb[1].mxu1 }
 0x27a   : > { %v4674_v13 = vpop.eup %4673  ;;  %v1467_v14 = vadd.f32 %v5476_v6, %v1397_v12  ;;  %v4167_v15 = vpop.f32.mrb[2].mxu1  ;;  %v4576_v12 = vld [vmem:[#allocation10 + $0x18] sm:$0xff]  }
 0x27b   : > { %v5482_v16 = vpop.eup %4675  ;;  %4685 = vpow2.f32 %v2263_v10  ;;  %v2261_v17 = vmul.f32 1.442695, %v4674_v13  ;;  %v1400_v18 = vpop.f32.mrb[3].mxu1  ;;  %v1501_v24 = vmul.f32 0.01, %v1469_v11  ;;  %v1470_v29 = vadd.f32 %v4167_v15, %v5476_v6 }
 0x27c   : > { %v5484_v27 = vpop.eup %4677  ;;  %v1499_v28 = vmul.f32 0.01, %v1467_v14  ;;  %v1468_v30 = vadd.f32 %v5476_v6, %v1400_v18  ;;  %vm1485_vm2 = vcmp.ge.f32.partialorder %v1469_v11, 0.0  ;;  %vm1483_vm3 = vcmp.ge.f32.partialorder %v1467_v14, 0.0 }
 0x27d   : > { %4687 = vpow2.f32 %v2261_v17  ;;  %v2293_v31 = vpack.c.bf16 %v5482_v16, %v5484_v27  ;;  %v5490_v32 = vpop.eup %4679  ;;  %vm1486_vm4 = vcmp.ge.f32.partialorder %v1470_v29, 0.0  ;;  %v1502_v33 = vmul.f32 0.01, %v1470_v29 }
 0x27e   : > { %vm1484_vm5 = vcmp.ge.f32.partialorder %v1468_v30, 0.0  ;;  %v1500_v34 = vmul.f32 0.01, %v1468_v30  ;;  %v2294_v35 = vpack.c.bf16 %v5490_v32, %v5478_v9  ;;  %v1517_v23 = vsel %vm1485_vm2, %v1469_v11, %v1501_v24  ;;  %v5495_v47 = vpop.eup %4681 }
 0x27f   : > { %4252 = vmatprep.subr.bf16.mxu1 %v2293_v31  ;;  %v1518_v37 = vsel %vm1486_vm4, %v1470_v29, %v1502_v33  ;;  %v1515_v22 = vsel %vm1483_vm3, %v1467_v14, %v1499_v28  ;;  %v4577_v29 = vld [vmem:[#allocation10 + $0x20] sm:$0xff]  }
 0x280   : > { %4253 = vmatpush3.bf16.msra.mxu1 %v2293_v31  ;;  %v4170_v38 = vpop.f32.mrb[4].mxu1  ;;  %v1516_v40 = vsel %vm1484_vm5, %v1468_v30, %v1500_v34  ;;  %v1532_v41 = vpack.c.bf16 %v1518_v37, %v1517_v23 }
 0x281   : > { %4254 = vmatprep.subr.bf16.mxu1 %v2294_v35  ;;  %v1473_v43 = vadd.f32 %v4170_v38, %v5476_v6  ;;  %v1413_v44 = vpop.f32.mrb[5].mxu1  ;;  %v1531_v45 = vpack.c.bf16 %v1516_v40, %v1515_v22 }
 0x282   : > { %v1471_v48 = vadd.f32 %v5476_v6, %v1413_v44  ;;  %v4171_v49 = vpop.f32.mrb[6].mxu1 }
 0x283   : > { %v5498_v50 = vpop.eup %4683  ;;  %v1505_v51 = vmul.f32 0.01, %v1473_v43  ;;  %v1474_v53 = vadd.f32 %v4171_v49, %v5476_v6  ;;  %v1416_v55 = vpop.f32.mrb[7].mxu1  ;;  %4196 = vmatprep.mubr.bf16.mxu0 %v1531_v45  ;;  %vm1489_vm6 = vcmp.ge.f32.partialorder %v1473_v43, 0.0 }
 0x284   : > { %4255 = vmatpush3.bf16.msra.mxu1 %v2294_v35  ;;  %v2295_v56 = vpack.c.bf16 %v5495_v47, %v5498_v50  ;;  %v1503_v57 = vmul.f32 0.01, %v1471_v48  ;;  %v1472_v59 = vadd.f32 %v5476_v6, %v1416_v55  ;;  %4197 = vmatmul.mubr.bf16.vlgmr.msra.gmra.mrb[16].mxu0 %v1532_v41  ;;  %vm1487_vm7 = vcmp.ge.f32.partialorder %v1471_v48, 0.0 }
 0x285   : > { %v5504_v60 = vpop.eup %4685  ;;  %vm1490_vm8 = vcmp.ge.f32.partialorder %v1474_v53, 0.0  ;;  %v1506_v61 = vmul.f32 0.01, %v1474_v53  ;;  %4213 = vmatpush3.bf16.msra.mxu0 %v5431_v21  ;;  %v1521_v1 = vsel %vm1489_vm6, %v1473_v43, %v1505_v51 }
 0x286   : > { %4256 = vmatprep.subr.bf16.mxu1 %v2295_v56  ;;  %vm1488_vm9 = vcmp.ge.f32.partialorder %v1472_v59, 0.0  ;;  %v1504_v62 = vmul.f32 0.01, %v1472_v59  ;;  %4214 = vmatprep.subr.bf16.mxu0 %v4574_v19  ;;  %v1519_v25 = vsel %vm1487_vm7, %v1471_v48, %v1503_v57 }
 0x287   : > { %v5507_v26 = vpop.eup %4687  ;;  %v1522_v2 = vsel %vm1490_vm8, %v1474_v53, %v1506_v61 }
 0x288   : > { %4257 = vmatpush3.bf16.msra.mxu1 %v2295_v56  ;;  %v2296_v3 = vpack.c.bf16 %v5504_v60, %v5507_v26  ;;  %v4174_v4 = vpop.f32.mrb[8].mxu1  ;;  %v1520_v5 = vsel %vm1488_vm9, %v1472_v59, %v1504_v62  ;;  %v1534_v20 = vpack.c.bf16 %v1522_v2, %v1521_v1  ;;  %v4578_v62 = vld [vmem:[#allocation10 + $0x28] sm:$0xff]   ;;  %v5522_v1 = vld [vmem:[%s6161_s9] ss:$0 sm:$0xff] }
 0x289   : > { %v1477_v7 = vadd.f32 %v4174_v4, %v5476_v6  ;;  %v1429_v21 = vpop.f32.mrb[9].mxu1  ;;  %v1533_v8 = vpack.c.bf16 %v1520_v5, %v1519_v25  ;;  %4215 = vmatpush3.bf16.msra.mxu0 %v4574_v19 }
 0x28a   : > { %4258 = vmatprep.subr.bf16.mxu1 %v2296_v3  ;;  %v1475_v10 = vadd.f32 %v5476_v6, %v1429_v21  ;;  %v4175_v11 = vpop.f32.mrb[10].mxu1  ;;  %4216 = vmatprep.subr.bf16.mxu0 %v4575_v0 }
 0x28b   : > { %v1509_v13 = vmul.f32 0.01, %v1477_v7  ;;  %v1478_v14 = vadd.f32 %v4175_v11, %v5476_v6  ;;  %v1432_v15 = vpop.f32.mrb[11].mxu1  ;;  %4200 = vmatprep.mubr.bf16.mxu0 %v1533_v8  ;;  %vm1493_vm10 = vcmp.ge.f32.partialorder %v1477_v7, 0.0 }
 0x28c   : > { %4259 = vmatpush3.bf16.msra.mxu1 %v2296_v3  ;;  %v1507_v17 = vmul.f32 0.01, %v1475_v10  ;;  %v1476_v18 = vadd.f32 %v5476_v6, %v1432_v15  ;;  %4201 = vmatmul.mubr.bf16.gmra.mrb[20].mxu0 %v1534_v20  ;;  %vm1491_vm11 = vcmp.ge.f32.partialorder %v1475_v10, 0.0 }
 0x28d   : > { %vm1494_vm12 = vcmp.ge.f32.partialorder %v1478_v14, 0.0  ;;  %v1510_v24 = vmul.f32 0.01, %v1478_v14  ;;  %4217 = vmatpush3.bf16.msra.mxu0 %v4575_v0  ;;  %v1525_v30 = vsel %vm1493_vm10, %v1477_v7, %v1509_v13  ;;  %v4579_v0 = vld [vmem:[#allocation10 + $0x30] sm:$0xff]  }
 0x28e   : > { %vm1492_vm13 = vcmp.ge.f32.partialorder %v1476_v18, 0.0  ;;  %v1508_v28 = vmul.f32 0.01, %v1476_v18  ;;  %4218 = vmatprep.subr.bf16.mxu0 %v4576_v12  ;;  %v1523_v34 = vsel %vm1491_vm11, %v1475_v10, %v1507_v17 }
 0x28f   : > { %v1526_v31 = vsel %vm1494_vm12, %v1478_v14, %v1510_v24 }
 0x290   : > { %v4178_v33 = vpop.f32.mrb[12].mxu1  ;;  %v1524_v35 = vsel %vm1492_vm13, %v1476_v18, %v1508_v28  ;;  %v1536_v23 = vpack.c.bf16 %v1526_v31, %v1525_v30 }
 0x291   : > { %v1481_v37 = vadd.f32 %v4178_v33, %v5476_v6  ;;  %v1445_v38 = vpop.f32.mrb[13].mxu1  ;;  %v1535_v22 = vpack.c.bf16 %v1524_v35, %v1523_v34  ;;  %4219 = vmatpush3.bf16.msra.mxu0 %v4576_v12 }
 0x292   : > { %v1479_v40 = vadd.f32 %v5476_v6, %v1445_v38  ;;  %v4179_v41 = vpop.f32.mrb[14].mxu1  ;;  %4220 = vmatprep.subr.bf16.mxu0 %v4577_v29 }
 0x293   : > { %v1513_v43 = vmul.f32 0.01, %v1481_v37  ;;  %v1482_v44 = vadd.f32 %v4179_v41, %v5476_v6  ;;  %v1448_v45 = vpop.f32.mrb[15].mxu1  ;;  %4204 = vmatprep.mubr.bf16.mxu0 %v1535_v22  ;;  %vm1497_vm14 = vcmp.ge.f32.partialorder %v1481_v37, 0.0 }
 0x294   : > { %v1511_v48 = vmul.f32 0.01, %v1479_v40  ;;  %v1480_v49 = vadd.f32 %v5476_v6, %v1448_v45  ;;  %4205 = vmatmul.mubr.bf16.gmra.mrb[24].mxu0 %v1536_v23  ;;  %vm1495_vm15 = vcmp.ge.f32.partialorder %v1479_v40, 0.0  ;;  %v4580_v6 = vld [vmem:[#allocation10 + $0x38] sm:$0xff]  }
 0x295   : > { %vm1498_vm0 = vcmp.ge.f32.partialorder %v1482_v44, 0.0  ;;  %v1514_v19 = vmul.f32 0.01, %v1482_v44  ;;  %4221 = vmatpush3.bf16.msra.mxu0 %v4577_v29  ;;  %v1529_v53 = vsel %vm1497_vm14, %v1481_v37, %v1513_v43 }
 0x296   : > { %vm1496_vm1 = vcmp.ge.f32.partialorder %v1480_v49, 0.0  ;;  %v1512_v51 = vmul.f32 0.01, %v1480_v49  ;;  %v1527_v56 = vsel %vm1495_vm15, %v1479_v40, %v1511_v48  ;;  %4222 = vmatprep.subr.bf16.mxu0 %v4578_v62 }
 0x297   : > { %v1530_v55 = vsel %vm1498_vm0, %v1482_v44, %v1514_v19 }
 0x298   : > { %v1528_v57 = vsel %vm1496_vm1, %v1480_v49, %v1512_v51  ;;  %v1538_v59 = vpack.c.bf16 %v1530_v55, %v1529_v53 }
 0x299   : > { %v1537_v61 = vpack.c.bf16 %v1528_v57, %v1527_v56  ;;  %4223 = vmatpush3.bf16.msra.mxu0 %v4578_v62 }
 0x29a   : > { %4224 = vmatprep.subr.bf16.mxu0 %v4579_v0 }
 0x29b   : > { %4208 = vmatprep.mubr.bf16.mxu0 %v1537_v61 }
 0x29c   : > { %4209 = vmatmul.mubr.bf16.gmra.mrb[28].mxu0 %v1538_v59 }
 0x29d   : > { %4225 = vmatpush3.bf16.msra.mxu0 %v4579_v0 }
 0x29e   : > { %4226 = vmatprep.subr.bf16.mxu0 %v4580_v6 }
 0x2a1   : > { %4227 = vmatpush3.bf16.msra.mxu0 %v4580_v6 }
 0x357   : > { %v4198_v2 = vpop.f32.mrb[16].mxu0 }
 0x358   : > { %v1653_v3 = vadd.f32 %v4198_v2, %v5522_v1  ;;  %v1644_v4 = vpop.f32.mrb[17].mxu0 }
 0x359   : > { %v1645_v25 = vadd.f32 %v5522_v1, %v1644_v4  ;;  %v4199_v5 = vpop.f32.mrb[18].mxu0 }
 0x35a   : > { %v1725_v20 = vmul.f32 0.01, %v1653_v3  ;;  %v1656_v7 = vadd.f32 %v4199_v5, %v5522_v1  ;;  %v1647_v21 = vpop.f32.mrb[19].mxu0  ;;  %vm1709_vm2 = vcmp.ge.f32.partialorder %v1653_v3, 0.0 }
 0x35b   : > { %v1723_v8 = vmul.f32 0.01, %v1645_v25  ;;  %v1648_v10 = vadd.f32 %v5522_v1, %v1647_v21  ;;  %vm1707_vm3 = vcmp.ge.f32.partialorder %v1645_v25, 0.0 }
 0x35c   : > { %vm1710_vm4 = vcmp.ge.f32.partialorder %v1656_v7, 0.0  ;;  %v1726_v11 = vmul.f32 0.01, %v1656_v7  ;;  %v1741_v13 = vsel %vm1709_vm2, %v1653_v3, %v1725_v20  ;;  %vm2394_vm2 = vcmask 7168  }
 0x35d   : > { %vm1708_vm5 = vcmp.ge.f32.partialorder %v1648_v10, 0.0  ;;  %v1724_v12 = vmul.f32 0.01, %v1648_v10  ;;  %v1739_v18 = vsel %vm1707_vm3, %v1645_v25, %v1723_v8 }
 0x35e   : > { %v1742_v14 = vsel %vm1710_vm4, %v1656_v7, %v1726_v11 }
 0x35f   : > { %v1756_v15 = vpack.c.bf16 %v1742_v14, %v1741_v13  ;;  %v4202_v17 = vpop.f32.mrb[20].mxu0  ;;  %v1740_v24 = vsel %vm1708_vm5, %v1648_v10, %v1724_v12 }
 0x360   : > { %v1669_v28 = vadd.f32 %v4202_v17, %v5522_v1  ;;  %v1660_v29 = vpop.f32.mrb[21].mxu0  ;;  %v1755_v30 = vpack.c.bf16 %v1740_v24, %v1739_v18 }
 0x361   : > { %v1661_v31 = vadd.f32 %v5522_v1, %v1660_v29  ;;  %v4203_v33 = vpop.f32.mrb[22].mxu0 }
 0x362   : > { %v1729_v34 = vmul.f32 0.01, %v1669_v28  ;;  %v1672_v35 = vadd.f32 %v4203_v33, %v5522_v1  ;;  %v1663_v23 = vpop.f32.mrb[23].mxu0  ;;  %4228 = vmatprep.mubr.bf16.mxu0 %v1755_v30  ;;  %vm1713_vm6 = vcmp.ge.f32.partialorder %v1669_v28, 0.0 }
 0x363   : > { %v1727_v37 = vmul.f32 0.01, %v1661_v31  ;;  %v1664_v38 = vadd.f32 %v5522_v1, %v1663_v23  ;;  %4229 = vmatmul.mubr.bf16.vlgmr.msra.gmra.mrb[32].mxu0 %v1756_v15  ;;  %vm1711_vm7 = vcmp.ge.f32.partialorder %v1661_v31, 0.0  ;;  %v4581_v23 = vld [vmem:[%s5243_s16] sm:$0xff]  }
 0x364   : > { %vm1714_vm8 = vcmp.ge.f32.partialorder %v1672_v35, 0.0  ;;  %v1730_v22 = vmul.f32 0.01, %v1672_v35  ;;  %v1745_v41 = vsel %vm1713_vm6, %v1669_v28, %v1729_v34  ;;  %4260 = vmatprep.mubr.bf16.mxu1 %v4581_v23 }
 0x365   : > { %vm1712_vm9 = vcmp.ge.f32.partialorder %v1664_v38, 0.0  ;;  %v1728_v40 = vmul.f32 0.01, %v1664_v38  ;;  %v1743_v45 = vsel %vm1711_vm7, %v1661_v31, %v1727_v37  ;;  %v5542_v37 = vld [vmem:[%s5243_s16 + $0x8] sm:$0xff]  }
 0x366   : > { %v1746_v43 = vsel %vm1714_vm8, %v1672_v35, %v1730_v22  ;;  %4261 = vmatmul.mubr.bf16.vlgmr.msra.gmra.mrb[16].mxu1 %v5542_v37  ;;  %v5553_v22 = vld [vmem:[%s6163_s11] ss:$0 sm:$0xff] }
 0x367   : > { %v4206_v44 = vpop.f32.mrb[24].mxu0  ;;  %v1744_v48 = vsel %vm1712_vm9, %v1664_v38, %v1728_v40  ;;  %v1758_v49 = vpack.c.bf16 %v1746_v43, %v1745_v41  ;;  %v5547_v38 = vld [vmem:[%s5243_s16 + $0x18] sm:$0xff]  }
 0x368   : > { %v1685_v19 = vadd.f32 %v4206_v44, %v5522_v1  ;;  %v1676_v51 = vpop.f32.mrb[25].mxu0  ;;  %v1757_v53 = vpack.c.bf16 %v1744_v48, %v1743_v45 }
 0x369   : > { %v1677_v55 = vadd.f32 %v5522_v1, %v1676_v51  ;;  %v4207_v56 = vpop.f32.mrb[26].mxu0 }
 0x36a   : > { %v1733_v57 = vmul.f32 0.01, %v1685_v19  ;;  %v1688_v59 = vadd.f32 %v4207_v56, %v5522_v1  ;;  %v1679_v61 = vpop.f32.mrb[27].mxu0  ;;  %4232 = vmatprep.mubr.bf16.mxu0 %v1757_v53  ;;  %vm1717_vm10 = vcmp.ge.f32.partialorder %v1685_v19, 0.0 }
 0x36b   : > { %v1731_v62 = vmul.f32 0.01, %v1677_v55  ;;  %v1680_v0 = vadd.f32 %v5522_v1, %v1679_v61  ;;  %4233 = vmatmul.mubr.bf16.gmra.mrb[36].mxu0 %v1758_v49  ;;  %vm1715_vm11 = vcmp.ge.f32.partialorder %v1677_v55, 0.0 }
 0x36c   : > { %vm1718_vm12 = vcmp.ge.f32.partialorder %v1688_v59, 0.0  ;;  %v1734_v6 = vmul.f32 0.01, %v1688_v59  ;;  %v1749_v3 = vsel %vm1717_vm10, %v1685_v19, %v1733_v57 }
 0x36d   : > { %vm1716_vm13 = vcmp.ge.f32.partialorder %v1680_v0, 0.0  ;;  %v1732_v2 = vmul.f32 0.01, %v1680_v0  ;;  %v1747_v5 = vsel %vm1715_vm11, %v1677_v55, %v1731_v62 }
 0x36e   : > { %v1750_v4 = vsel %vm1718_vm12, %v1688_v59, %v1734_v6 }
 0x36f   : > { %v4210_v25 = vpop.f32.mrb[28].mxu0  ;;  %v1748_v20 = vsel %vm1716_vm13, %v1680_v0, %v1732_v2  ;;  %v1760_v7 = vpack.c.bf16 %v1750_v4, %v1749_v3 }
 0x370   : > { %v1701_v21 = vadd.f32 %v4210_v25, %v5522_v1  ;;  %v1692_v8 = vpop.f32.mrb[29].mxu0  ;;  %v1759_v10 = vpack.c.bf16 %v1748_v20, %v1747_v5 }
 0x371   : > { %v1693_v11 = vadd.f32 %v5522_v1, %v1692_v8  ;;  %v4211_v12 = vpop.f32.mrb[30].mxu0 }
 0x372   : > { %v1737_v13 = vmul.f32 0.01, %v1701_v21  ;;  %v1704_v14 = vadd.f32 %v4211_v12, %v5522_v1  ;;  %v1695_v15 = vpop.f32.mrb[31].mxu0  ;;  %4236 = vmatprep.mubr.bf16.mxu0 %v1759_v10  ;;  %vm1721_vm14 = vcmp.ge.f32.partialorder %v1701_v21, 0.0 }
 0x373   : > { %v1735_v17 = vmul.f32 0.01, %v1693_v11  ;;  %v1696_v18 = vadd.f32 %v5522_v1, %v1695_v15  ;;  %4237 = vmatmul.mubr.bf16.gmra.mrb[40].mxu0 %v1760_v7  ;;  %vm1719_vm15 = vcmp.ge.f32.partialorder %v1693_v11, 0.0  ;;  %v4583_v1 = vld [vmem:[%s5243_s16 + $0x10] sm:$0xff]   ;;  %s6228_s16 = sld [smem:[#allocation33_spill]] (!%p3882_p13) }
 0x374   : > { %vm1722_vm0 = vcmp.ge.f32.partialorder %v1704_v14, 0.0  ;;  %v1738_v24 = vmul.f32 0.01, %v1704_v14  ;;  %v1753_v29 = vsel %vm1721_vm14, %v1701_v21, %v1737_v13  ;;  %4264 = vmatprep.mubr.bf16.mxu1 %v4583_v1 }
 0x375   : > { %vm1720_vm1 = vcmp.ge.f32.partialorder %v1696_v18, 0.0  ;;  %v1736_v28 = vmul.f32 0.01, %v1696_v18  ;;  %v1751_v31 = vsel %vm1719_vm15, %v1693_v11, %v1735_v17  ;;  %4265 = vmatmul.mubr.bf16.gmra.mrb[20].mxu1 %v5547_v38 }
 0x376   : > { %v1754_v30 = vsel %vm1722_vm0, %v1704_v14, %v1738_v24  ;;  %4288 = vmatprep.mubr.bf16.mxu1 %v4583_v1 }
 0x377   : > { %v1752_v33 = vsel %vm1720_vm1, %v1696_v18, %v1736_v28  ;;  %v1762_v34 = vpack.c.bf16 %v1754_v30, %v1753_v29 }
 0x378   : > { %v1761_v35 = vpack.c.bf16 %v1752_v33, %v1751_v31 }
 0x37a   : > { %4240 = vmatprep.mubr.bf16.mxu0 %v1761_v35 }
 0x37b   : > { %4241 = vmatmul.mubr.bf16.gmra.mrb[44].mxu0 %v1762_v34 }
 0x37c   : > { %4284 = vmatprep.mubr.bf16.mxu0 %v4581_v23 }
 0x436   : > { %v4230_v40 = vpop.f32.mrb[32].mxu0 }
 0x437   : > { %v1877_v41 = vadd.f32 %v4230_v40, %v5553_v22  ;;  %v1868_v43 = vpop.f32.mrb[33].mxu0  ;;  %v2282_v40 = vld [vmem:[#allocation3 + $0x8] sm:$0xff] }
 0x438   : > { %v1869_v44 = vadd.f32 %v5553_v22, %v1868_v43  ;;  %v4231_v45 = vpop.f32.mrb[34].mxu0 }
 0x439   : > { %v1880_v48 = vadd.f32 %v4231_v45, %v5553_v22  ;;  %v1871_v49 = vpop.f32.mrb[35].mxu0  ;;  %v2267_v51 = vmul.f32 %v5449_v36, %v1877_v41 }
 0x43a   : > { %v1872_v19 = vadd.f32 %v5553_v22, %v1871_v49  ;;  %v2265_v55 = vmul.f32 %v5453_v42, %v1869_v44 }
 0x43b   : > { %v2268_v53 = vmul.f32 %v5451_v39, %v1880_v48 }
 0x43c   : > { %v2266_v56 = vmul.f32 %v5455_v46, %v1872_v19  ;;  %v2288_v19 = vld [vmem:[#allocation3 + $0x38] sm:$0xff] }
 0x43d   : > { %v2412_v57 = vpack.c.bf16 %v2268_v53, %v2267_v51 }
 0x43e   : > { %v2411_v59 = vpack.c.bf16 %v2266_v56, %v2265_v55  ;;  %v4234_v61 = vpop.f32.mrb[36].mxu0  ;;  %v2286_v55 = vld [vmem:[#allocation3 + $0x28] sm:$0xff] }
 0x43f   : > { %v1893_v62 = vadd.f32 %v4234_v61, %v5553_v22  ;;  %v1884_v0 = vpop.f32.mrb[37].mxu0 }
 0x440   : > { %v1885_v6 = vadd.f32 %v5553_v22, %v1884_v0  ;;  %v4235_v2 = vpop.f32.mrb[38].mxu0  ;;  %4268 = vmatprep.subr.bf16.mxu0 %v2411_v59  ;;  %4420 = vmatprep.subr.bf16.mxu1 %v2411_v59  ;;  %v2405_v0 = vld [vmem:[#allocation2 + $0x10] sm:$0xff] }
 0x441   : > { %v1896_v3 = vadd.f32 %v4235_v2, %v5553_v22  ;;  %v1887_v36 = vpop.f32.mrb[39].mxu0  ;;  %4269 = vmatpush3.bf16.msra.mxu0 %v2411_v59  ;;  %4428 = vmatpush3.bf16.msra.mxu1 %v2411_v59  ;;  %v2271_v42 = vmul.f32 %v5461_v52, %v1893_v62  ;;  %v2403_v2 = vld [vmem:[#allocation2] sm:$0xff] }
 0x442   : > { %v1888_v39 = vadd.f32 %v5553_v22, %v1887_v36  ;;  %4270 = vmatprep.subr.bf16.mxu0 %v2412_v57  ;;  %4421 = vmatprep.subr.bf16.mxu1 %v2412_v57  ;;  %v2269_v4 = vmul.f32 %v5465_v58, %v1885_v6  ;;  %v2409_v6 = vld [vmem:[#allocation2 + $0x30] sm:$0xff] }
 0x443   : > { %v2272_v46 = vmul.f32 %v5469_v63, %v1896_v3  ;;  %v2407_v3 = vld [vmem:[#allocation2 + $0x20] sm:$0xff] }
 0x444   : > { %v2270_v25 = vmul.f32 %v5463_v54, %v1888_v39 }
 0x445   : > { %v2414_v5 = vpack.c.bf16 %v2272_v46, %v2271_v42  ;;  %4271 = vmatpush3.bf16.msra.mxu0 %v2412_v57  ;;  %4429 = vmatpush3.bf16.msra.mxu1 %v2412_v57  ;;  %v2406_v42 = vld [vmem:[#allocation2 + $0x18] sm:$0xff] }
 0x446   : > { %v2413_v20 = vpack.c.bf16 %v2270_v25, %v2269_v4  ;;  %v4238_v7 = vpop.f32.mrb[40].mxu0  ;;  %v2410_v46 = vld [vmem:[#allocation2 + $0x38] sm:$0xff] }
 0x447   : > { %v1909_v21 = vadd.f32 %v4238_v7, %v5553_v22  ;;  %v1900_v8 = vpop.f32.mrb[41].mxu0  ;;  %v2404_v7 = vld [vmem:[#allocation2 + $0x8] sm:$0xff] }
 0x448   : > { %v1901_v10 = vadd.f32 %v5553_v22, %v1900_v8  ;;  %v4239_v11 = vpop.f32.mrb[42].mxu0  ;;  %4272 = vmatprep.subr.bf16.mxu0 %v2413_v20  ;;  %4422 = vmatprep.subr.bf16.mxu1 %v2413_v20 }
 0x449   : > { %v1912_v52 = vadd.f32 %v4239_v11, %v5553_v22  ;;  %v1903_v63 = vpop.f32.mrb[43].mxu0  ;;  %4273 = vmatpush3.bf16.msra.mxu0 %v2413_v20  ;;  %4430 = vmatpush3.bf16.msra.mxu1 %v2413_v20  ;;  %v2275_v58 = vmul.f32 %v5478_v9, %v1909_v21  ;;  %v2408_v21 = vld [vmem:[#allocation2 + $0x28] sm:$0xff] }
 0x44a   : > { %v1904_v54 = vadd.f32 %v5553_v22, %v1903_v63  ;;  %4274 = vmatprep.subr.bf16.mxu0 %v2414_v5  ;;  %4423 = vmatprep.subr.bf16.mxu1 %v2414_v5  ;;  %v2273_v13 = vmul.f32 %v5484_v27, %v1901_v10 }
 0x44b   : > { %v2276_v12 = vmul.f32 %v5490_v32, %v1912_v52 }
 0x44c   : > { %v2274_v14 = vmul.f32 %v5482_v16, %v1904_v54 }
 0x44d   : > { %v2416_v15 = vpack.c.bf16 %v2276_v12, %v2275_v58  ;;  %4275 = vmatpush3.bf16.msra.mxu0 %v2414_v5  ;;  %4431 = vmatpush3.bf16.msra.mxu1 %v2414_v5 }
 0x44e   : > { %v2415_v17 = vpack.c.bf16 %v2274_v14, %v2273_v13  ;;  %v4242_v18 = vpop.f32.mrb[44].mxu0 }
 0x44f   : > { %v1925_v24 = vadd.f32 %v4242_v18, %v5553_v22  ;;  %v1916_v28 = vpop.f32.mrb[45].mxu0  ;;  %v4958_v18 = vmov (!%p3882_p13), 0  }
 0x450   : > { %v1917_v29 = vadd.f32 %v5553_v22, %v1916_v28  ;;  %v4243_v30 = vpop.f32.mrb[46].mxu0  ;;  %4276 = vmatprep.subr.bf16.mxu0 %v2415_v17  ;;  %4424 = vmatprep.subr.bf16.mxu1 %v2415_v17 }
 0x451   : > { %v1928_v9 = vadd.f32 %v4243_v30, %v5553_v22  ;;  %v1919_v32 = vpop.f32.mrb[47].mxu0  ;;  %4277 = vmatpush3.bf16.msra.mxu0 %v2415_v17  ;;  %4432 = vmatpush3.bf16.msra.mxu1 %v2415_v17  ;;  %v2279_v27 = vmul.f32 %v5507_v26, %v1925_v24  ;;  %v4262_v26 = vpop.f32.mrb[16].mxu1 }
 0x452   : > { %v1920_v16 = vadd.f32 %v5553_v22, %v1919_v32  ;;  %4278 = vmatprep.subr.bf16.mxu0 %v2416_v15  ;;  %4425 = vmatprep.subr.bf16.mxu1 %v2416_v15  ;;  %v2277_v33 = vmul.f32 %v5498_v50, %v1917_v29  ;;  %v2281_v50 = vld [vmem:[#allocation3] sm:$0xff]  ;;  %v2355_v22 = vpop.f32.mrb[17].mxu1 }
 0x453   : > { %v2280_v31 = vmul.f32 %v5504_v60, %v1928_v9  ;;  %v2283_v60 = vld [vmem:[#allocation3 + $0x10] sm:$0xff]  ;;  %v2386_v41 = vadd.f32 %v2355_v22, %v2281_v50  ;;  %v4263_v43 = vpop.f32.mrb[18].mxu1  ;;  %4690 = vset.pattern.permute.xlu1 (!%p3882_p13), %v4958_v18  ;;  %4689 = vset.pattern.permute.xlu0 (!%p3882_p13), %v4958_v18 }
 0x454   : > { %v2278_v34 = vmul.f32 %v5495_v47, %v1920_v16  ;;  %v2284_v47 = vld [vmem:[#allocation3 + $0x18] sm:$0xff]  ;;  %v2388_v1 = vadd.f32 %v4262_v26, %v2283_v60  ;;  %v2358_v45 = vpop.f32.mrb[19].mxu1 }
 0x455   : > { %v2418_v35 = vpack.c.bf16 %v2280_v31, %v2279_v27  ;;  %4279 = vmatpush3.bf16.msra.mxu0 %v2416_v15  ;;  %4433 = vmatpush3.bf16.msra.mxu1 %v2416_v15  ;;  %v2389_v44 = vadd.f32 %v4263_v43, %v2284_v47  ;;  %2395 = vst.msk [vmem:[#allocation3] sm:$0xff] %vm2394_vm2, %v2386_v41  ;;  %v4266_v49 = vpop.f32.mrb[20].mxu1 }
 0x456   : > { %v2417_v23 = vpack.c.bf16 %v2278_v34, %v2277_v33  ;;  %2397 = vst.msk [vmem:[#allocation3 + $0x10] sm:$0xff] %vm2394_vm2, %v2388_v1  ;;  %v2387_v48 = vadd.f32 %v2358_v45, %v2282_v40  ;;  %v2371_v53 = vpop.f32.mrb[21].mxu1 }
 0x457   : > { %2398 = vst.msk [vmem:[#allocation3 + $0x18] sm:$0xff] %vm2394_vm2, %v2389_v44  ;;  %v4267_v57 = vpop.f32.mrb[22].mxu1 }
 0x458   : > { %4280 = vmatprep.subr.bf16.mxu0 %v2417_v23  ;;  %4426 = vmatprep.subr.bf16.mxu1 %v2417_v23  ;;  %2396 = vst.msk [vmem:[#allocation3 + $0x8] sm:$0xff] %vm2394_vm2, %v2387_v48  ;;  %v2393_v59 = vadd.f32 %v4267_v57, %v2288_v19  ;;  %v2374_v61 = vpop.f32.mrb[23].mxu1 }
 0x459   : > { %4281 = vmatpush3.bf16.msra.mxu0 %v2417_v23  ;;  %4434 = vmatpush3.bf16.msra.mxu1 %v2417_v23  ;;  %v2391_v62 = vadd.f32 %v2374_v61, %v2286_v55 }
 0x45a   : > { %4282 = vmatprep.subr.bf16.mxu0 %v2418_v35  ;;  %4427 = vmatprep.subr.bf16.mxu1 %v2418_v35  ;;  %2402 = vst.msk [vmem:[#allocation3 + $0x38] sm:$0xff] %vm2394_vm2, %v2393_v59 }
 0x45b   : > { %2400 = vst.msk [vmem:[#allocation3 + $0x28] sm:$0xff] %vm2394_vm2, %v2391_v62 }
 0x45c   : > { %v2512_v17 = vld [vmem:[#allocation3] sm:$0xff] (!%p3882_p13) }
 0x45d   : > { %4283 = vmatpush3.bf16.msra.mxu0 %v2418_v35  ;;  %4435 = vmatpush3.bf16.msra.mxu1 %v2418_v35  ;;  %vm2520_vm4 = vcmp.gt.f32.partialorder (!%p3882_p13), %v2512_v17, 0.0  ;;  %v2514_v24 = vld [vmem:[#allocation3 + $0x10] sm:$0xff] (!%p3882_p13) }
 0x45e   : > { %v2528_v29 = vsel (!%p3882_p13), %vm2520_vm4, %v2512_v17, 1.0  ;;  %vm2522_vm5 = vcmp.gt.f32.partialorder (!%p3882_p13), %v2514_v24, 0.0  ;;  %v2515_v30 = vld [vmem:[#allocation3 + $0x18] sm:$0xff] (!%p3882_p13)  ;;  %v2592_v23 = vsel (!%p3882_p13), %vm2520_vm4, 1, %v4958_v18 }
 0x45f   : > { %v2513_v15 = vld [vmem:[#allocation3 + $0x8] sm:$0xff] (!%p3882_p13)  ;;  %v2530_v9 = vsel (!%p3882_p13), %vm2522_vm5, %v2514_v24, 1.0  ;;  %vm2523_vm6 = vcmp.gt.f32.partialorder (!%p3882_p13), %v2515_v30, 0.0  ;;  %v2594_v50 = vsel (!%p3882_p13), %vm2522_vm5, 1, %v4958_v18 }
 0x460   : > { %4285 = vmatmul.mubr.bf16.vlgmr.msra.gmra.mrb[48].mxu0 %v5542_v37  ;;  %4289 = vmatmul.mubr.bf16.vlgmr.msra.gmra.mrb[24].mxu1 %v5547_v38  ;;  %v2287_v37 = vld [vmem:[#allocation3 + $0x30] sm:$0xff]  ;;  %v2285_v38 = vld [vmem:[#allocation3 + $0x20] sm:$0xff]  ;;  %vm2521_vm3 = vcmp.gt.f32.partialorder (!%p3882_p13), %v2513_v15, 0.0  ;;  %v2531_v16 = vsel (!%p3882_p13), %vm2523_vm6, %v2515_v30, 1.0  ;;  %v2595_v22 = vsel (!%p3882_p13), %vm2523_vm6, 1, %v4958_v18 }
 0x461   : > { %v2392_v51 = vadd.f32 %v4266_v49, %v2287_v37  ;;  %v2390_v56 = vadd.f32 %v2371_v53, %v2285_v38  ;;  %v2529_v28 = vsel (!%p3882_p13), %vm2521_vm3, %v2513_v15, 1.0  ;;  %v2593_v34 = vsel (!%p3882_p13), %vm2521_vm3, 1, %v4958_v18  ;;  %v2519_v1 = vld [vmem:[#allocation3 + $0x38] sm:$0xff] (!%p3882_p13) }
 0x462   : > { %4691 = vrcp.f32 (!%p3882_p13), %v2529_v28  ;;  %v2517_v31 = vld [vmem:[#allocation3 + $0x28] sm:$0xff] (!%p3882_p13)  ;;  %vm2527_vm10 = vcmp.gt.f32.partialorder (!%p3882_p13), %v2519_v1, 0.0  ;;  %v2651_v15 = vld [vmem:[%s6221_s2 + $0x18] sm:$0xff] (!%p3882_p13) }
 0x463   : > { %2401 = vst.msk [vmem:[#allocation3 + $0x30] sm:$0xff] %vm2394_vm2, %v2392_v51  ;;  %2399 = vst.msk [vmem:[#allocation3 + $0x20] sm:$0xff] %vm2394_vm2, %v2390_v56  ;;  %4693 = vrcp.f32 (!%p3882_p13), %v2528_v29  ;;  %vm2525_vm8 = vcmp.gt.f32.partialorder (!%p3882_p13), %v2517_v31, 0.0  ;;  %v2535_v44 = vsel (!%p3882_p13), %vm2527_vm10, %v2519_v1, 1.0  ;;  %v2599_v19 = vsel (!%p3882_p13), %vm2527_vm10, 1, %v4958_v18 }
 0x464   : > { %4695 = vrcp.f32 (!%p3882_p13), %v2530_v9  ;;  %v2533_v26 = vsel (!%p3882_p13), %vm2525_vm8, %v2517_v31, 1.0  ;;  %v2597_v48 = vsel (!%p3882_p13), %vm2525_vm8, 1, %v4958_v18 }
 0x465   : > { %4697 = vrcp.f32 (!%p3882_p13), %v2531_v16 }
 0x46a   : > { %v2516_v32 = vld [vmem:[#allocation3 + $0x20] sm:$0xff] (!%p3882_p13)  ;;  %v2518_v60 = vld [vmem:[#allocation3 + $0x30] sm:$0xff] (!%p3882_p13) }
 0x46b   : > { %vm2524_vm7 = vcmp.gt.f32.partialorder (!%p3882_p13), %v2516_v32, 0.0  ;;  %vm2526_vm9 = vcmp.gt.f32.partialorder (!%p3882_p13), %v2518_v60, 0.0 }
 0x46c   : > { %v4692_v27 = vpop.eup (!%p3882_p13), %4691  ;;  %v2532_v35 = vsel (!%p3882_p13), %vm2524_vm7, %v2516_v32, 1.0  ;;  %v2534_v40 = vsel (!%p3882_p13), %vm2526_vm9, %v2518_v60, 1.0  ;;  %v2596_v43 = vsel (!%p3882_p13), %vm2524_vm7, 1, %v4958_v18  ;;  %v2598_v38 = vsel (!%p3882_p13), %vm2526_vm9, 1, %v4958_v18  ;;  %v2652_v32 = vld [vmem:[%s6221_s2 + $0x20] sm:$0xff] (!%p3882_p13)  ;;  %v2653_v60 = vld [vmem:[%s6221_s2 + $0x28] sm:$0xff] (!%p3882_p13) }
 0x46d   : > { %v4694_v33 = vpop.eup (!%p3882_p13), %4693  ;;  %2551 = vperm.xlu1 (!%p3882_p13), %4690, %v4692_v27   ;;  %4699 = vrcp.f32 (!%p3882_p13), %v2532_v35 }
 0x46e   : > { %2546 = vperm.xlu0 (!%p3882_p13), %4689, %v4694_v33   ;;  %v4696_v47 = vpop.eup (!%p3882_p13), %4695  ;;  %4701 = vrcp.f32 (!%p3882_p13), %v2533_v26 }
 0x46f   : > { %v4698_v41 = vpop.eup (!%p3882_p13), %4697  ;;  %4703 = vrcp.f32 (!%p3882_p13), %v2534_v40 }
 0x470   : > { %4705 = vrcp.f32 (!%p3882_p13), %v2535_v44 }
 0x471   : > { %2604 = vperm.xlu1 (!%p3882_p13), %4690, %v2593_v34  }
 0x472   : > { %2601 = vperm.xlu0 (!%p3882_p13), %4689, %v2592_v23  }
 0x475   : > { %2607 = vperm.xlu1 (!%p3882_p13), %4690, %v2594_v50  }
 0x476   : > { %2556 = vperm.xlu0 (!%p3882_p13), %4689, %v4696_v47  }
 0x477   : > { %v4700_v45 = vpop.eup (!%p3882_p13), %4699 }
 0x478   : > { %v4702_v37 = vpop.eup (!%p3882_p13), %4701 }
 0x479   : > { %2610 = vperm.xlu1 (!%p3882_p13), %4690, %v2595_v22   ;;  %v4704_v49 = vpop.eup (!%p3882_p13), %4703 }
 0x47a   : > { %2561 = vperm.xlu0 (!%p3882_p13), %4689, %v4698_v41   ;;  %v4706_v51 = vpop.eup (!%p3882_p13), %4705 }
 0x47d   : > { %2613 = vperm.xlu1 (!%p3882_p13), %4690, %v2596_v43   ;;  %v2654_v43 = vld [vmem:[%s6221_s2 + $0x30] sm:$0xff] (!%p3882_p13) }
 0x47e   : > { %2566 = vperm.xlu0 (!%p3882_p13), %4689, %v4700_v45  }
 0x481   : > { %2616 = vperm.xlu1 (!%p3882_p13), %4690, %v2597_v48  }
 0x482   : > { %2571 = vperm.xlu0 (!%p3882_p13), %4689, %v4702_v37  }
 0x485   : > { %2619 = vperm.xlu1 (!%p3882_p13), %4690, %v2598_v38  }
 0x486   : > { %2576 = vperm.xlu0 (!%p3882_p13), %4689, %v4704_v49   ;;  %v2655_v49 = vld [vmem:[%s6221_s2 + $0x38] sm:$0xff] (!%p3882_p13) }
 0x489   : > { %2622 = vperm.xlu1 (!%p3882_p13), %4690, %v2599_v19  }
 0x48a   : > { %2581 = vperm.xlu0 (!%p3882_p13), %4689, %v4706_v51  }
 0x4ec   : > { %v2552_v55 = vpop.permute.xlu1 (!%p3882_p13), %2551 }
 0x4ed   : > { %v2547_v56 = vpop.permute.xlu0 (!%p3882_p13), %2546 }
 0x4f0   : > { %v2605_v61 = vpop.permute.xlu1 (!%p3882_p13), %2604 }
 0x4f1   : > { %vm2625_vm11 = vcmp.eq.s32.totalorder (!%p3882_p13), %v2605_v61, 1 }
 0x533   : > { %v4286_v36 = vpop.f32.mrb[48].mxu0  ;;  %v4290_v39 = vpop.f32.mrb[24].mxu1  ;;  %2503 = sbr.rel (%p3882_p13) target bundleno = 2473 (0x9a9), region = 173 }
 0x534   : > { %v2486_v4 = vadd.f32 %v4286_v36, %v2405_v0  ;;  %v2490_v25 = vadd.f32 %v4290_v39, %v2409_v6  ;;  %v2453_v5 = vpop.f32.mrb[49].mxu0  ;;  %v2469_v20 = vpop.f32.mrb[25].mxu1 }
 0x535   : > { %v2484_v8 = vadd.f32 %v2453_v5, %v2403_v2  ;;  %v2488_v10 = vadd.f32 %v2469_v20, %v2407_v3  ;;  %v4287_v11 = vpop.f32.mrb[50].mxu0  ;;  %v4291_v52 = vpop.f32.mrb[26].mxu1  ;;  %v2649_v2 = vld [vmem:[%s6221_s2 + $0x8] sm:$0xff] (!%p3882_p13) }
 0x536   : > { %2494 = vst [vmem:[#allocation2 + $0x10] sm:$0xff] %v2486_v4  ;;  %2498 = vst [vmem:[#allocation2 + $0x30] sm:$0xff] %v2490_v25  ;;  %v2487_v63 = vadd.f32 %v4287_v11, %v2406_v42  ;;  %v2491_v54 = vadd.f32 %v4291_v52, %v2410_v46  ;;  %v2456_v58 = vpop.f32.mrb[51].mxu0  ;;  %v2472_v12 = vpop.f32.mrb[27].mxu1  ;;  %v2648_v42 = vld [vmem:[%s6221_s2] sm:$0xff] (!%p3882_p13)  ;;  %v2650_v11 = vld [vmem:[%s6221_s2 + $0x10] sm:$0xff] (!%p3882_p13) }
 0x537   : > { %2492 = vst [vmem:[#allocation2] sm:$0xff] %v2484_v8  ;;  %2496 = vst [vmem:[#allocation2 + $0x20] sm:$0xff] %v2488_v10  ;;  %v2485_v13 = vadd.f32 %v2456_v58, %v2404_v7  ;;  %v2489_v14 = vadd.f32 %v2472_v12, %v2408_v21  ;;  %v2602_v0 = vpop.permute.xlu0 (!%p3882_p13), %2601  ;;  %v2608_v4 = vpop.permute.xlu1 (!%p3882_p13), %2607 }
 0x538   : > { %2495 = vst [vmem:[#allocation2 + $0x18] sm:$0xff] %v2487_v63  ;;  %2499 = vst [vmem:[#allocation2 + $0x38] sm:$0xff] %v2491_v54  ;;  %vm2624_vm12 = vcmp.eq.s32.totalorder (!%p3882_p13), %v2602_v0, 1  ;;  %vm2626_vm13 = vcmp.eq.s32.totalorder (!%p3882_p13), %v2608_v4, 1 }
 0x539   : > { %2493 = vst [vmem:[#allocation2 + $0x8] sm:$0xff] %v2485_v13  ;;  %2497 = vst [vmem:[#allocation2 + $0x28] sm:$0xff] %v2489_v14 }
 0x53b   : > { %v2557_v25 = vpop.permute.xlu0 %2556  ;;  %v2611_v10 = vpop.permute.xlu1 %2610 }
 0x53c   : > { %vm2627_vm14 = vcmp.eq.s32.totalorder %v2611_v10, 1 }
 0x53d   : > { %v2506_v39 = vld [vmem:[#allocation2 + $0x10] sm:$0xff] }
 0x53e   : > { %v2504_v59 = vld [vmem:[#allocation2] sm:$0xff]  ;;  %v2586_v20 = vmul.f32 %v2557_v25, %v2506_v39  ;;  %v2510_v33 = vld [vmem:[#allocation2 + $0x30] sm:$0xff] }
 0x53f   : > { %v2584_v62 = vmul.f32 %v2547_v56, %v2504_v59  ;;  %v2507_v21 = vld [vmem:[#allocation2 + $0x18] sm:$0xff]  ;;  %v2562_v63 = vpop.permute.xlu0 %2561  ;;  %v2508_v58 = vld [vmem:[#allocation2 + $0x20] sm:$0xff]  ;;  %v2614_v14 = vpop.permute.xlu1 %2613 }
 0x540   : > { %v2505_v53 = vld [vmem:[#allocation2 + $0x8] sm:$0xff]  ;;  %v2634_v8 = vsel %vm2626_vm13, %v2586_v20, 0.0  ;;  %v2587_v54 = vmul.f32 %v2562_v63, %v2507_v21  ;;  %vm2628_vm15 = vcmp.eq.s32.totalorder %v2614_v14, 1  ;;  %v2511_v1 = vld [vmem:[#allocation2 + $0x38] sm:$0xff] }
 0x541   : > { %v2585_v57 = vmul.f32 %v2552_v55, %v2505_v53  ;;  %v2632_v36 = vsel %vm2624_vm12, %v2584_v62, 0.0  ;;  %v2642_v52 = vmul.f32 0.033333335, %v2634_v8  ;;  %v2509_v28 = vld [vmem:[#allocation2 + $0x28] sm:$0xff]  ;;  %v2854_v14 = vld [vmem:[%s6222_s6 + $0x38] sm:$0xff] }
 0x542   : > { %v2640_v46 = vmul.f32 0.033333335, %v2632_v36  ;;  %v2635_v13 = vsel %vm2627_vm14, %v2587_v54, 0.0  ;;  %v2848_v54 = vld [vmem:[%s6222_s6 + $0x8] sm:$0xff] }
 0x543   : > { %v2633_v6 = vsel %vm2625_vm11, %v2585_v57, 0.0  ;;  %v2658_v12 = vadd.f32 %v2650_v11, %v2642_v52  ;;  %v2643_v17 = vmul.f32 0.033333335, %v2635_v13  ;;  %v2567_v18 = vpop.permute.xlu0 %2566  ;;  %v2617_v9 = vpop.permute.xlu1 %2616 }
 0x544   : > { %v2641_v3 = vmul.f32 0.033333335, %v2633_v6  ;;  %v5622_v7 = vadd.f32 %v2648_v42, %v2640_v46  ;;  %v2588_v24 = vmul.f32 %v2567_v18, %v2508_v58  ;;  %vm2629_vm0 = vcmp.eq.s32.totalorder %v2617_v9, 1  ;;  %v2852_v58 = vld [vmem:[%s6222_s6 + $0x28] sm:$0xff] }
 0x545   : > { %v2659_v29 = vadd.f32 %v2651_v15, %v2643_v17  ;;  %v4292_v13 = vpack.c.bf16 %v2852_v58, %v2848_v54  ;;  %v2847_v15 = vld [vmem:[%s6222_s6] sm:$0xff]  ;;  %v2886_v54 = vld [vmem:[%s6222_s6 + $0x138] sm:$0xff] }
 0x546   : > { %v5620_v5 = vadd.f32 %v2649_v2, %v2641_v3  ;;  %2666 = vadd.xlane.f32.xlu0 %v5622_v7  ;;  %v2636_v30 = vsel %vm2628_vm15, %v2588_v24, 0.0  ;;  %v2851_v17 = vld [vmem:[%s6222_s6 + $0x20] sm:$0xff] }
 0x547   : > { %v2644_v16 = vmul.f32 0.033333335, %v2636_v30  ;;  %v2572_v27 = vpop.permute.xlu0 %2571  ;;  %v2620_v23 = vpop.permute.xlu1 %2619  ;;  %v2853_v30 = vld [vmem:[%s6222_s6 + $0x30] sm:$0xff]  ;;  %4293 = vmatprep.subr.bf16.mxu0 %v4292_v13  ;;  %v2879_v58 = vld [vmem:[%s6222_s6 + $0x100] sm:$0xff] }
 0x548   : > { %2668 = vadd.xlane.f32.xlu1 %v5620_v5  ;;  %v2589_v31 = vmul.f32 %v2572_v27, %v2509_v28  ;;  %vm2630_vm1 = vcmp.eq.s32.totalorder %v2620_v23, 1  ;;  %v4294_v28 = vpack.c.bf16 %v2851_v17, %v2847_v15  ;;  %v2862_v23 = vld [vmem:[%s6222_s6 + $0x78] sm:$0xff]  ;;  %v2881_v15 = vld [vmem:[%s6222_s6 + $0x110] sm:$0xff] }
 0x549   : > { %v2660_v34 = vadd.f32 %v2652_v32, %v2644_v16  ;;  %v2885_v17 = vld [vmem:[%s6222_s6 + $0x130] sm:$0xff] }
 0x54a   : > { %2670 = vadd.xlane.f32.xlu0 %v2658_v12  ;;  %v2637_v35 = vsel %vm2629_vm0, %v2589_v31, 0.0  ;;  %4295 = vmatpush1.bf16.msra.mxu0 %v4294_v28  ;;  %v2856_v31 = vld [vmem:[%s6222_s6 + $0x48] sm:$0xff] }
 0x54b   : > { %v2645_v50 = vmul.f32 0.033333335, %v2637_v35  ;;  %v2577_v26 = vpop.permute.xlu0 %2576  ;;  %v2623_v41 = vpop.permute.xlu1 %2622  ;;  %v2888_v28 = vld [vmem:[%s6222_s6 + $0x148] sm:$0xff] }
 0x54c   : > { %2674 = vadd.xlane.f32.xlu1 %v2660_v34  ;;  %v2590_v47 = vmul.f32 %v2577_v26, %v2510_v33  ;;  %vm2631_vm2 = vcmp.eq.s32.totalorder %v2623_v41, 1  ;;  %v2860_v33 = vld [vmem:[%s6222_s6 + $0x68] sm:$0xff]  ;;  %v2855_v26 = vld [vmem:[%s6222_s6 + $0x40] sm:$0xff]  ;;  %v2861_v41 = vld [vmem:[%s6222_s6 + $0x70] sm:$0xff] }
 0x54d   : > { %v2661_v22 = vadd.f32 %v2653_v60, %v2645_v50  ;;  %v4296_v35 = vpack.c.bf16 %v2860_v33, %v2856_v31 }
 0x54e   : > { %2672 = vadd.xlane.f32.xlu0 %v2659_v29  ;;  %v2638_v40 = vsel %vm2630_vm1, %v2590_v47, 0.0  ;;  %v2859_v47 = vld [vmem:[%s6222_s6 + $0x60] sm:$0xff] }
 0x54f   : > { %v2646_v44 = vmul.f32 0.033333335, %v2638_v40  ;;  %v2582_v45 = vpop.permute.xlu0 %2581  ;;  %4297 = vmatprep.subr.bf16.mxu0 %v4296_v35  ;;  %v4298_v40 = vpack.c.bf16 %v2859_v47, %v2855_v26  ;;  %v2893_v35 = vld [vmem:[%s6222_s6 + $0x170] sm:$0xff]  ;;  %v2900_v26 = vld [vmem:[%s6222_s6 + $0x1a8] sm:$0xff]  ;;  %v2898_v47 = vld [vmem:[%s6222_s6 + $0x198] sm:$0xff] }
 0x550   : > { %v2591_v48 = vmul.f32 %v2582_v45, %v2511_v1  ;;  %v2857_v1 = vld [vmem:[%s6222_s6 + $0x50] sm:$0xff]  ;;  %v2868_v45 = vld [vmem:[%s6222_s6 + $0xa8] sm:$0xff] }
 0x551   : > { %v2662_v37 = vadd.f32 %v2654_v43, %v2646_v44  ;;  %v4330_v43 = vpack.c.bf16 %v2861_v41, %v2857_v1  ;;  %4299 = vmatpush1.bf16.msra.mxu0 %v4298_v40  ;;  %v2864_v44 = vld [vmem:[%s6222_s6 + $0x88] sm:$0xff]  ;;  %v2895_v40 = vld [vmem:[%s6222_s6 + $0x180] sm:$0xff] }
 0x552   : > { %2676 = vadd.xlane.f32.xlu0 %v2661_v22  ;;  %v2639_v38 = vsel %vm2631_vm2, %v2591_v48, 0.0  ;;  %v2866_v48 = vld [vmem:[%s6222_s6 + $0x98] sm:$0xff]  ;;  %v2899_v41 = vld [vmem:[%s6222_s6 + $0x1a0] sm:$0xff] }
 0x553   : > { %v2647_v19 = vmul.f32 0.033333335, %v2639_v38  ;;  %2678 = vadd.xlane.f32.xlu1 %v2662_v37  ;;  %v2870_v38 = vld [vmem:[%s6222_s6 + $0xb8] sm:$0xff] }
 0x555   : > { %v2663_v51 = vadd.f32 %v2655_v49, %v2647_v19  ;;  %v2863_v49 = vld [vmem:[%s6222_s6 + $0x80] sm:$0xff] }
 0x556   : > { %v2867_v19 = vld [vmem:[%s6222_s6 + $0xa0] sm:$0xff] }
 0x557   : > { %2680 = vadd.xlane.f32.xlu0 %v2663_v51 }
 0x5d3   : > { %v2667_v56 = vpop.xlane.xlu0 %2666 }
 0x5d4   : > { %v2683_v57 = vmul.f32 0.0078125, %v2667_v56  ;;  %v2869_v56 = vld [vmem:[%s6222_s6 + $0xb0] sm:$0xff] }
 0x5d5   : > { %v2669_v53 = vpop.xlane.xlu1 %2668 }
 0x5d6   : > { %v2684_v55 = vmul.f32 0.0078125, %v2669_v53  ;;  %v5648_v61 = vsub.f32 %v5622_v7, %v2683_v57  ;;  %v4302_v53 = vpack.c.bf16 %v2867_v19, %v2863_v49  ;;  %v2908_v49 = vld [vmem:[%s6222_s6 + $0x1e8] sm:$0xff]  ;;  %v2906_v19 = vld [vmem:[%s6222_s6 + $0x1d8] sm:$0xff] }
 0x5d7   : > { %v2671_v0 = vpop.xlane.xlu0 %2670 }
 0x5d8   : > { %v5645_v59 = vsub.f32 %v5620_v5, %v2684_v55  ;;  %v2699_v6 = vmul.f32 %v5648_v61, %v5648_v61  ;;  %v2685_v2 = vmul.f32 0.0078125, %v2671_v0  ;;  %v2865_v55 = vld [vmem:[%s6222_s6 + $0x90] sm:$0xff]  ;;  %v2876_v0 = vld [vmem:[%s6222_s6 + $0xe8] sm:$0xff] }
 0x5d9   : > { %v2675_v4 = vpop.xlane.xlu1 %2674  ;;  %v4334_v57 = vpack.c.bf16 %v2869_v56, %v2865_v55  ;;  %v2903_v55 = vld [vmem:[%s6222_s6 + $0x1c0] sm:$0xff] }
 0x5da   : > { %v2700_v62 = vmul.f32 %v5645_v59, %v5645_v59  ;;  %2707 = vadd.xlane.f32.xlu1 %v2699_v6  ;;  %v5654_v3 = vsub.f32 %v2658_v12, %v2685_v2  ;;  %v2687_v25 = vmul.f32 0.0078125, %v2675_v4  ;;  %v2850_v12 = vld [vmem:[%s6222_s6 + $0x18] sm:$0xff]  ;;  %v2907_v56 = vld [vmem:[%s6222_s6 + $0x1e0] sm:$0xff] }
 0x5db   : > { %v2673_v36 = vpop.xlane.xlu0 %2672  ;;  %v4324_v24 = vpack.c.bf16 %v2854_v14, %v2850_v12  ;;  %v2874_v6 = vld [vmem:[%s6222_s6 + $0xd8] sm:$0xff]  ;;  %v2883_v12 = vld [vmem:[%s6222_s6 + $0x120] sm:$0xff] }
 0x5dc   : > { %2709 = vadd.xlane.f32.xlu0 %v2700_v62  ;;  %v2686_v39 = vmul.f32 0.0078125, %v2673_v36  ;;  %v2701_v42 = vmul.f32 %v5654_v3, %v5654_v3  ;;  %v5662_v20 = vsub.f32 %v2660_v34, %v2687_v25  ;;  %v2858_v34 = vld [vmem:[%s6222_s6 + $0x58] sm:$0xff]  ;;  %v2872_v62 = vld [vmem:[%s6222_s6 + $0xc8] sm:$0xff]  ;;  %v4310_v14 = vpack.c.bf16 %v2883_v12, %v2879_v58 }
 0x5dd   : > { %4325 = vmatprep.subr.bf16.mxu1 %v4324_v24  ;;  %v4328_v50 = vpack.c.bf16 %v2862_v23, %v2858_v34  ;;  %v4304_v2 = vpack.c.bf16 %v2876_v0, %v2872_v62  ;;  %v2878_v36 = vld [vmem:[%s6222_s6 + $0xf8] sm:$0xff]  ;;  %v4342_v24 = vpack.c.bf16 %v2885_v17, %v2881_v15  ;;  %v2889_v34 = vld [vmem:[%s6222_s6 + $0x150] sm:$0xff]  ;;  %v4322_v62 = vpack.c.bf16 %v2907_v56, %v2903_v55 }
 0x5de   : > { %v5658_v46 = vsub.f32 %v2659_v29, %v2686_v39  ;;  %2711 = vadd.xlane.f32.xlu1 %v2701_v42  ;;  %v2703_v8 = vmul.f32 %v5662_v20, %v5662_v20  ;;  %v2849_v29 = vld [vmem:[%s6222_s6 + $0x10] sm:$0xff]  ;;  %v2871_v39 = vld [vmem:[%s6222_s6 + $0xc0] sm:$0xff]  ;;  %v4336_v4 = vpack.c.bf16 %v2878_v36, %v2874_v6  ;;  %v4346_v23 = vpack.c.bf16 %v2893_v35, %v2889_v34 }
 0x5df   : > { %v2677_v7 = vpop.xlane.xlu0 %2676  ;;  %v4326_v32 = vpack.c.bf16 %v2853_v30, %v2849_v29  ;;  %v2875_v42 = vld [vmem:[%s6222_s6 + $0xe0] sm:$0xff]  ;;  %v2892_v29 = vld [vmem:[%s6222_s6 + $0x168] sm:$0xff]  ;;  %v2890_v30 = vld [vmem:[%s6222_s6 + $0x158] sm:$0xff]  ;;  %v4959_v36 = vmov 0.0  }
 0x5e0   : > { %v2702_v5 = vmul.f32 %v5658_v46, %v5658_v46  ;;  %v2688_v21 = vmul.f32 0.0078125, %v2677_v7  ;;  %v2679_v11 = vpop.xlane.xlu1 %2678  ;;  %v4306_v25 = vpack.c.bf16 %v2875_v42, %v2871_v39  ;;  %v2877_v7 = vld [vmem:[%s6222_s6 + $0xf0] sm:$0xff]  ;;  %2997 = vmatprep.mubr.f32.mxu0 %v4959_v36  ;;  %3110 = vmatprep.mubr.f32.mxu1 %v4959_v36  ;;  %v3207_v39 = vld [vmem:[#allocation11 + $0x80] sm:$0xff]  ;;  %v3208_v42 = vld [vmem:[#allocation11 + $0x88] sm:$0xff] }
 0x5e1   : > { %v2689_v52 = vmul.f32 0.0078125, %v2679_v11  ;;  %4327 = vmatpush1.bf16.msra.mxu1 %v4326_v32  ;;  %v2884_v11 = vld [vmem:[%s6222_s6 + $0x128] sm:$0xff]  ;;  %v2894_v32 = vld [vmem:[%s6222_s6 + $0x178] sm:$0xff]  ;;  %v2905_v0 = vld [vmem:[%s6222_s6 + $0x1d0] sm:$0xff] }
 0x5e2   : > { %2713 = vadd.xlane.f32.xlu0 %v2702_v5  ;;  %v5666_v10 = vsub.f32 %v2661_v22, %v2688_v21  ;;  %2715 = vadd.xlane.f32.xlu1 %v2703_v8  ;;  %v2873_v5 = vld [vmem:[%s6222_s6 + $0xd0] sm:$0xff]  ;;  %v2880_v8 = vld [vmem:[%s6222_s6 + $0x108] sm:$0xff]  ;;  %v4344_v31 = vpack.c.bf16 %v2894_v32, %v2890_v30 }
 0x5e3   : > { %v5688_v18 = vsub.f32 %v2662_v37, %v2689_v52  ;;  %4329 = vmatprep.subr.bf16.mxu1 %v4328_v50  ;;  %v4300_v37 = vpack.c.bf16 %v2868_v45, %v2864_v44  ;;  %v4338_v21 = vpack.c.bf16 %v2877_v7, %v2873_v5  ;;  %v2882_v52 = vld [vmem:[%s6222_s6 + $0x118] sm:$0xff]  ;;  %v2896_v50 = vld [vmem:[%s6222_s6 + $0x188] sm:$0xff]  ;;  %v4318_v44 = vpack.c.bf16 %v2899_v41, %v2895_v40  ;;  %v2897_v45 = vld [vmem:[%s6222_s6 + $0x190] sm:$0xff] }
 0x5e4   : > { %v2704_v63 = vmul.f32 %v5666_v10, %v5666_v10  ;;  %v2681_v9 = vpop.xlane.xlu0 %2680  ;;  %v4340_v13 = vpack.c.bf16 %v2886_v54, %v2882_v52  ;;  %v4316_v1 = vpack.c.bf16 %v2900_v26, %v2896_v50  ;;  %v2909_v6 = vld [vmem:[%s6222_s6 + $0x1f0] sm:$0xff]  ;;  %v3240_v5 = vld [vmem:[#allocation11 + $0x188] sm:$0xff] }
 0x5e5   : > { %v2690_v16 = vmul.f32 0.0078125, %v2681_v9  ;;  %v2705_v27 = vmul.f32 %v5688_v18, %v5688_v18  ;;  %4331 = vmatpush1.bf16.msra.mxu1 %v4330_v43  ;;  %4301 = vmatprep.subr.bf16.mxu0 %v4300_v37  ;;  %v4312_v9 = vpack.c.bf16 %v2892_v29, %v2888_v28 }
 0x5e6   : > { %2717 = vadd.xlane.f32.xlu0 %v2704_v63  ;;  %4303 = vmatpush1.bf16.msra.mxu0 %v4302_v53  ;;  %v4308_v63 = vpack.c.bf16 %v2884_v11, %v2880_v8  ;;  %v2910_v53 = vld [vmem:[%s6222_s6 + $0x1f8] sm:$0xff] }
 0x5e7   : > { %v5710_v60 = vsub.f32 %v2663_v51, %v2690_v16  ;;  %2719 = vadd.xlane.f32.xlu1 %v2705_v27  ;;  %v4332_v51 = vpack.c.bf16 %v2870_v38, %v2866_v48  ;;  %4305 = vmatprep.subr.bf16.mxu0 %v4304_v2  ;;  %v2887_v16 = vld [vmem:[%s6222_s6 + $0x140] sm:$0xff]  ;;  %v2901_v48 = vld [vmem:[%s6222_s6 + $0x1b0] sm:$0xff]  ;;  %v2904_v38 = vld [vmem:[%s6222_s6 + $0x1c8] sm:$0xff]  ;;  %v4354_v2 = vpack.c.bf16 %v2909_v6, %v2905_v0 }
 0x5e8   : > { %v2891_v27 = vld [vmem:[%s6222_s6 + $0x160] sm:$0xff]  ;;  %v4350_v37 = vpack.c.bf16 %v2901_v48, %v2897_v45 }
 0x5e9   : > { %v2706_v22 = vmul.f32 %v5710_v60, %v5710_v60  ;;  %4333 = vmatprep.subr.bf16.mxu1 %v4332_v51  ;;  %v4314_v33 = vpack.c.bf16 %v2891_v27, %v2887_v16  ;;  %v4320_v51 = vpack.c.bf16 %v2908_v49, %v2904_v38 }
 0x5ea   : > { %4335 = vmatpush1.bf16.msra.mxu1 %v4334_v57  ;;  %4307 = vmatpush1.bf16.msra.mxu0 %v4306_v25  ;;  %v4352_v57 = vpack.c.bf16 %v2910_v53, %v2906_v19  ;;  %v3239_v25 = vld [vmem:[#allocation11 + $0x180] sm:$0xff] }
 0x5eb   : > { %2721 = vadd.xlane.f32.xlu0 %v2706_v22  ;;  %4337 = vmatprep.subr.bf16.mxu1 %v4336_v4  ;;  %v2902_v22 = vld [vmem:[%s6222_s6 + $0x1b8] sm:$0xff]  ;;  %v4356_v4 = vpack.c.bf16 %v3208_v42, %v3207_v39  ;;  %v4388_v7 = vpack.c.bf16 %v3240_v5, %v3239_v25  ;;  %v3191_v25 = vld [vmem:[#allocation11] sm:$0xff] }
 0x5ec   : > { %4309 = vmatprep.subr.bf16.mxu0 %v4308_v63  ;;  %v4348_v43 = vpack.c.bf16 %v2902_v22, %v2898_v47 }
 0x5ee   : > { %4339 = vmatpush1.bf16.msra.mxu1 %v4338_v21  ;;  %4311 = vmatpush1.bf16.msra.mxu0 %v4310_v14 }
 0x5ef   : > { %4341 = vmatprep.subr.bf16.mxu1 %v4340_v13  ;;  %4313 = vmatprep.subr.bf16.mxu0 %v4312_v9 }
 0x5f2   : > { %4343 = vmatpush1.bf16.msra.mxu1 %v4342_v24  ;;  %4315 = vmatpush1.bf16.msra.mxu0 %v4314_v33 }
 0x5f3   : > { %4345 = vmatprep.subr.bf16.mxu1 %v4344_v31  ;;  %4317 = vmatprep.subr.bf16.mxu0 %v4316_v1 }
 0x5f6   : > { %4347 = vmatpush1.bf16.msra.mxu1 %v4346_v23  ;;  %4319 = vmatpush1.bf16.msra.mxu0 %v4318_v44 }
 0x5f7   : > { %4349 = vmatprep.subr.bf16.mxu1 %v4348_v43  ;;  %4321 = vmatprep.subr.bf16.mxu0 %v4320_v51 }
 0x5fa   : > { %4351 = vmatpush1.bf16.msra.mxu1 %v4350_v37  ;;  %4323 = vmatpush1.bf16.msra.mxu0 %v4322_v62  ;;  %v5881_v62 = vld [vmem:[%s6223_s0] ss:$0 sm:$0xff] }
 0x5fb   : > { %4353 = vmatprep.subr.bf16.mxu1 %v4352_v57  ;;  %4357 = vmatprep.subr.bf16.mxu0 %v4356_v4  ;;  %v2737_v5 = vmul.f32 %v5881_v62, %v5648_v61  ;;  %v2738_v61 = vmul.f32 %v5881_v62, %v5645_v59 }
 0x5fe   : > { %4355 = vmatpush1.bf16.msra.mxu1 %v4354_v2 }
 0x5ff   : > { %4389 = vmatprep.subr.bf16.mxu1 %v4388_v7 }
 0x667   : > { %v2708_v8 = vpop.xlane.xlu1 %2707 }
 0x668   : > { %v2723_v52 = vmul.f32 0.007874016, %v2708_v8  ;;  %v3223_v8 = vld [vmem:[#allocation11 + $0x100] sm:$0xff] }
 0x669   : > { %v2710_v21 = vpop.xlane.xlu0 %2709 }
 0x66a   : > { %v2724_v11 = vmul.f32 0.007874016, %v2710_v21  ;;  %v2745_v54 = vadd.f32 1e-06, %v2723_v52  ;;  %v3192_v21 = vld [vmem:[#allocation11 + $0x8] sm:$0xff] }
 0x66b   : > { %v2712_v58 = vpop.xlane.xlu1 %2711 }
 0x66c   : > { %v2746_v63 = vadd.f32 1e-06, %v2724_v11  ;;  %v2725_v12 = vmul.f32 0.007874016, %v2712_v58  ;;  %vm2755_vm4 = vcmp.eq.f32.partialorder %v2745_v54, inf  ;;  %v2758_v27 = vand.u32 2147483648, %v2745_v54 }
 0x66d   : > { %vm2757_vm5 = vcmp.eq.f32.partialorder %v2745_v54, 0.0  ;;  %v3224_v11 = vld [vmem:[#allocation11 + $0x108] sm:$0xff]  ;;  %v3209_v58 = vld [vmem:[#allocation11 + $0x90] sm:$0xff] }
 0x66e   : > { %4707 = vrsqrt.f32 %v2746_v63  ;;  %v2747_v13 = vadd.f32 1e-06, %v2725_v12  ;;  %vm2762_vm3 = vcmp.eq.f32.partialorder %v2746_v63, inf  ;;  %v2765_v33 = vand.u32 2147483648, %v2746_v63 }
 0x66f   : > { %4709 = vrsqrt.f32 %v2745_v54  ;;  %v2714_v14 = vpop.xlane.xlu0 %2713  ;;  %v2716_v24 = vpop.xlane.xlu1 %2715  ;;  %vm2764_vm6 = vcmp.eq.f32.partialorder %v2746_v63, 0.0 }
 0x670   : > { %4711 = vrsqrt.f32 %v2747_v13  ;;  %v2726_v15 = vmul.f32 0.007874016, %v2714_v14  ;;  %v2727_v29 = vmul.f32 0.007874016, %v2716_v24  ;;  %vm2769_vm7 = vcmp.eq.f32.partialorder %v2747_v13, inf  ;;  %v3241_v24 = vld [vmem:[#allocation11 + $0x190] sm:$0xff] }
 0x671   : > { %v2772_v44 = vand.u32 2147483648, %v2747_v13  ;;  %vm2771_vm8 = vcmp.eq.f32.partialorder %v2747_v13, 0.0 }
 0x672   : > { %v2748_v17 = vadd.f32 1e-06, %v2726_v15  ;;  %v2749_v16 = vadd.f32 1e-06, %v2727_v29 }
 0x673   : > { %v2718_v34 = vpop.xlane.xlu0 %2717 }
 0x674   : > { %4713 = vrsqrt.f32 %v2748_v17  ;;  %v2728_v23 = vmul.f32 0.007874016, %v2718_v34  ;;  %v2720_v43 = vpop.xlane.xlu1 %2719  ;;  %vm2776_vm9 = vcmp.eq.f32.partialorder %v2748_v17, inf  ;;  %v2779_v55 = vand.u32 2147483648, %v2748_v17  ;;  %v3226_v34 = vld [vmem:[#allocation11 + $0x118] sm:$0xff] }
 0x675   : > { %4715 = vrsqrt.f32 %v2749_v16  ;;  %v2729_v45 = vmul.f32 0.007874016, %v2720_v43  ;;  %vm2778_vm10 = vcmp.eq.f32.partialorder %v2748_v17, 0.0  ;;  %vm2783_vm11 = vcmp.eq.f32.partialorder %v2749_v16, inf }
 0x676   : > { %v5872_v41 = vadd.f32 1e-06, %v2728_v23  ;;  %v2786_v42 = vand.u32 2147483648, %v2749_v16  ;;  %vm2785_vm12 = vcmp.eq.f32.partialorder %v2749_v16, 0.0 }
 0x677   : > { %v5875_v37 = vadd.f32 1e-06, %v2729_v45  ;;  %v3243_v45 = vld [vmem:[#allocation11 + $0x1a0] sm:$0xff] }
 0x678   : > { %v4708_v28 = vpop.eup %4707  ;;  %v2722_v19 = vpop.xlane.xlu0 %2721  ;;  %vm2790_vm13 = vcmp.eq.f32.partialorder %v5872_v41, inf  ;;  %v2793_v59 = vand.u32 2147483648, %v5872_v41  ;;  %vm2792_vm14 = vcmp.eq.f32.partialorder %v5872_v41, 0.0 }
 0x679   : > { %v4710_v30 = vpop.eup %4709  ;;  %v2761_v9 = vmul.f32 %v4708_v28, %v2746_v63  ;;  %v2730_v56 = vmul.f32 0.007874016, %v2722_v19  ;;  %v3242_v28 = vld [vmem:[#allocation11 + $0x198] sm:$0xff]  ;;  %vm2797_vm15 = vcmp.eq.f32.partialorder %v5875_v37, inf  ;;  %v5918_v19 = vld [vmem:[#allocation11 + $0x20] sm:$0xff]  ;;  %vm2799_vm0 = vcmp.eq.f32.partialorder %v5875_v37, 0.0 }
 0x67a   : > { %v2754_v32 = vmul.f32 %v4710_v30, %v2745_v54  ;;  %v4712_v47 = vpop.eup %4711 }
 0x67b   : > { %v2763_v31 = vsel %vm2762_vm3, %v2746_v63, %v2761_v9  ;;  %v2768_v40 = vmul.f32 %v4712_v47, %v2747_v13  ;;  %v5883_v2 = vadd.f32 1e-06, %v2730_v56  ;;  %v5891_v63 = vld [vmem:[%s6224_s29] ss:$0 sm:$0xff]  ;;  %v4358_v9 = vpack.c.bf16 %v3192_v21, %v3191_v25  ;;  %v3196_v56 = vld [vmem:[#allocation11 + $0x28] sm:$0xff]  ;;  %v3245_v21 = vld [vmem:[#allocation11 + $0x1b0] sm:$0xff] }
 0x67c   : > { %v2756_v35 = vsel %vm2755_vm4, %v2745_v54, %v2754_v32  ;;  %v2766_v26 = vsel %vm2764_vm6, %v2765_v33, %v2763_v31  ;;  %v4390_v32 = vpack.c.bf16 %v3224_v11, %v3223_v8  ;;  %v3225_v33 = vld [vmem:[#allocation11 + $0x110] sm:$0xff]  ;;  %v3211_v47 = vld [vmem:[#allocation11 + $0xa0] sm:$0xff]  ;;  %v3246_v8 = vld [vmem:[#allocation11 + $0x1b8] sm:$0xff] }
 0x67d   : > { %v2759_v50 = vsel %vm2757_vm5, %v2758_v27, %v2756_v35  ;;  %v2810_v22 = vadd.f32 1e-06, %v2766_v26  ;;  %v2770_v48 = vsel %vm2769_vm7, %v2747_v13, %v2768_v40  ;;  %v2739_v13 = vmul.f32 %v5881_v62, %v5654_v3  ;;  %v5901_v27 = vld [vmem:[#allocation11 + $0x18] sm:$0xff] }
 0x67e   : > { %v2809_v1 = vadd.f32 1e-06, %v2759_v50  ;;  %v2773_v38 = vsel %vm2771_vm8, %v2772_v44, %v2770_v48  ;;  %v4714_v49 = vpop.eup %4713  ;;  %v4392_v26 = vpack.c.bf16 %v3242_v28, %v3241_v24  ;;  %v3212_v44 = vld [vmem:[#allocation11 + $0xa8] sm:$0xff]  ;;  %vm2804_vm1 = vcmp.eq.f32.partialorder %v5883_v2, inf  ;;  %v3229_v28 = vld [vmem:[#allocation11 + $0x130] sm:$0xff] }
 0x67f   : > { %v2811_v51 = vadd.f32 1e-06, %v2773_v38  ;;  %v2775_v53 = vmul.f32 %v4714_v49, %v2748_v17  ;;  %v4716_v57 = vpop.eup %4715  ;;  %v3244_v48 = vld [vmem:[#allocation11 + $0x1a8] sm:$0xff]  ;;  %v4394_v49 = vpack.c.bf16 %v3226_v34, %v3225_v33  ;;  %vm2806_vm2 = vcmp.eq.f32.partialorder %v5883_v2, 0.0 }
 0x680   : > { %4717 = vrcp.f32 %v2809_v1  ;;  %v2782_v6 = vmul.f32 %v4716_v57, %v2749_v16  ;;  %v3227_v57 = vld [vmem:[#allocation11 + $0x120] sm:$0xff]  ;;  %v4400_v24 = vpack.c.bf16 %v3246_v8, %v3245_v21 }
 0x681   : > { %4719 = vrsqrt.f32 %v5872_v41  ;;  %v2777_v0 = vsel %vm2776_vm9, %v2748_v17, %v2775_v53  ;;  %v3210_v17 = vld [vmem:[#allocation11 + $0x98] sm:$0xff] }
 0x682   : > { %4721 = vrcp.f32 %v2810_v22  ;;  %v2780_v39 = vsel %vm2778_vm10, %v2779_v55, %v2777_v0  ;;  %v2784_v7 = vsel %vm2783_vm11, %v2749_v16, %v2782_v6  ;;  %v5899_v16 = vld [vmem:[#allocation11 + $0x10] sm:$0xff]  ;;  %v4360_v50 = vpack.c.bf16 %v3210_v17, %v3209_v58  ;;  %v3228_v0 = vld [vmem:[#allocation11 + $0x128] sm:$0xff] }
 0x683   : > { %4723 = vrsqrt.f32 %v5875_v37  ;;  %v2812_v4 = vadd.f32 1e-06, %v2780_v39  ;;  %v2787_v54 = vsel %vm2785_vm12, %v2786_v42, %v2784_v7  ;;  %v4362_v43 = vpack.c.bf16 %v5901_v27, %v5899_v16  ;;  %v3214_v7 = vld [vmem:[#allocation11 + $0xb8] sm:$0xff]  ;;  %v3216_v27 = vld [vmem:[#allocation11 + $0xc8] sm:$0xff] }
 0x684   : > { %4725 = vrcp.f32 %v2811_v51  ;;  %v2813_v15 = vadd.f32 1e-06, %v2787_v54  ;;  %v4364_v39 = vpack.c.bf16 %v3212_v44, %v3211_v47  ;;  %v4396_v42 = vpack.c.bf16 %v3244_v48, %v3243_v45  ;;  %v3218_v44 = vld [vmem:[#allocation11 + $0xd8] sm:$0xff]  ;;  %v3249_v45 = vld [vmem:[#allocation11 + $0x1d0] sm:$0xff] }
 0x685   : > { %4727 = vrsqrt.f32 %v5883_v2  ;;  %v4366_v54 = vpack.c.bf16 %v3196_v56, %v5918_v19  ;;  %v2807_v58 = vand.u32 2147483648, %v5883_v2  ;;  %v3250_v48 = vld [vmem:[#allocation11 + $0x1d8] sm:$0xff] }
 0x686   : > { %4729 = vrcp.f32 %v2812_v4  ;;  %v3213_v4 = vld [vmem:[#allocation11 + $0xb0] sm:$0xff] }
 0x687   : > { %4731 = vrcp.f32 %v2813_v15  ;;  %v4368_v17 = vpack.c.bf16 %v3214_v7, %v3213_v4  ;;  %v2743_v4 = vmul.f32 %v5881_v62, %v5688_v18 }
 0x68a   : > { %v4718_v52 = vpop.eup %4717 }
 0x68b   : > { %v4720_v12 = vpop.eup %4719  ;;  %v2818_v14 = vmul.f32 %v4718_v52, %v2737_v5 }
 0x68c   : > { %v4722_v29 = vpop.eup %4721  ;;  %v2789_v30 = vmul.f32 %v4720_v12, %v5872_v41 }
 0x68d   : > { %v5905_v3 = vadd.f32 %v5891_v63, %v2818_v14  ;;  %v2820_v31 = vmul.f32 %v4722_v29, %v2738_v61  ;;  %v4724_v35 = vpop.eup %4723  ;;  %v3198_v14 = vld [vmem:[#allocation11 + $0x38] sm:$0xff] }
 0x68e   : > { %v2791_v23 = vsel %vm2790_vm13, %v5872_v41, %v2789_v30  ;;  %v4726_v1 = vpop.eup %4725  ;;  %v2796_v22 = vmul.f32 %v4724_v35, %v5875_v37  ;;  %v2800_v41 = vand.u32 2147483648, %v5875_v37  ;;  %v3230_v29 = vld [vmem:[#allocation11 + $0x138] sm:$0xff]  ;;  %v3215_v30 = vld [vmem:[#allocation11 + $0xc0] sm:$0xff] }
 0x68f   : > { %2998 = vmatmul.mubr.f32.vlgmr.msra.gmra.mrb[0].mxu0 %v5905_v3  ;;  %3111 = vmatmul.mubr.f32.vlgmr.msra.gmra.mrb[0].mxu1 %v5905_v3  ;;  %v2794_v40 = vsel %vm2792_vm14, %v2793_v59, %v2791_v23  ;;  %v5923_v53 = vadd.f32 %v5891_v63, %v2820_v31  ;;  %v2822_v55 = vmul.f32 %v4726_v1, %v2739_v13  ;;  %v4728_v25 = vpop.eup %4727  ;;  %v3197_v13 = vld [vmem:[#allocation11 + $0x30] sm:$0xff]  ;;  %v3247_v59 = vld [vmem:[#allocation11 + $0x1c0] sm:$0xff]  ;;  %v3248_v31 = vld [vmem:[#allocation11 + $0x1c8] sm:$0xff] }
 0x690   : > { %3003 = vmatprep.mubr.f32.mxu0 %v4959_v36  ;;  %3116 = vmatprep.mubr.f32.mxu1 %v4959_v36  ;;  %v2814_v38 = vadd.f32 1e-06, %v2794_v40  ;;  %v2798_v51 = vsel %vm2797_vm15, %v5875_v37, %v2796_v22  ;;  %v2740_v37 = vmul.f32 %v5881_v62, %v5658_v46  ;;  %v4730_v11 = vpop.eup %4729  ;;  %v2803_v52 = vmul.f32 %v4728_v25, %v5883_v2  ;;  %v3199_v23 = vld [vmem:[#allocation11 + $0x40] sm:$0xff]  ;;  %v3232_v22 = vld [vmem:[#allocation11 + $0x148] sm:$0xff]  ;;  %v3217_v40 = vld [vmem:[#allocation11 + $0xd0] sm:$0xff] }
 0x691   : > { %4359 = vmatpush3.bf16.msra.mxu0 %v4358_v9  ;;  %4391 = vmatpush3.bf16.msra.mxu1 %v4390_v32  ;;  %v2801_v6 = vsel %vm2799_vm0, %v2800_v41, %v2798_v51  ;;  %v4398_v46 = vpack.c.bf16 %v3228_v0, %v3227_v57  ;;  %v5936_v12 = vadd.f32 %v5891_v63, %v2822_v55  ;;  %v4732_v9 = vpop.eup %4731  ;;  %v3231_v1 = vld [vmem:[#allocation11 + $0x140] sm:$0xff]  ;;  %v3201_v51 = vld [vmem:[#allocation11 + $0x50] sm:$0xff]  ;;  %v3202_v55 = vld [vmem:[#allocation11 + $0x58] sm:$0xff] }
 0x692   : > { %4733 = vrcp.f32 %v2814_v38  ;;  %4361 = vmatprep.subr.bf16.mxu0 %v4360_v50  ;;  %4393 = vmatprep.subr.bf16.mxu1 %v4392_v26  ;;  %v2815_v5 = vadd.f32 1e-06, %v2801_v6  ;;  %v2824_v61 = vmul.f32 %v4730_v11, %v2740_v37  ;;  %v2805_v15 = vsel %vm2804_vm1, %v5883_v2, %v2803_v52  ;;  %v3200_v50 = vld [vmem:[#allocation11 + $0x48] sm:$0xff]  ;;  %v3233_v0 = vld [vmem:[#allocation11 + $0x150] sm:$0xff]  ;;  %v3234_v6 = vld [vmem:[#allocation11 + $0x158] sm:$0xff] }
 0x693   : > { %3004 = vmatmul.mubr.f32.gmra.mrb[2].mxu0 %v5923_v53  ;;  %3117 = vmatmul.mubr.f32.gmra.mrb[2].mxu1 %v5923_v53  ;;  %v2741_v32 = vmul.f32 %v5881_v62, %v5662_v20  ;;  %v2808_v16 = vsel %vm2806_vm2, %v2807_v58, %v2805_v15  ;;  %v4370_v33 = vpack.c.bf16 %v3198_v14, %v3197_v13  ;;  %v3220_v25 = vld [vmem:[#allocation11 + $0xe8] sm:$0xff]  ;;  %v3251_v37 = vld [vmem:[#allocation11 + $0x1e0] sm:$0xff] }
 0x694   : > { %3009 = vmatprep.mubr.f32.mxu0 %v4959_v36  ;;  %3122 = vmatprep.mubr.f32.mxu1 %v4959_v36  ;;  %4735 = vrcp.f32 %v2815_v5  ;;  %v2816_v2 = vadd.f32 1e-06, %v2808_v16  ;;  %v5947_v34 = vadd.f32 %v5891_v63, %v2824_v61  ;;  %v4402_v20 = vpack.c.bf16 %v3230_v29, %v3229_v28  ;;  %v3252_v5 = vld [vmem:[#allocation11 + $0x1e8] sm:$0xff]  ;;  %v3203_v52 = vld [vmem:[#allocation11 + $0x60] sm:$0xff]  ;;  %v3221_v28 = vld [vmem:[#allocation11 + $0xf0] sm:$0xff] }
 0x695   : > { %4363 = vmatpush3.bf16.msra.mxu0 %v4362_v43  ;;  %4395 = vmatpush3.bf16.msra.mxu1 %v4394_v49  ;;  %v2826_v35 = vmul.f32 %v4732_v9, %v2741_v32  ;;  %v4372_v26 = vpack.c.bf16 %v3216_v27, %v3215_v30  ;;  %v4404_v47 = vpack.c.bf16 %v3248_v31, %v3247_v59  ;;  %v3222_v29 = vld [vmem:[#allocation11 + $0xf8] sm:$0xff]  ;;  %v3253_v30 = vld [vmem:[#allocation11 + $0x1f0] sm:$0xff] }
 0x696   : > { %4365 = vmatprep.subr.bf16.mxu0 %v4364_v39  ;;  %4397 = vmatprep.subr.bf16.mxu1 %v4396_v42  ;;  %4737 = vrcp.f32 %v2816_v2  ;;  %v2742_v43 = vmul.f32 %v5881_v62, %v5666_v10  ;;  %v4374_v38 = vpack.c.bf16 %v3200_v50, %v3199_v23  ;;  %v4406_v10 = vpack.c.bf16 %v3232_v22, %v3231_v1  ;;  %v3219_v39 = vld [vmem:[#allocation11 + $0xe0] sm:$0xff]  ;;  %v3205_v32 = vld [vmem:[#allocation11 + $0x70] sm:$0xff]  ;;  %v3206_v16 = vld [vmem:[#allocation11 + $0x78] sm:$0xff] }
 0x697   : > { %3010 = vmatmul.mubr.f32.gmra.mrb[4].mxu0 %v5936_v12  ;;  %3123 = vmatmul.mubr.f32.gmra.mrb[4].mxu1 %v5936_v12  ;;  %v5956_v49 = vadd.f32 %v5891_v63, %v2826_v35  ;;  %v4376_v56 = vpack.c.bf16 %v3218_v44, %v3217_v40  ;;  %v4408_v57 = vpack.c.bf16 %v3250_v48, %v3249_v45  ;;  %v3254_v27 = vld [vmem:[#allocation11 + $0x1f8] sm:$0xff]  ;;  %v2911_v50 = vld [vmem:[%s6225_s3] sm:$0xf] }
 0x698   : > { %3015 = vmatprep.mubr.f32.mxu0 %v4959_v36  ;;  %3128 = vmatprep.mubr.f32.mxu1 %v4959_v36  ;;  %v4378_v7 = vpack.c.bf16 %v3202_v55, %v3201_v51  ;;  %v4410_v11 = vpack.c.bf16 %v3234_v6, %v3233_v0  ;;  %v4380_v18 = vpack.c.bf16 %v3220_v25, %v3219_v39  ;;  %v3238_v31 = vld [vmem:[#allocation11 + $0x178] sm:$0xff] }
 0x699   : > { %4367 = vmatpush3.bf16.msra.mxu0 %v4366_v54  ;;  %4399 = vmatpush3.bf16.msra.mxu1 %v4398_v46  ;;  %v3204_v54 = vld [vmem:[#allocation11 + $0x68] sm:$0xff]  ;;  %v4412_v46 = vpack.c.bf16 %v3252_v5, %v3251_v37  ;;  %v2744_v58 = vmul.f32 %v5881_v62, %v5710_v60  ;;  %v3235_v62 = vld [vmem:[#allocation11 + $0x160] sm:$0xff]  ;;  %v4384_v9 = vpack.c.bf16 %v3222_v29, %v3221_v28 }
 0x69a   : > { %4369 = vmatprep.subr.bf16.mxu0 %v4368_v17  ;;  %4401 = vmatprep.subr.bf16.mxu1 %v4400_v24  ;;  %v4382_v15 = vpack.c.bf16 %v3204_v54, %v3203_v52  ;;  %v3236_v17 = vld [vmem:[#allocation11 + $0x168] sm:$0xff]  ;;  %v4416_v59 = vpack.c.bf16 %v3254_v27, %v3253_v30 }
 0x69b   : > { %3016 = vmatmul.mubr.f32.gmra.mrb[6].mxu0 %v5947_v34  ;;  %3129 = vmatmul.mubr.f32.gmra.mrb[6].mxu1 %v5947_v34  ;;  %v4414_v24 = vpack.c.bf16 %v3236_v17, %v3235_v62 }
 0x69c   : > { %v4734_v41 = vpop.eup %4733  ;;  %3021 = vmatprep.mubr.f32.mxu0 %v4959_v36  ;;  %3134 = vmatprep.mubr.f32.mxu1 %v4959_v36 }
 0x69d   : > { %v2828_v19 = vmul.f32 %v4734_v41, %v2742_v43  ;;  %4371 = vmatpush3.bf16.msra.mxu0 %v4370_v33  ;;  %4403 = vmatpush3.bf16.msra.mxu1 %v4402_v20  ;;  %v2913_v33 = vlaneseq }
 0x69e   : > { %4373 = vmatprep.subr.bf16.mxu0 %v4372_v26  ;;  %4405 = vmatprep.subr.bf16.mxu1 %v4404_v47  ;;  %v4736_v42 = vpop.eup %4735 }
 0x69f   : > { %3022 = vmatmul.mubr.f32.gmra.mrb[8].mxu0 %v5956_v49  ;;  %3135 = vmatmul.mubr.f32.gmra.mrb[8].mxu1 %v5956_v49  ;;  %v5965_v21 = vadd.f32 %v5891_v63, %v2828_v19  ;;  %v2830_v8 = vmul.f32 %v4736_v42, %v2743_v4  ;;  %v2914_v35 = vshrl.u32 %v2913_v33, 7 }
 0x6a0   : > { %3027 = vmatprep.mubr.f32.mxu0 %v4959_v36  ;;  %3140 = vmatprep.mubr.f32.mxu1 %v4959_v36  ;;  %v4738_v61 = vpop.eup %4737 }
 0x6a1   : > { %4375 = vmatpush3.bf16.msra.mxu0 %v4374_v38  ;;  %4407 = vmatpush3.bf16.msra.mxu1 %v4406_v10  ;;  %v5974_v13 = vadd.f32 %v5891_v63, %v2830_v8  ;;  %v2832_v14 = vmul.f32 %v4738_v61, %v2744_v58  ;;  %v2915_v20 = vsub.s32 0, %v2914_v35  ;;  %v2923_v23 = vsub.s32 2, %v2914_v35 }
 0x6a2   : > { %4377 = vmatprep.subr.bf16.mxu0 %v4376_v56  ;;  %4409 = vmatprep.subr.bf16.mxu1 %v4408_v57  ;;  %v2919_v26 = vsub.s32 1, %v2914_v35  ;;  %v2927_v47 = vsub.s32 3, %v2914_v35 }
 0x6a3   : > { %3028 = vmatmul.mubr.f32.gmra.mrb[10].mxu0 %v5965_v21  ;;  %3141 = vmatmul.mubr.f32.gmra.mrb[10].mxu1 %v5965_v21  ;;  %v5981_v60 = vadd.f32 %v5891_v63, %v2832_v14  ;;  %v3237_v63 = vld [vmem:[#allocation11 + $0x170] sm:$0xff]  ;;  %v5988_v1 = vrot.slane %v2911_v50, %v2915_v20  ;;  %v5990_v22 = vrot.slane %v2911_v50, %v2923_v23 }
 0x6a4   : > { %3033 = vmatprep.mubr.f32.mxu0 %v4959_v36  ;;  %3146 = vmatprep.mubr.f32.mxu1 %v4959_v36  ;;  %v4418_v2 = vpack.c.bf16 %v3238_v31, %v3237_v63  ;;  %v5992_v40 = vrot.slane %v2911_v50, %v2919_v26  ;;  %v5994_v43 = vrot.slane %v2911_v50, %v2927_v47 }
 0x6a5   : > { %4379 = vmatpush3.bf16.msra.mxu0 %v4378_v7  ;;  %4411 = vmatpush3.bf16.msra.mxu1 %v4410_v11 }
 0x6a6   : > { %4381 = vmatprep.subr.bf16.mxu0 %v4380_v18  ;;  %4413 = vmatprep.subr.bf16.mxu1 %v4412_v46 }
 0x6a7   : > { %3034 = vmatmul.mubr.f32.gmra.mrb[12].mxu0 %v5974_v13  ;;  %3147 = vmatmul.mubr.f32.gmra.mrb[12].mxu1 %v5974_v13 }
 0x6a8   : > { %3039 = vmatprep.mubr.f32.mxu0 %v4959_v36  ;;  %3152 = vmatprep.mubr.f32.mxu1 %v4959_v36  ;;  %v4386_v36 = vpack.c.bf16 %v3206_v16, %v3205_v32 }
 0x6a9   : > { %4383 = vmatpush3.bf16.msra.mxu0 %v4382_v15  ;;  %4415 = vmatpush3.bf16.msra.mxu1 %v4414_v24 }
 0x6aa   : > { %4385 = vmatprep.subr.bf16.mxu0 %v4384_v9  ;;  %4417 = vmatprep.subr.bf16.mxu1 %v4416_v59 }
 0x6ab   : > { %3040 = vmatmul.mubr.f32.gmra.mrb[14].mxu0 %v5981_v60  ;;  %3153 = vmatmul.mubr.f32.gmra.mrb[14].mxu1 %v5981_v60 }
 0x6ad   : > { %4387 = vmatpush3.bf16.msra.mxu0 %v4386_v36  ;;  %4419 = vmatpush3.bf16.msra.mxu1 %v4418_v2 }
 0x762   : > { %v2999_v44 = vpop.f32.mrb[0].mxu0  ;;  %v3112_v45 = vpop.f32.mrb[0].mxu1 }
 0x763   : > { %v3000_v48 = vadd.f32 %v2999_v44, %v5988_v1  ;;  %v3113_v41 = vadd.f32 %v3112_v45, %v5990_v22  ;;  %v3001_v38 = vpop.f32.mrb[1].mxu0  ;;  %v3114_v19 = vpop.f32.mrb[1].mxu1 }
 0x764   : > { %v3002_v10 = vadd.f32 %v3001_v38, %v5992_v40  ;;  %v3115_v51 = vadd.f32 %v3114_v19, %v5994_v43 }
 0x765   : > { %v3159_v6 = vmax.f32 %v3000_v48, 0.0  ;;  %v3161_v39 = vmax.f32 %v3113_v41, 0.0 }
 0x766   : > { %v3160_v55 = vmax.f32 %v3002_v10, 0.0  ;;  %v3162_v56 = vmax.f32 %v3115_v51, 0.0  ;;  %v3005_v57 = vpop.f32.mrb[2].mxu0  ;;  %v3118_v0 = vpop.f32.mrb[2].mxu1 }
 0x767   : > { %v3006_v42 = vadd.f32 %v3005_v57, %v5988_v1  ;;  %v3119_v4 = vadd.f32 %v3118_v0, %v5990_v22  ;;  %v3007_v25 = vpop.f32.mrb[3].mxu0  ;;  %v3120_v37 = vpop.f32.mrb[3].mxu1 }
 0x768   : > { %v3008_v5 = vadd.f32 %v3007_v25, %v5992_v40  ;;  %v3121_v7 = vadd.f32 %v3120_v37, %v5994_v43  ;;  %3326 = vmatprep.mubr.f32.mxu0 %v3160_v55  ;;  %3431 = vmatprep.mubr.f32.mxu1 %v3162_v56 }
 0x769   : > { %3327 = vmatmul.mubr.f32.vlgmr.msra.gmra.mrb[16].mxu0 %v3159_v6  ;;  %3432 = vmatmul.mubr.f32.vlgmr.msra.gmra.mrb[16].mxu1 %v3161_v39  ;;  %v3163_v54 = vmax.f32 %v3006_v42, 0.0  ;;  %v3165_v46 = vmax.f32 %v3119_v4, 0.0 }
 0x76a   : > { %v3164_v8 = vmax.f32 %v3008_v5, 0.0  ;;  %v3166_v11 = vmax.f32 %v3121_v7, 0.0  ;;  %v3011_v18 = vpop.f32.mrb[4].mxu0  ;;  %v3124_v52 = vpop.f32.mrb[4].mxu1 }
 0x76b   : > { %v3012_v58 = vadd.f32 %v3011_v18, %v5988_v1  ;;  %v3125_v61 = vadd.f32 %v3124_v52, %v5990_v22  ;;  %v3013_v14 = vpop.f32.mrb[5].mxu0  ;;  %v3126_v15 = vpop.f32.mrb[5].mxu1 }
 0x76c   : > { %v3014_v62 = vadd.f32 %v3013_v14, %v5992_v40  ;;  %v3127_v17 = vadd.f32 %v3126_v15, %v5994_v43  ;;  %3331 = vmatprep.mubr.f32.mxu0 %v3164_v8  ;;  %3436 = vmatprep.mubr.f32.mxu1 %v3166_v11 }
 0x76d   : > { %3332 = vmatmul.mubr.f32.gmra.mrb[18].mxu0 %v3163_v54  ;;  %3437 = vmatmul.mubr.f32.gmra.mrb[18].mxu1 %v3165_v46  ;;  %v3167_v9 = vmax.f32 %v3012_v58, 0.0  ;;  %v3169_v32 = vmax.f32 %v3125_v61, 0.0 }
 0x76e   : > { %v3168_v24 = vmax.f32 %v3014_v62, 0.0  ;;  %v3170_v28 = vmax.f32 %v3127_v17, 0.0  ;;  %v3017_v29 = vpop.f32.mrb[6].mxu0  ;;  %v3130_v30 = vpop.f32.mrb[6].mxu1 }
 0x76f   : > { %v3018_v16 = vadd.f32 %v3017_v29, %v5988_v1  ;;  %v3131_v27 = vadd.f32 %v3130_v30, %v5990_v22  ;;  %v3019_v36 = vpop.f32.mrb[7].mxu0  ;;  %v3132_v59 = vpop.f32.mrb[7].mxu1 }
 0x770   : > { %v3020_v63 = vadd.f32 %v3019_v36, %v5992_v40  ;;  %v3133_v31 = vadd.f32 %v3132_v59, %v5994_v43  ;;  %3336 = vmatprep.mubr.f32.mxu0 %v3168_v24  ;;  %3441 = vmatprep.mubr.f32.mxu1 %v3170_v28 }
 0x771   : > { %3337 = vmatmul.mubr.f32.gmra.mrb[20].mxu0 %v3167_v9  ;;  %3442 = vmatmul.mubr.f32.gmra.mrb[20].mxu1 %v3169_v32  ;;  %v3171_v23 = vmax.f32 %v3018_v16, 0.0  ;;  %v3173_v50 = vmax.f32 %v3131_v27, 0.0 }
 0x772   : > { %v3172_v2 = vmax.f32 %v3020_v63, 0.0  ;;  %v3174_v33 = vmax.f32 %v3133_v31, 0.0  ;;  %v3023_v35 = vpop.f32.mrb[8].mxu0  ;;  %v3136_v20 = vpop.f32.mrb[8].mxu1 }
 0x773   : > { %v3024_v26 = vadd.f32 %v3023_v35, %v5988_v1  ;;  %v3137_v47 = vadd.f32 %v3136_v20, %v5990_v22  ;;  %v3025_v44 = vpop.f32.mrb[9].mxu0  ;;  %v3138_v45 = vpop.f32.mrb[9].mxu1 }
 0x774   : > { %v3026_v48 = vadd.f32 %v3025_v44, %v5992_v40  ;;  %v3139_v41 = vadd.f32 %v3138_v45, %v5994_v43  ;;  %3341 = vmatprep.mubr.f32.mxu0 %v3172_v2  ;;  %3446 = vmatprep.mubr.f32.mxu1 %v3174_v33 }
 0x775   : > { %3342 = vmatmul.mubr.f32.gmra.mrb[22].mxu0 %v3171_v23  ;;  %3447 = vmatmul.mubr.f32.gmra.mrb[22].mxu1 %v3173_v50  ;;  %v3175_v55 = vmax.f32 %v3024_v26, 0.0  ;;  %v3177_v56 = vmax.f32 %v3137_v47, 0.0 }
 0x776   : > { %v3176_v38 = vmax.f32 %v3026_v48, 0.0  ;;  %v3178_v19 = vmax.f32 %v3139_v41, 0.0  ;;  %v3029_v10 = vpop.f32.mrb[10].mxu0  ;;  %v3142_v51 = vpop.f32.mrb[10].mxu1 }
 0x777   : > { %v3030_v57 = vadd.f32 %v3029_v10, %v5988_v1  ;;  %v3143_v0 = vadd.f32 %v3142_v51, %v5990_v22  ;;  %v3031_v6 = vpop.f32.mrb[11].mxu0  ;;  %v3144_v39 = vpop.f32.mrb[11].mxu1 }
 0x778   : > { %v3032_v42 = vadd.f32 %v3031_v6, %v5992_v40  ;;  %v3145_v4 = vadd.f32 %v3144_v39, %v5994_v43  ;;  %3346 = vmatprep.mubr.f32.mxu0 %v3176_v38  ;;  %3451 = vmatprep.mubr.f32.mxu1 %v3178_v19 }
 0x779   : > { %3347 = vmatmul.mubr.f32.gmra.mrb[24].mxu0 %v3175_v55  ;;  %3452 = vmatmul.mubr.f32.gmra.mrb[24].mxu1 %v3177_v56  ;;  %v3179_v8 = vmax.f32 %v3030_v57, 0.0  ;;  %v3181_v11 = vmax.f32 %v3143_v0, 0.0 }
 0x77a   : > { %v3180_v25 = vmax.f32 %v3032_v42, 0.0  ;;  %v3182_v37 = vmax.f32 %v3145_v4, 0.0  ;;  %v3035_v5 = vpop.f32.mrb[12].mxu0  ;;  %v3148_v7 = vpop.f32.mrb[12].mxu1 }
 0x77b   : > { %v3036_v18 = vadd.f32 %v3035_v5, %v5988_v1  ;;  %v3149_v52 = vadd.f32 %v3148_v7, %v5990_v22  ;;  %v3037_v54 = vpop.f32.mrb[13].mxu0  ;;  %v3150_v46 = vpop.f32.mrb[13].mxu1 }
 0x77c   : > { %v3038_v58 = vadd.f32 %v3037_v54, %v5992_v40  ;;  %v3151_v61 = vadd.f32 %v3150_v46, %v5994_v43  ;;  %3351 = vmatprep.mubr.f32.mxu0 %v3180_v25  ;;  %3456 = vmatprep.mubr.f32.mxu1 %v3182_v37 }
 0x77d   : > { %3352 = vmatmul.mubr.f32.gmra.mrb[26].mxu0 %v3179_v8  ;;  %3457 = vmatmul.mubr.f32.gmra.mrb[26].mxu1 %v3181_v11  ;;  %v3183_v24 = vmax.f32 %v3036_v18, 0.0  ;;  %v3185_v28 = vmax.f32 %v3149_v52, 0.0 }
 0x77e   : > { %v3184_v14 = vmax.f32 %v3038_v58, 0.0  ;;  %v3186_v15 = vmax.f32 %v3151_v61, 0.0  ;;  %v3041_v62 = vpop.f32.mrb[14].mxu0  ;;  %v3154_v17 = vpop.f32.mrb[14].mxu1 }
 0x77f   : > { %v3042_v29 = vadd.f32 %v3041_v62, %v5988_v1  ;;  %v3155_v30 = vadd.f32 %v3154_v17, %v5990_v22  ;;  %v3043_v9 = vpop.f32.mrb[15].mxu0  ;;  %v3156_v32 = vpop.f32.mrb[15].mxu1 }
 0x780   : > { %v3044_v16 = vadd.f32 %v3043_v9, %v5992_v40  ;;  %v3157_v27 = vadd.f32 %v3156_v32, %v5994_v43  ;;  %3356 = vmatprep.mubr.f32.mxu0 %v3184_v14  ;;  %3461 = vmatprep.mubr.f32.mxu1 %v3186_v15  ;;  %v6031_v40 = vld [vmem:[%s6226_s25] ss:$0 sm:$0xff] }
 0x781   : > { %3357 = vmatmul.mubr.f32.gmra.mrb[28].mxu0 %v3183_v24  ;;  %3462 = vmatmul.mubr.f32.gmra.mrb[28].mxu1 %v3185_v28  ;;  %v3187_v63 = vmax.f32 %v3042_v29, 0.0  ;;  %v3189_v31 = vmax.f32 %v3155_v30, 0.0 }
 0x782   : > { %v3188_v36 = vmax.f32 %v3044_v16, 0.0  ;;  %v3190_v59 = vmax.f32 %v3157_v27, 0.0 }
 0x784   : > { %3361 = vmatprep.mubr.f32.mxu0 %v3188_v36  ;;  %3466 = vmatprep.mubr.f32.mxu1 %v3190_v59 }
 0x785   : > { %3362 = vmatmul.mubr.f32.gmra.mrb[30].mxu0 %v3187_v63  ;;  %3467 = vmatmul.mubr.f32.gmra.mrb[30].mxu1 %v3189_v31 }
 0x83c   : > { %v4020_v1 = vpop.f32.mrb[16].mxu0  ;;  %v4076_v22 = vpop.f32.mrb[16].mxu1 }
 0x83d   : > { %v4021_v43 = vpop.f32.mrb[17].mxu0  ;;  %v4077_v2 = vpop.f32.mrb[17].mxu1 }
 0x83e   : > { %v4022_v33 = vadd.f32 %v4021_v43, %v4020_v1  ;;  %v4078_v35 = vadd.f32 %v4077_v2, %v4076_v22 }
 0x840   : > { %v3329_v20 = vadd.f32 %v4022_v33, %v6031_v40  ;;  %v4023_v23 = vpop.f32.mrb[18].mxu0  ;;  %v4079_v50 = vpop.f32.mrb[18].mxu1 }
 0x841   : > { %v4024_v26 = vpop.f32.mrb[19].mxu0  ;;  %v4080_v47 = vpop.f32.mrb[19].mxu1 }
 0x842   : > { %v3434_v44 = vadd.f32 %v4078_v35, %v3329_v20  ;;  %v4025_v45 = vadd.f32 %v4024_v26, %v4023_v23  ;;  %v4081_v48 = vadd.f32 %v4080_v47, %v4079_v50 }
 0x844   : > { %v3334_v41 = vadd.f32 %v4025_v45, %v6031_v40  ;;  %v4026_v38 = vpop.f32.mrb[20].mxu0  ;;  %v4082_v19 = vpop.f32.mrb[20].mxu1  ;;  %v6036_v10 = vadd.f32 %v3434_v44, %v5905_v3 }
 0x845   : > { %v4027_v51 = vpop.f32.mrb[21].mxu0  ;;  %v4083_v55 = vpop.f32.mrb[21].mxu1 }
 0x846   : > { %v3439_v56 = vadd.f32 %v4081_v48, %v3334_v41  ;;  %v4028_v57 = vadd.f32 %v4027_v51, %v4026_v38  ;;  %v4084_v0 = vadd.f32 %v4083_v55, %v4082_v19  ;;  %3482 = vadd.xlane.f32.xlu1 %v6036_v10 }
 0x848   : > { %v3339_v6 = vadd.f32 %v4028_v57, %v6031_v40  ;;  %v4029_v39 = vpop.f32.mrb[22].mxu0  ;;  %v4085_v42 = vpop.f32.mrb[22].mxu1  ;;  %v3473_v4 = vadd.f32 %v3439_v56, %v5923_v53 }
 0x849   : > { %v4030_v25 = vpop.f32.mrb[23].mxu0  ;;  %v4086_v37 = vpop.f32.mrb[23].mxu1 }
 0x84a   : > { %v3444_v5 = vadd.f32 %v4084_v0, %v3339_v6  ;;  %v4031_v7 = vadd.f32 %v4030_v25, %v4029_v39  ;;  %v4087_v8 = vadd.f32 %v4086_v37, %v4085_v42  ;;  %3484 = vadd.xlane.f32.xlu0 %v3473_v4 }
 0x84c   : > { %v3344_v3 = vadd.f32 %v4031_v7, %v6031_v40  ;;  %v4032_v11 = vpop.f32.mrb[24].mxu0  ;;  %v4088_v18 = vpop.f32.mrb[24].mxu1  ;;  %v3474_v52 = vadd.f32 %v3444_v5, %v5936_v12 }
 0x84d   : > { %v4033_v54 = vpop.f32.mrb[25].mxu0  ;;  %v4089_v46 = vpop.f32.mrb[25].mxu1 }
 0x84e   : > { %v3449_v58 = vadd.f32 %v4087_v8, %v3344_v3  ;;  %v4034_v61 = vadd.f32 %v4033_v54, %v4032_v11  ;;  %v4090_v14 = vadd.f32 %v4089_v46, %v4088_v18  ;;  %3486 = vadd.xlane.f32.xlu1 %v3474_v52 }
 0x850   : > { %v3349_v53 = vadd.f32 %v4034_v61, %v6031_v40  ;;  %v4035_v15 = vpop.f32.mrb[26].mxu0  ;;  %v4091_v62 = vpop.f32.mrb[26].mxu1  ;;  %v3475_v17 = vadd.f32 %v3449_v58, %v5947_v34 }
 0x851   : > { %v4036_v24 = vpop.f32.mrb[27].mxu0  ;;  %v4092_v28 = vpop.f32.mrb[27].mxu1 }
 0x852   : > { %v3454_v29 = vadd.f32 %v4090_v14, %v3349_v53  ;;  %v4037_v30 = vadd.f32 %v4036_v24, %v4035_v15  ;;  %v4093_v9 = vadd.f32 %v4092_v28, %v4091_v62  ;;  %3488 = vadd.xlane.f32.xlu0 %v3475_v17 }
 0x854   : > { %v3354_v12 = vadd.f32 %v4037_v30, %v6031_v40  ;;  %v4038_v32 = vpop.f32.mrb[28].mxu0  ;;  %v4094_v16 = vpop.f32.mrb[28].mxu1  ;;  %v3476_v27 = vadd.f32 %v3454_v29, %v5956_v49 }
 0x855   : > { %v4039_v36 = vpop.f32.mrb[29].mxu0  ;;  %v4095_v59 = vpop.f32.mrb[29].mxu1 }
 0x856   : > { %v3459_v63 = vadd.f32 %v4093_v9, %v3354_v12  ;;  %v4040_v31 = vadd.f32 %v4039_v36, %v4038_v32  ;;  %v4096_v1 = vadd.f32 %v4095_v59, %v4094_v16  ;;  %3490 = vadd.xlane.f32.xlu1 %v3476_v27 }
 0x858   : > { %v3359_v34 = vadd.f32 %v4040_v31, %v6031_v40  ;;  %v4041_v22 = vpop.f32.mrb[30].mxu0  ;;  %v4097_v43 = vpop.f32.mrb[30].mxu1  ;;  %v3477_v2 = vadd.f32 %v3459_v63, %v5965_v21 }
 0x859   : > { %v4042_v33 = vpop.f32.mrb[31].mxu0  ;;  %v4098_v35 = vpop.f32.mrb[31].mxu1 }
 0x85a   : > { %v3464_v20 = vadd.f32 %v4096_v1, %v3359_v34  ;;  %v4043_v23 = vadd.f32 %v4042_v33, %v4041_v22  ;;  %v4099_v50 = vadd.f32 %v4098_v35, %v4097_v43  ;;  %3492 = vadd.xlane.f32.xlu0 %v3477_v2 }
 0x85c   : > { %v3364_v49 = vadd.f32 %v4043_v23, %v6031_v40  ;;  %v3478_v26 = vadd.f32 %v3464_v20, %v5974_v13 }
 0x85e   : > { %v3469_v47 = vadd.f32 %v4099_v50, %v3364_v49  ;;  %3494 = vadd.xlane.f32.xlu1 %v3478_v26 }
 0x860   : > { %v3479_v44 = vadd.f32 %v3469_v47, %v5981_v60 }
 0x862   : > { %3496 = vadd.xlane.f32.xlu0 %v3479_v44 }
 0x8d3   : > { %v3483_v45 = vpop.xlane.xlu1 %3482 }
 0x8d4   : > { %v3498_v48 = vmul.f32 0.0078125, %v3483_v45 }
 0x8d6   : > { %v6053_v41 = vsub.f32 %v6036_v10, %v3498_v48 }
 0x8d7   : > { %v3485_v21 = vpop.xlane.xlu0 %3484 }
 0x8d8   : > { %v3499_v38 = vmul.f32 0.0078125, %v3485_v21  ;;  %v3514_v19 = vmul.f32 %v6053_v41, %v6053_v41 }
 0x8da   : > { %v6057_v51 = vsub.f32 %v3473_v4, %v3499_v38  ;;  %3522 = vadd.xlane.f32.xlu1 %v3514_v19 }
 0x8db   : > { %v3487_v40 = vpop.xlane.xlu1 %3486 }
 0x8dc   : > { %v3500_v13 = vmul.f32 0.0078125, %v3487_v40  ;;  %v3515_v55 = vmul.f32 %v6057_v51, %v6057_v51 }
 0x8de   : > { %v6061_v60 = vsub.f32 %v3474_v52, %v3500_v13  ;;  %3524 = vadd.xlane.f32.xlu0 %v3515_v55  ;;  %v6088_v55 = vld [vmem:[%s6227_s14] ss:$0 sm:$0xff] }
 0x8df   : > { %v3489_v56 = vpop.xlane.xlu0 %3488 }
 0x8e0   : > { %v3501_v57 = vmul.f32 0.0078125, %v3489_v56  ;;  %v3516_v10 = vmul.f32 %v6061_v60, %v6061_v60 }
 0x8e2   : > { %v6065_v0 = vsub.f32 %v3475_v17, %v3501_v57  ;;  %3526 = vadd.xlane.f32.xlu1 %v3516_v10 }
 0x8e3   : > { %v3491_v6 = vpop.xlane.xlu1 %3490 }
 0x8e4   : > { %v3502_v39 = vmul.f32 0.0078125, %v3491_v6  ;;  %v3517_v42 = vmul.f32 %v6065_v0, %v6065_v0 }
 0x8e6   : > { %v6069_v4 = vsub.f32 %v3476_v27, %v3502_v39  ;;  %3528 = vadd.xlane.f32.xlu0 %v3517_v42 }
 0x8e7   : > { %v3493_v25 = vpop.xlane.xlu0 %3492 }
 0x8e8   : > { %v3503_v37 = vmul.f32 0.0078125, %v3493_v25  ;;  %v3518_v5 = vmul.f32 %v6069_v4, %v6069_v4  ;;  %v3552_v25 = vmul.f32 %v6088_v55, %v6053_v41 }
 0x8ea   : > { %v6073_v7 = vsub.f32 %v3477_v2, %v3503_v37  ;;  %3530 = vadd.xlane.f32.xlu1 %v3518_v5 }
 0x8eb   : > { %v3495_v8 = vpop.xlane.xlu1 %3494 }
 0x8ec   : > { %v3504_v3 = vmul.f32 0.0078125, %v3495_v8  ;;  %v3519_v11 = vmul.f32 %v6073_v7, %v6073_v7  ;;  %v6095_v8 = vld [vmem:[%s6228_s16] ss:$0 sm:$0xff] }
 0x8ee   : > { %v6077_v18 = vsub.f32 %v3478_v26, %v3504_v3  ;;  %3532 = vadd.xlane.f32.xlu0 %v3519_v11 }
 0x8ef   : > { %v3497_v52 = vpop.xlane.xlu0 %3496 }
 0x8f0   : > { %v3505_v54 = vmul.f32 0.0078125, %v3497_v52  ;;  %v3520_v46 = vmul.f32 %v6077_v18, %v6077_v18 }
 0x8f2   : > { %v6081_v58 = vsub.f32 %v3479_v44, %v3505_v54  ;;  %3534 = vadd.xlane.f32.xlu1 %v3520_v46 }
 0x8f4   : > { %v3521_v61 = vmul.f32 %v6081_v58, %v6081_v58 }
 0x8f6   : > { %3536 = vadd.xlane.f32.xlu0 %v3521_v61 }
 0x967   : > { %v3523_v14 = vpop.xlane.xlu1 %3522 }
 0x968   : > { %v3538_v53 = vmul.f32 0.007874016, %v3523_v14 }
 0x96a   : > { %v3560_v15 = vadd.f32 1e-06, %v3538_v53 }
 0x96b   : > { %v3525_v62 = vpop.xlane.xlu0 %3524 }
 0x96c   : > { %4739 = vrsqrt.f32 %v3560_v15  ;;  %v3539_v17 = vmul.f32 0.007874016, %v3525_v62  ;;  %vm3570_vm3 = vcmp.eq.f32.partialorder %v3560_v15, inf  ;;  %v3573_v59 = vand.u32 2147483648, %v3560_v15 }
 0x96d   : > { %vm3572_vm4 = vcmp.eq.f32.partialorder %v3560_v15, 0.0  ;;  %v3553_v62 = vmul.f32 %v6088_v55, %v6057_v51 }
 0x96e   : > { %v3561_v24 = vadd.f32 1e-06, %v3539_v17 }
 0x96f   : > { %v3527_v28 = vpop.xlane.xlu1 %3526 }
 0x970   : > { %v3540_v29 = vmul.f32 0.007874016, %v3527_v28  ;;  %4741 = vrsqrt.f32 %v3561_v24  ;;  %vm3577_vm5 = vcmp.eq.f32.partialorder %v3561_v24, inf  ;;  %v3580_v35 = vand.u32 2147483648, %v3561_v24 }
 0x971   : > { %vm3579_vm6 = vcmp.eq.f32.partialorder %v3561_v24, 0.0 }
 0x972   : > { %v3562_v30 = vadd.f32 1e-06, %v3540_v29 }
 0x973   : > { %v3529_v9 = vpop.xlane.xlu0 %3528 }
 0x974   : > { %4743 = vrsqrt.f32 %v3562_v30  ;;  %v3541_v12 = vmul.f32 0.007874016, %v3529_v9  ;;  %vm3584_vm7 = vcmp.eq.f32.partialorder %v3562_v30, inf  ;;  %v3587_v48 = vand.u32 2147483648, %v3562_v30 }
 0x975   : > { %vm3586_vm8 = vcmp.eq.f32.partialorder %v3562_v30, 0.0 }
 0x976   : > { %v4740_v32 = vpop.eup %4739  ;;  %v3563_v27 = vadd.f32 1e-06, %v3541_v12  ;;  %v3554_v12 = vmul.f32 %v6088_v55, %v6061_v60  ;;  %v3555_v60 = vmul.f32 %v6088_v55, %v6065_v0 }
 0x977   : > { %v3569_v16 = vmul.f32 %v4740_v32, %v3560_v15  ;;  %v3531_v36 = vpop.xlane.xlu1 %3530 }
 0x978   : > { %v3542_v63 = vmul.f32 0.007874016, %v3531_v36  ;;  %4745 = vrsqrt.f32 %v3563_v27  ;;  %vm3591_vm9 = vcmp.eq.f32.partialorder %v3563_v27, inf  ;;  %v3594_v6 = vand.u32 2147483648, %v3563_v27 }
 0x979   : > { %v3571_v31 = vsel %vm3570_vm3, %v3560_v15, %v3569_v16  ;;  %vm3593_vm10 = vcmp.eq.f32.partialorder %v3563_v27, 0.0 }
 0x97a   : > { %v3574_v1 = vsel %vm3572_vm4, %v3573_v59, %v3571_v31  ;;  %v3564_v34 = vadd.f32 1e-06, %v3542_v63  ;;  %v4742_v22 = vpop.eup %4741 }
 0x97b   : > { %v3624_v43 = vadd.f32 1e-06, %v3574_v1  ;;  %v3533_v2 = vpop.xlane.xlu0 %3532  ;;  %v3576_v33 = vmul.f32 %v4742_v22, %v3561_v24 }
 0x97c   : > { %4747 = vrsqrt.f32 %v3564_v34  ;;  %v3543_v20 = vmul.f32 0.007874016, %v3533_v2  ;;  %vm3598_vm11 = vcmp.eq.f32.partialorder %v3564_v34, inf  ;;  %v3601_v61 = vand.u32 2147483648, %v3564_v34 }
 0x97d   : > { %4749 = vrcp.f32 %v3624_v43  ;;  %v3578_v50 = vsel %vm3577_vm5, %v3561_v24, %v3576_v33  ;;  %vm3600_vm12 = vcmp.eq.f32.partialorder %v3564_v34, 0.0 }
 0x97e   : > { %v4744_v23 = vpop.eup %4743  ;;  %v3581_v49 = vsel %vm3579_vm6, %v3580_v35, %v3578_v50  ;;  %v3565_v47 = vadd.f32 1e-06, %v3543_v20  ;;  %v3556_v50 = vmul.f32 %v6088_v55, %v6069_v4  ;;  %v3558_v4 = vmul.f32 %v6088_v55, %v6077_v18 }
 0x97f   : > { %v3583_v26 = vmul.f32 %v4744_v23, %v3562_v30  ;;  %v3535_v44 = vpop.xlane.xlu1 %3534  ;;  %v3625_v45 = vadd.f32 1e-06, %v3581_v49 }
 0x980   : > { %v3544_v21 = vmul.f32 0.007874016, %v3535_v44  ;;  %4751 = vrsqrt.f32 %v3565_v47  ;;  %vm3605_vm13 = vcmp.eq.f32.partialorder %v3565_v47, inf  ;;  %vm3607_vm14 = vcmp.eq.f32.partialorder %v3565_v47, 0.0 }
 0x981   : > { %v3585_v38 = vsel %vm3584_vm7, %v3562_v30, %v3583_v26  ;;  %4753 = vrcp.f32 %v3625_v45  ;;  %v3608_v30 = vand.u32 2147483648, %v3565_v47 }
 0x982   : > { %v3588_v19 = vsel %vm3586_vm8, %v3587_v48, %v3585_v38  ;;  %v3566_v40 = vadd.f32 1e-06, %v3544_v21  ;;  %v4746_v13 = vpop.eup %4745  ;;  %v3557_v21 = vmul.f32 %v6088_v55, %v6073_v7 }
 0x983   : > { %v3626_v56 = vadd.f32 1e-06, %v3588_v19  ;;  %v3537_v57 = vpop.xlane.xlu0 %3536  ;;  %v3590_v10 = vmul.f32 %v4746_v13, %v3563_v27 }
 0x984   : > { %4755 = vrsqrt.f32 %v3566_v40  ;;  %v3545_v39 = vmul.f32 0.007874016, %v3537_v57  ;;  %vm3612_vm15 = vcmp.eq.f32.partialorder %v3566_v40, inf  ;;  %v3615_v31 = vand.u32 2147483648, %v3566_v40 }
 0x985   : > { %4757 = vrcp.f32 %v3626_v56  ;;  %v3592_v37 = vsel %vm3591_vm9, %v3563_v27, %v3590_v10  ;;  %vm3614_vm0 = vcmp.eq.f32.partialorder %v3566_v40, 0.0  ;;  %v3559_v10 = vmul.f32 %v6088_v55, %v6081_v58 }
 0x986   : > { %v4748_v42 = vpop.eup %4747  ;;  %v3595_v3 = vsel %vm3593_vm10, %v3594_v6, %v3592_v37  ;;  %v3567_v52 = vadd.f32 1e-06, %v3545_v39 }
 0x987   : > { %v4750_v5 = vpop.eup %4749  ;;  %v3597_v11 = vmul.f32 %v4748_v42, %v3564_v34  ;;  %v3627_v46 = vadd.f32 1e-06, %v3595_v3 }
 0x988   : > { %v3633_v54 = vmul.f32 %v4750_v5, %v3552_v25  ;;  %4759 = vrsqrt.f32 %v3567_v52  ;;  %vm3619_vm1 = vcmp.eq.f32.partialorder %v3567_v52, inf  ;;  %v3622_v23 = vand.u32 2147483648, %v3567_v52 }
 0x989   : > { %v3599_v14 = vsel %vm3598_vm11, %v3564_v34, %v3597_v11  ;;  %4761 = vrcp.f32 %v3627_v46  ;;  %vm3621_vm2 = vcmp.eq.f32.partialorder %v3567_v52, 0.0 }
 0x98a   : > { %v3654_v41 = vadd.f32 %v6095_v8, %v3633_v54  ;;  %v3602_v53 = vsel %vm3600_vm12, %v3601_v61, %v3599_v14  ;;  %v4752_v15 = vpop.eup %4751 }
 0x98b   : > { %v3628_v17 = vadd.f32 1e-06, %v3602_v53  ;;  %v4754_v24 = vpop.eup %4753  ;;  %v3604_v28 = vmul.f32 %v4752_v15, %v3565_v47 }
 0x98c   : > { %3662 = vst [vmem:[#allocation13] sm:$0xff] %v3654_v41  ;;  %v3635_v29 = vmul.f32 %v4754_v24, %v3553_v62 }
 0x98d   : > { %4763 = vrcp.f32 %v3628_v17  ;;  %v3606_v32 = vsel %vm3605_vm13, %v3565_v47, %v3604_v28 }
 0x98e   : > { %v4756_v9 = vpop.eup %4755  ;;  %v3655_v27 = vadd.f32 %v6095_v8, %v3635_v29  ;;  %v3609_v36 = vsel %vm3607_vm14, %v3608_v30, %v3606_v32 }
 0x98f   : > { %v4758_v16 = vpop.eup %4757  ;;  %v3611_v59 = vmul.f32 %v4756_v9, %v3566_v40  ;;  %v3629_v63 = vadd.f32 1e-06, %v3609_v36 }
 0x990   : > { %v3637_v51 = vmul.f32 %v4758_v16, %v3554_v12  ;;  %3663 = vst [vmem:[#allocation13 + $0x8] sm:$0xff] %v3655_v27 }
 0x991   : > { %v3613_v1 = vsel %vm3612_vm15, %v3566_v40, %v3611_v59  ;;  %4765 = vrcp.f32 %v3629_v63 }
 0x992   : > { %v3656_v34 = vadd.f32 %v6095_v8, %v3637_v51  ;;  %v3616_v22 = vsel %vm3614_vm0, %v3615_v31, %v3613_v1  ;;  %v4760_v43 = vpop.eup %4759 }
 0x993   : > { %v3630_v2 = vadd.f32 1e-06, %v3616_v22  ;;  %v4762_v33 = vpop.eup %4761  ;;  %v3618_v35 = vmul.f32 %v4760_v43, %v3567_v52 }
 0x994   : > { %3664 = vst [vmem:[#allocation13 + $0x10] sm:$0xff] %v3656_v34  ;;  %v3639_v20 = vmul.f32 %v4762_v33, %v3555_v60 }
 0x995   : > { %4767 = vrcp.f32 %v3630_v2  ;;  %v3620_v49 = vsel %vm3619_vm1, %v3567_v52, %v3618_v35 }
 0x996   : > { %v3657_v47 = vadd.f32 %v6095_v8, %v3639_v20  ;;  %v3623_v44 = vsel %vm3621_vm2, %v3622_v23, %v3620_v49 }
 0x997   : > { %v4764_v26 = vpop.eup %4763  ;;  %v3631_v48 = vadd.f32 1e-06, %v3623_v44 }
 0x998   : > { %v3641_v45 = vmul.f32 %v4764_v26, %v3556_v50  ;;  %3665 = vst [vmem:[#allocation13 + $0x18] sm:$0xff] %v3657_v47 }
 0x999   : > { %4769 = vrcp.f32 %v3631_v48 }
 0x99a   : > { %v3658_v0 = vadd.f32 %v6095_v8, %v3641_v45 }
 0x99b   : > { %v4766_v38 = vpop.eup %4765 }
 0x99c   : > { %3666 = vst [vmem:[#allocation13 + $0x20] sm:$0xff] %v3658_v0  ;;  %v3643_v19 = vmul.f32 %v4766_v38, %v3557_v21 }
 0x99e   : > { %v3659_v13 = vadd.f32 %v6095_v8, %v3643_v19 }
 0x99f   : > { %v4768_v40 = vpop.eup %4767 }
 0x9a0   : > { %v3645_v56 = vmul.f32 %v4768_v40, %v3558_v4  ;;  %3667 = vst [vmem:[#allocation13 + $0x28] sm:$0xff] %v3659_v13 }
 0x9a2   : > { %v3660_v57 = vadd.f32 %v6095_v8, %v3645_v56 }
 0x9a3   : > { %v4770_v6 = vpop.eup %4769 }
 0x9a4   : > { %3668 = vst [vmem:[#allocation13 + $0x30] sm:$0xff] %v3660_v57  ;;  %v3647_v39 = vmul.f32 %v4770_v6, %v3559_v10 }
 0x9a6   : > { %v3661_v7 = vadd.f32 %v6095_v8, %v3647_v39 }
 0x9a8   : > { %3669 = vst [vmem:[#allocation13 + $0x38] sm:$0xff] %v3661_v7 }
 0x9a9 PF: > { %p4493_p6 = scmp.eq.s32.totalorder %s5094_s30, 3  ;;  %s4960_s0 = smov [#allocation13]  }
 0x9aa   : > { %s3676_s20 = sshll.u32 %s4960_s0, 4  ;;  %s3677_s20 = int_to_ptr.vmem [resolvable:$true] %s3676_s20 }
 0x9ab   : > { %s4883_s26 = scalar_lea.vmem %s3677_s20, 1024  ;;  %p4890_p10 = scmp.lt.s32.totalorder %s3677_s20, %s3677_s20 }
 0x9ac   : > { %p4884_p7 = scmp.ne.s32.totalorder %s3677_s20, %s4883_s26  ;;  %p4891_p12 = scmp.lt.s32.totalorder %s4883_s26, %s4883_s26 }
 0x9ae   : > { %p4885_p4 = pnand %p4884_p7, %p4493_p6  ;;  %p4892_p0 = por %p4891_p12, %p4890_p10 }
 0x9b0   : > { %p4886_p8 = pneg %p4885_p4 }
 0x9b2   : > { %p4893_p1 = pnand %p4892_p0, %p4886_p8 }
 0x9b4   : > { %4896 = shalt.err (!%p4893_p1)
}
 0x9b5   : > { %s6229_s4 = sld [smem:[#allocation34_spill]] }
 0x9bb   : > { %s4897_s3 = scalar_lea.hbm %s6229_s4, 1024 }
 0x9bc   : > { %p4898_p2 = scmp.ne.s32.totalorder %s6229_s4, %s4897_s3  ;;  %p4903_p9 = scmp.lt.u32.totalorder %s4897_s3, %s6229_s4 }
 0x9be   : > { %p4899_p3 = pnand %p4898_p2, %p4493_p6 }
 0x9c0   : > { %p4900_p5 = pneg %p4899_p3 }
 0x9c2   : > { %p4905_p11 = pnand %p4903_p9, %p4900_p5 }
 0x9c4   : > { %4908 = shalt.err (!%p4905_p11)
}
 0x9c5   : > { %s4961_s27 = smov 128   ;;  %s4962_s14 = smov 8  }
 0x9c6   : > { %4469 = dma.vmem_to_hbm [thread:$0]  (%p4493_p6), %s3677_s20, 1024, %s6229_s4, [#allocation7], %s4961_s27, %s4961_s27, %s4962_s14  }
 0x9c7   : > { %4934 = dma.done.wait (%p4493_p6), [#allocation7], 1024  }
 0x9c8   : > { %4936 = vsyncadd (%p4493_p6), [#allocation7], 4294966272 }
 0x9c9 PF: > { %s6230_s29 = sld [smem:[#allocation18_spill]]  ;;  %s6231_s16 = sld [smem:[#allocation19_spill]] }
 0x9ca   : > { %s6232_s3 = smov %s4943_s28 }
 0x9cf   : > { %p33_p13 = scmp.ge.s32.totalorder %s6230_s29, 6   ;;  %s6233_s28 = smov %s6231_s16 }
 0x9d1   :  { %35 = sbr.rel (!%p33_p13) target bundleno = 21 (0x15), region = 212 }
 0x9d8   :  { %3692 = vsyncpa [#allocation6], 1 }
 0x9d9   :  { %3694 = vsyncpa [#allocation6 + $0x1], 1 }
 0x9da   :  { %3695 = vsyncpa [#allocation9], 1 }
 0x9db   :  { %3696 = vsyncpa [#allocation12], 1 }
 0x9dc   :  { %3697 = vsyncpa [#allocation7], 1 }
 0x9dd   :  { %3699 = vsyncpa [#allocation7 + $0x1], 1 }

</bundles_post_ra>
